<compile_context>
chip_gen: v5e
topology: v5e:2x2
jax: 0.10.0
libtpu: 0.0.40
codegen_flags: <defaults>
</compile_context>

<pallas_src>
import functools

import numpy as np
import jax
import jax.numpy as jnp
from jax.experimental import pallas as pl
from jax.experimental.pallas import tpu as pltpu

_LANE = 128                 # lane tiling (last dim)
_DOT_DTYPE = jnp.bfloat16   # MXU / intermediate-activation dtype (f32 acc)


def _round_up(x, m):
    return (x + m - 1) // m * m


def _pad2d(a, rows, cols):
    r, c = a.shape
    if r == rows and c == cols:
        return a
    return jnp.pad(a, ((0, rows - r), (0, cols - c)))


def _pick_tm(m, cap=512):
    """Pick an M tile that divides M (no padded rows -> no output slice)."""
    for t in (512, 256, 128, 64, 32, 16):
        if t <= cap and m % t == 0:
            return t
    return min(cap, _round_up(m, 16))


@functools.lru_cache(maxsize=1)
def _physical_vmem_bytes():
    try:
        return int(pltpu.get_tpu_info().vmem_capacity_bytes)
    except Exception:
        return 64 * 1024 * 1024          # conservative (v7x per-core VMEM)


def _vmem_limit_bytes(est_bytes):
    cap = int(0.65 * _physical_vmem_bytes())   # headroom for compiler scratch
    return int(min(cap, max(2 * est_bytes, 16 * 1024 * 1024)))


# --------------------------------------------------------------------------
# Kernel 1: weight-stationary GEMM  y = act(x @ W + shift [+ residual])
#   grid = (M//tm,); full (Kp, Np) weight resident in VMEM; no acc scratch.
# --------------------------------------------------------------------------
def _make_gemm_kernel(relu, has_residual):
    def kernel(x_ref, w_ref, shift_ref, *rest):
        if has_residual:
            res_ref, o_ref = rest
        else:
            (o_ref,) = rest
        y = jnp.dot(x_ref[...], w_ref[...], preferred_element_type=jnp.float32)
        y = y + shift_ref[...]
        if has_residual:
            y = y + res_ref[...].astype(jnp.float32)
        if relu:
            y = jnp.maximum(y, 0.0)
        o_ref[...] = y.astype(o_ref.dtype)
    return kernel


def fused_matmul(x, w, shift, residual=None, *, relu, n_pad=None,
                 out_dtype=_DOT_DTYPE, tm_cap=512):
    """y[:, :Np] = act((x @ pad(w)) + shift [+ residual]), Np lane-padded.

    x may carry extra zero-padded trailing K columns (w is zero-padded to
    match).  The padded output columns are exact zeros (zero weights + zero
    shift [+ zero residual], relu(0)=0).  Returns (M, Np).
    """
    M, K = x.shape
    Kw, N = w.shape
    Kp = _round_up(max(K, Kw), _LANE)
    Np = _round_up(N if n_pad is None else n_pad, _LANE)
    tm = _pick_tm(M, tm_cap)
    Mp = _round_up(M, tm)

    xp = _pad2d(x.astype(_DOT_DTYPE), Mp, Kp)
    wp = _pad2d(w.astype(jnp.float32), Kp, Np).astype(_DOT_DTYPE)
    sp = _pad2d(shift.reshape(1, -1).astype(jnp.float32), 1, Np)

    in_specs = [
        pl.BlockSpec((tm, Kp), lambda i: (i, 0)),
        pl.BlockSpec((Kp, Np), lambda i: (0, 0)),   # weight-stationary
        pl.BlockSpec((1, Np), lambda i: (0, 0)),
    ]
    args = [xp, wp, sp]
    has_residual = residual is not None
    if has_residual:
        rp = _pad2d(residual.astype(_DOT_DTYPE), Mp, Np)
        in_specs.append(pl.BlockSpec((tm, Np), lambda i: (i, 0)))
        args.append(rp)

    osize = np.dtype(out_dtype).itemsize
    est = (2 * tm * Kp * 2 + 2 * Kp * Np * 2 + 2 * tm * Np * osize
           + (2 * tm * Np * 2 if has_residual else 0) + 4 * Np)

    out = pl.pallas_call(
        _make_gemm_kernel(relu, has_residual),
        out_shape=jax.ShapeDtypeStruct((Mp, Np), out_dtype),
        grid=(Mp // tm,),
        in_specs=in_specs,
        out_specs=pl.BlockSpec((tm, Np), lambda i: (i, 0)),
        compiler_params=pltpu.CompilerParams(
            dimension_semantics=("parallel",),
            vmem_limit_bytes=_vmem_limit_bytes(est)),
    )(*args)
    return out[:M] if Mp != M else out


# --------------------------------------------------------------------------
# Kernel 2: fused conv1 + projection-shortcut 1x1 (single pass over x).
#   Two outputs: h1 = relu(x@w1 + b1), sc = x@ws + bs (no ReLU).
# --------------------------------------------------------------------------
def _conv1_shortcut_kernel(x_ref, w_ref, shift_ref, o1_ref, o2_ref):
    y = jnp.dot(x_ref[...], w_ref[...], preferred_element_type=jnp.float32)
    y = y + shift_ref[...]
    n1 = o1_ref.shape[-1]                           # lane-aligned split point
    o1_ref[...] = jnp.maximum(y[:, :n1], 0.0).astype(o1_ref.dtype)
    o2_ref[...] = y[:, n1:].astype(o2_ref.dtype)


def fused_conv1_shortcut(x2d, w1, b1, ws, bs, n1_pad, n2_pad, *, tm_cap=512):
    M, K = x2d.shape
    Kp = _round_up(max(K, w1.shape[0], ws.shape[0]), _LANE)
    tm = _pick_tm(M, tm_cap)
    Mp = _round_up(M, tm)
    Np = n1_pad + n2_pad

    xp = _pad2d(x2d.astype(_DOT_DTYPE), Mp, Kp)
    w_cat = jnp.concatenate(
        [_pad2d(w1.astype(jnp.float32), Kp, n1_pad),
         _pad2d(ws.astype(jnp.float32), Kp, n2_pad)], axis=1).astype(_DOT_DTYPE)
    s_cat = jnp.concatenate(
        [_pad2d(b1.reshape(1, -1).astype(jnp.float32), 1, n1_pad),
         _pad2d(bs.reshape(1, -1).astype(jnp.float32), 1, n2_pad)], axis=1)

    est = 2 * tm * Kp * 2 + 2 * Kp * Np * 2 + 2 * 2 * tm * Np * 2 + 4 * Np
    h1, sc = pl.pallas_call(
        _conv1_shortcut_kernel,
        out_shape=(jax.ShapeDtypeStruct((Mp, n1_pad), _DOT_DTYPE),
                   jax.ShapeDtypeStruct((Mp, n2_pad), _DOT_DTYPE)),
        grid=(Mp // tm,),
        in_specs=[pl.BlockSpec((tm, Kp), lambda i: (i, 0)),
                  pl.BlockSpec((Kp, Np), lambda i: (0, 0)),
                  pl.BlockSpec((1, Np), lambda i: (0, 0))],
        out_specs=(pl.BlockSpec((tm, n1_pad), lambda i: (i, 0)),
                   pl.BlockSpec((tm, n2_pad), lambda i: (i, 0))),
        compiler_params=pltpu.CompilerParams(
            dimension_semantics=("parallel",),
            vmem_limit_bytes=_vmem_limit_bytes(est)),
    )(xp, w_cat, s_cat)
    if Mp != M:
        h1, sc = h1[:M], sc[:M]
    return h1, sc


# --------------------------------------------------------------------------
# Kernel 3: fused 3x3 conv (stride=1, pad=1) + BN shift + ReLU.
#   kx taps pre-merged along channels ("x3" slab) -> 3 dots with K = 3*Cp,
#   H-only slicing inside the kernel, no accumulator scratch.
# --------------------------------------------------------------------------
def _conv3x3_kernel(x3_ref, w_ref, shift_ref, o_ref, *, Ho, Wo, relu):
    # x3_ref: (1, Ho+2, Wo, 3*Cp) bf16   w_ref: (3, 3*Cp, tn) bf16
    # shift_ref: (1, tn) f32             o_ref: (1, Ho, Wo, tn)
    def tap(ky):
        lhs = x3_ref[0, ky:ky + Ho, :, :].reshape(Ho * Wo, -1)
        return jnp.dot(lhs, w_ref[ky], preferred_element_type=jnp.float32)

    y = tap(0) + tap(1) + tap(2) + shift_ref[...]
    if relu:
        y = jnp.maximum(y, 0.0)
    o_ref[...] = y.reshape(1, Ho, Wo, -1).astype(o_ref.dtype)


def conv3x3_bn_relu(h1_nhwc, w_hwio_scaled, shift, *, tn=256):
    """h1_nhwc: (N, H, W, Cp) bf16 with zero-padded channels; stride=1, pad=1.

    Returns (N, H, W, Coutp) bf16 with zero-padded output channels.
    """
    N, H, W, Cp = h1_nhwc.shape
    Cin, Cout = w_hwio_scaled.shape[2], w_hwio_scaled.shape[3]
    Coutp = _round_up(Cout, _LANE)
    tn = min(tn, Coutp)
    Coutp = _round_up(Coutp, tn)

    w = jnp.pad(w_hwio_scaled.astype(jnp.float32),
                ((0, 0), (0, 0), (0, Cp - Cin), (0, Coutp - Cout)))
    w = w.reshape(3, 3 * Cp, Coutp).astype(_DOT_DTYPE)   # [ky, kx*Cp+c, o]
    sp = _pad2d(shift.reshape(1, -1).astype(jnp.float32), 1, Coutp)

    xp = jnp.pad(h1_nhwc, ((0, 0), (1, 1), (1, 1), (0, 0)))     # spatial halo
    # kx merge done once in the wrapper (layout plumbing): the kernel never
    # slices along W, so there are no per-tap relayout copies.
    x3 = jnp.concatenate([xp[:, :, kx:kx + W, :] for kx in range(3)], axis=-1)
    Hp = H + 2

    est = (2 * Hp * W * 3 * Cp * 2          # x3 slab (double-buffered, bf16)
           + 2 * 3 * 3 * Cp * tn * 2        # weights
           + 2 * H * W * tn * 2             # output tile
           + 4 * Coutp)

    return pl.pallas_call(
        functools.partial(_conv3x3_kernel, Ho=H, Wo=W, relu=True),
        out_shape=jax.ShapeDtypeStruct((N, H, W, Coutp), _DOT_DTYPE),
        grid=(N, Coutp // tn),
        in_specs=[
            pl.BlockSpec((1, Hp, W, 3 * Cp), lambda b, j: (b, 0, 0, 0)),
            pl.BlockSpec((3, 3 * Cp, tn), lambda b, j: (0, 0, j)),
            pl.BlockSpec((1, tn), lambda b, j: (0, j)),
        ],
        out_specs=pl.BlockSpec((1, H, W, tn), lambda b, j: (b, 0, 0, j)),
        compiler_params=pltpu.CompilerParams(
            dimension_semantics=("parallel", "parallel"),
            vmem_limit_bytes=_vmem_limit_bytes(est)),
    )(x3, w, sp)


# --------------------------------------------------------------------------
# Glue (plain JAX): BN folding, layout conversion, bf16 im2col fallback.
# --------------------------------------------------------------------------
def fold_bn(gamma, beta, mean, var, eps=1e-5):
    scale = gamma / jnp.sqrt(var + eps)
    shift = beta - mean * scale
    return scale, shift


def im2col_3x3(x_nhwc, stride):
    """bf16 im2col for the strided 3x3 path (pad=1)."""
    N, H, W, C = x_nhwc.shape
    xp = jnp.pad(x_nhwc, ((0, 0), (1, 1), (1, 1), (0, 0)))
    Hout = (H + 2 - 3) // stride + 1
    Wout = (W + 2 - 3) // stride + 1
    cols = []
    for ky in range(3):
        for kx in range(3):
            cols.append(xp[:, ky:ky + stride * Hout:stride,
                           kx:kx + stride * Wout:stride, :])
    patches = jnp.concatenate(cols, axis=-1)            # (N, Hout, Wout, 9*C)
    return patches.reshape(N * Hout * Wout, 9 * C), Hout, Wout


def bottleneck_forward(x_nchw, p, *, stride, in_planes, planes):
    expansion = 4
    out_ch = expansion * planes
    x = jnp.transpose(x_nchw, (0, 2, 3, 1)).astype(jnp.float32)   # NHWC, f32
    N, H, W, Cin = x.shape
    M = N * H * W
    planes_p = _round_up(planes, _LANE)
    outch_p = _round_up(out_ch, _LANE)
    has_projection = (stride != 1) or (in_planes != out_ch)

    x2d = x.reshape(M, Cin).astype(_DOT_DTYPE)                    # bf16 ingress

    # ----- conv1 (1x1) + bn1 + relu, fused with the projection shortcut when
    #       both read the same x (stride == 1) -----
    s1, b1 = fold_bn(p["bn1_g"], p["bn1_b"], p["bn1_m"], p["bn1_v"])
    w1 = p["w1"][:, :, 0, 0].T * s1[None, :]                      # (Cin, planes)

    if has_projection:
        ss, bs = fold_bn(p["bns_g"], p["bns_b"], p["bns_m"], p["bns_v"])
        ws = p["ws"][:, :, 0, 0].T * ss[None, :]                  # (Cin, out_ch)

    if has_projection and stride == 1:
        h1p, shortcut = fused_conv1_shortcut(x2d, w1, b1, ws, bs,
                                             planes_p, outch_p)
    else:
        h1p = fused_matmul(x2d, w1, b1, relu=True, n_pad=planes_p)
        if has_projection:                      # stride != 1 projection
            xs = x[:, ::stride, ::stride, :]
            shortcut = fused_matmul(xs.reshape(-1, Cin).astype(_DOT_DTYPE),
                                    ws, bs, relu=False, n_pad=outch_p)
        else:                                   # identity (Cin == out_ch)
            shortcut = _pad2d(x2d, M, outch_p)

    h1_nhwc = h1p.reshape(N, H, W, planes_p)                      # bf16

    # ----- conv2 (3x3, stride, pad=1) + bn2 + relu -----
    s2, b2 = fold_bn(p["bn2_g"], p["bn2_b"], p["bn2_m"], p["bn2_v"])
    w2_hwio = jnp.transpose(p["w2"], (2, 3, 1, 0)) * s2[None, None, None, :]
    if stride == 1:
        h2 = conv3x3_bn_relu(h1_nhwc, w2_hwio, b2)                # (N,H,W,Cp2)
        Hout, Wout = H, W
    else:
        # TODO(synk): strided path uses bf16 im2col; fold stride-2 into the
        # fused 3x3 kernel to remove the 9x patch materialization.
        patches, Hout, Wout = im2col_3x3(h1_nhwc, stride)         # bf16
        w2_mat = jnp.pad(w2_hwio.astype(jnp.float32),
                         ((0, 0), (0, 0), (0, planes_p - planes), (0, 0)))
        w2_mat = w2_mat.reshape(9 * planes_p, planes)
        h2 = fused_matmul(patches, w2_mat, b2, relu=True, n_pad=planes_p)
        h2 = h2.reshape(N, Hout, Wout, planes_p)

    Cp2 = h2.shape[-1]
    Mo = N * Hout * Wout
    h2_2d = h2.reshape(Mo, Cp2)

    # ----- conv3 (1x1) + bn3 + residual add + relu -----
    s3, b3 = fold_bn(p["bn3_g"], p["bn3_b"], p["bn3_m"], p["bn3_v"])
    w3 = p["w3"][:, :, 0, 0].T * s3[None, :]                      # (planes, out_ch)
    out = fused_matmul(h2_2d, w3, b3, residual=shortcut, relu=True,
                       n_pad=outch_p, out_dtype=jnp.float32)      # (Mo, outch_p)

    if outch_p != out_ch:
        out = out[:, :out_ch]
    out = out.reshape(N, Hout, Wout, out_ch)
    return jnp.transpose(out, (0, 3, 1, 2))                       # back to NCHW


# --------------------------------------------------------------------------
# Pure-JAX reference (eval-mode BN), for correctness check.
# --------------------------------------------------------------------------
def reference_forward(x_nchw, p, *, stride, in_planes, planes):
    expansion = 4
    x = jnp.transpose(x_nchw, (0, 2, 3, 1)).astype(jnp.float32)

    def conv(inp, w, st, pad):
        w_hwio = jnp.transpose(w, (2, 3, 1, 0))
        return jax.lax.conv_general_dilated(
            inp, w_hwio, (st, st), pad,
            dimension_numbers=("NHWC", "HWIO", "NHWC"))

    def bn(inp, g, b, m, v, eps=1e-5):
        return (inp - m) / jnp.sqrt(v + eps) * g + b

    h = jax.nn.relu(bn(conv(x, p["w1"], 1, "VALID"),
                       p["bn1_g"], p["bn1_b"], p["bn1_m"], p["bn1_v"]))
    h = jax.nn.relu(bn(conv(h, p["w2"], stride, [(1, 1), (1, 1)]),
                       p["bn2_g"], p["bn2_b"], p["bn2_m"], p["bn2_v"]))
    h = bn(conv(h, p["w3"], 1, "VALID"),
           p["bn3_g"], p["bn3_b"], p["bn3_m"], p["bn3_v"])
    if stride != 1 or in_planes != expansion * planes:
        sc = bn(conv(x, p["ws"], stride, "VALID"),
                p["bns_g"], p["bns_b"], p["bns_m"], p["bns_v"])
    else:
        sc = x
    out = jax.nn.relu(h + sc)
    return jnp.transpose(out, (0, 3, 1, 2))


# --------------------------------------------------------------------------
def make_params(key, in_planes, planes):
    expansion = 4
    out_ch = expansion * planes
    ks = jax.random.split(key, 8)

    def bn_params(k, c):
        k1, k2, k3, k4 = jax.random.split(k, 4)
        return (0.5 + jax.random.uniform(k1, (c,)),            # gamma
                0.1 * jax.random.normal(k2, (c,)),              # beta
                0.1 * jax.random.normal(k3, (c,)),              # running_mean
                0.5 + jax.random.uniform(k4, (c,)))             # running_var

    p = {}
    p["w1"] = 0.2 * jax.random.normal(ks[0], (planes, in_planes, 1, 1))
    p["w2"] = 0.2 * jax.random.normal(ks[1], (planes, planes, 3, 3))
    p["w3"] = 0.2 * jax.random.normal(ks[2], (out_ch, planes, 1, 1))
    p["ws"] = 0.2 * jax.random.normal(ks[3], (out_ch, in_planes, 1, 1))
    p["bn1_g"], p["bn1_b"], p["bn1_m"], p["bn1_v"] = bn_params(ks[4], planes)
    p["bn2_g"], p["bn2_b"], p["bn2_m"], p["bn2_v"] = bn_params(ks[5], planes)
    p["bn3_g"], p["bn3_b"], p["bn3_m"], p["bn3_v"] = bn_params(ks[6], out_ch)
    p["bns_g"], p["bns_b"], p["bns_m"], p["bns_v"] = bn_params(ks[7], out_ch)
    return {k: v.astype(jnp.float32) for k, v in p.items()}


if __name__ == "__main__":
    in_planes, planes, stride = 4, 4, 1
    key = jax.random.PRNGKey(0)
    kx, kp = jax.random.split(key)
    x = jax.random.normal(kx, (2, in_planes, 16, 16), dtype=jnp.float32)
    params = make_params(kp, in_planes, planes)

    fwd = jax.jit(functools.partial(bottleneck_forward, stride=stride,
                                    in_planes=in_planes, planes=planes))
    out = jax.block_until_ready(fwd(x, params))

    ref = jax.block_until_ready(
        reference_forward(x, params, stride=stride,
                          in_planes=in_planes, planes=planes))

    assert out.shape == (2, 4 * planes, 16, 16), out.shape
    # bf16 MXU inputs + bf16 intermediates (f32 accumulation) -> relaxed
    # tolerance vs the f32 reference.
    assert jnp.allclose(out, ref, atol=1e-1, rtol=5e-2), (
        float(jnp.max(jnp.abs(out - ref))))
    print("KERNEL_OK")
</pallas_src>

<mosaic_0001>
module attributes {stable_mosaic.version = 11 : i64} {
  func.func @_conv1_shortcut_kernel(%arg0: i32, %arg1: memref<512x128xbf16, #tpu.memory_space<vmem>>, %arg2: memref<128x256xbf16, #tpu.memory_space<vmem>>, %arg3: memref<1x256xf32, #tpu.memory_space<vmem>>, %arg4: memref<512x128xbf16, #tpu.memory_space<vmem>>, %arg5: memref<512x128xbf16, #tpu.memory_space<vmem>>) attributes {dimension_semantics = [#tpu.dimension_semantics<parallel>], iteration_bounds = array<i64: 1>, scalar_prefetch = 0 : i64, scratch_operands = 0 : i64, tpu.core_type = #tpu.core_type<tc>, window_params = [{transform_indices = @transform_0, window_bounds = array<i64: 512, 128>}, {pipeline_mode = #tpu.pipeline_mode<synchronous>, transform_indices = @transform_1, window_bounds = array<i64: 128, 256>}, {pipeline_mode = #tpu.pipeline_mode<synchronous>, transform_indices = @transform_2, window_bounds = array<i64: 1, 256>}, {transform_indices = @transform_3, window_bounds = array<i64: 512, 128>}, {transform_indices = @transform_4, window_bounds = array<i64: 512, 128>}]} {
    %c0 = arith.constant 0 : index
    %c0_0 = arith.constant 0 : index
    %0 = vector.load %arg1[%c0, %c0_0] : memref<512x128xbf16, #tpu.memory_space<vmem>>, vector<512x128xbf16>
    %c0_1 = arith.constant 0 : index
    %c0_2 = arith.constant 0 : index
    %1 = vector.load %arg2[%c0_1, %c0_2] : memref<128x256xbf16, #tpu.memory_space<vmem>>, vector<128x256xbf16>
    %cst = arith.constant dense<0.000000e+00> : vector<512x256xf32>
    %2 = tpu.matmul %0, %1, %cst {dimension_numbers = #tpu.dot_dimension_numbers<[1], [0], [0], [1], [0, 0, 1, 1], [], []>} : vector<512x128xbf16>, vector<128x256xbf16>, vector<512x256xf32> -> vector<512x256xf32>
    %c0_3 = arith.constant 0 : index
    %c0_4 = arith.constant 0 : index
    %3 = vector.load %arg3[%c0_3, %c0_4] : memref<1x256xf32, #tpu.memory_space<vmem>>, vector<1x256xf32>
    %4 = vector.broadcast %3 : vector<1x256xf32> to vector<512x256xf32>
    %5 = arith.addf %2, %4 : vector<512x256xf32>
    %6 = vector.extract_strided_slice %5 {offsets = [0, 0], sizes = [512, 128], strides = [1, 1]} : vector<512x256xf32> to vector<512x128xf32>
    %cst_5 = arith.constant 0.000000e+00 : f32
    %7 = vector.broadcast %cst_5 : f32 to vector<512x128xf32>
    %8 = arith.maximumf %6, %7 : vector<512x128xf32>
    %9 = arith.truncf %8 : vector<512x128xf32> to vector<512x128xbf16>
    %c0_6 = arith.constant 0 : index
    %c0_7 = arith.constant 0 : index
    %10 = vector.load %arg4[%c0_6, %c0_7] : memref<512x128xbf16, #tpu.memory_space<vmem>>, vector<512x128xbf16>
    tpu.vector_store %arg4[%c0_6, %c0_7], %9 {strides = array<i32>} : memref<512x128xbf16, #tpu.memory_space<vmem>>, vector<512x128xbf16>,
    %11 = vector.extract_strided_slice %5 {offsets = [0, 128], sizes = [512, 128], strides = [1, 1]} : vector<512x256xf32> to vector<512x128xf32>
    %12 = arith.truncf %11 : vector<512x128xf32> to vector<512x128xbf16>
    %c0_8 = arith.constant 0 : index
    %c0_9 = arith.constant 0 : index
    %13 = vector.load %arg5[%c0_8, %c0_9] : memref<512x128xbf16, #tpu.memory_space<vmem>>, vector<512x128xbf16>
    tpu.vector_store %arg5[%c0_8, %c0_9], %12 {strides = array<i32>} : memref<512x128xbf16, #tpu.memory_space<vmem>>, vector<512x128xbf16>,
    return
  }
  func.func @transform_0(%arg0: i32) -> (i32, i32) {
    %c0_i32 = arith.constant 0 : i32
    %c0_i32_0 = arith.constant 0 : i32
    return %arg0, %c0_i32 : i32, i32
  }
  func.func @transform_1(%arg0: i32) -> (i32, i32) {
    %c0_i32 = arith.constant 0 : i32
    %c0_i32_0 = arith.constant 0 : i32
    %c0_i32_1 = arith.constant 0 : i32
    return %c0_i32, %c0_i32_0 : i32, i32
  }
  func.func @transform_2(%arg0: i32) -> (i32, i32) {
    %c0_i32 = arith.constant 0 : i32
    %c0_i32_0 = arith.constant 0 : i32
    %c0_i32_1 = arith.constant 0 : i32
    return %c0_i32, %c0_i32_0 : i32, i32
  }
  func.func @transform_3(%arg0: i32) -> (i32, i32) {
    %c0_i32 = arith.constant 0 : i32
    %c0_i32_0 = arith.constant 0 : i32
    return %arg0, %c0_i32 : i32, i32
  }
  func.func @transform_4(%arg0: i32) -> (i32, i32) {
    %c0_i32 = arith.constant 0 : i32
    %c0_i32_0 = arith.constant 0 : i32
    return %arg0, %c0_i32 : i32, i32
  }
}

module attributes {stable_mosaic.version = 11 : i64} {
  func.func @_conv3x3_kernel(%arg0: i32, %arg1: i32, %arg2: memref<1x18x16x384xbf16, #tpu.memory_space<vmem>>, %arg3: memref<3x384x128xbf16, #tpu.memory_space<vmem>>, %arg4: memref<1x128xf32, #tpu.memory_space<vmem>>, %arg5: memref<1x16x16x128xbf16, #tpu.memory_space<vmem>>) attributes {dimension_semantics = [#tpu.dimension_semantics<parallel>, #tpu.dimension_semantics<parallel>], iteration_bounds = array<i64: 2, 1>, scalar_prefetch = 0 : i64, scratch_operands = 0 : i64, tpu.core_type = #tpu.core_type<tc>, window_params = [{transform_indices = @transform_0, window_bounds = array<i64: 1, 18, 16, 384>}, {transform_indices = @transform_1, window_bounds = array<i64: 3, 384, 128>}, {transform_indices = @transform_2, window_bounds = array<i64: 1, 128>}, {transform_indices = @transform_3, window_bounds = array<i64: 1, 16, 16, 128>}]} {
    %c0 = arith.constant 0 : index
    %c0_0 = arith.constant 0 : index
    %c0_1 = arith.constant 0 : index
    %c0_2 = arith.constant 0 : index
    %0 = vector.load %arg2[%c0, %c0_0, %c0_1, %c0_2] : memref<1x18x16x384xbf16, #tpu.memory_space<vmem>>, vector<1x16x16x384xbf16>
    %1 = vector.shape_cast %0 : vector<1x16x16x384xbf16> to vector<16x16x384xbf16>
    %2 = vector.shape_cast %1 : vector<16x16x384xbf16> to vector<256x384xbf16>
    %c0_3 = arith.constant 0 : index
    %c0_4 = arith.constant 0 : index
    %c0_5 = arith.constant 0 : index
    %3 = vector.load %arg3[%c0_3, %c0_4, %c0_5] : memref<3x384x128xbf16, #tpu.memory_space<vmem>>, vector<1x384x128xbf16>
    %4 = vector.shape_cast %3 : vector<1x384x128xbf16> to vector<384x128xbf16>
    %cst = arith.constant dense<0.000000e+00> : vector<256x128xf32>
    %5 = tpu.matmul %2, %4, %cst {dimension_numbers = #tpu.dot_dimension_numbers<[1], [0], [0], [1], [0, 0, 1, 1], [], []>} : vector<256x384xbf16>, vector<384x128xbf16>, vector<256x128xf32> -> vector<256x128xf32>
    %c0_6 = arith.constant 0 : index
    %c1 = arith.constant 1 : index
    %c0_7 = arith.constant 0 : index
    %c0_8 = arith.constant 0 : index
    %6 = vector.load %arg2[%c0_6, %c1, %c0_7, %c0_8] : memref<1x18x16x384xbf16, #tpu.memory_space<vmem>>, vector<1x16x16x384xbf16>
    %7 = vector.shape_cast %6 : vector<1x16x16x384xbf16> to vector<16x16x384xbf16>
    %8 = vector.shape_cast %7 : vector<16x16x384xbf16> to vector<256x384xbf16>
    %c1_9 = arith.constant 1 : index
    %c0_10 = arith.constant 0 : index
    %c0_11 = arith.constant 0 : index
    %9 = vector.load %arg3[%c1_9, %c0_10, %c0_11] : memref<3x384x128xbf16, #tpu.memory_space<vmem>>, vector<1x384x128xbf16>
    %10 = vector.shape_cast %9 : vector<1x384x128xbf16> to vector<384x128xbf16>
    %cst_12 = arith.constant dense<0.000000e+00> : vector<256x128xf32>
    %11 = tpu.matmul %8, %10, %cst_12 {dimension_numbers = #tpu.dot_dimension_numbers<[1], [0], [0], [1], [0, 0, 1, 1], [], []>} : vector<256x384xbf16>, vector<384x128xbf16>, vector<256x128xf32> -> vector<256x128xf32>
    %12 = arith.addf %5, %11 : vector<256x128xf32>
    %c0_13 = arith.constant 0 : index
    %c2 = arith.constant 2 : index
    %c0_14 = arith.constant 0 : index
    %c0_15 = arith.constant 0 : index
    %13 = vector.load %arg2[%c0_13, %c2, %c0_14, %c0_15] : memref<1x18x16x384xbf16, #tpu.memory_space<vmem>>, vector<1x16x16x384xbf16>
    %14 = vector.shape_cast %13 : vector<1x16x16x384xbf16> to vector<16x16x384xbf16>
    %15 = vector.shape_cast %14 : vector<16x16x384xbf16> to vector<256x384xbf16>
    %c2_16 = arith.constant 2 : index
    %c0_17 = arith.constant 0 : index
    %c0_18 = arith.constant 0 : index
    %16 = vector.load %arg3[%c2_16, %c0_17, %c0_18] : memref<3x384x128xbf16, #tpu.memory_space<vmem>>, vector<1x384x128xbf16>
    %17 = vector.shape_cast %16 : vector<1x384x128xbf16> to vector<384x128xbf16>
    %cst_19 = arith.constant dense<0.000000e+00> : vector<256x128xf32>
    %18 = tpu.matmul %15, %17, %cst_19 {dimension_numbers = #tpu.dot_dimension_numbers<[1], [0], [0], [1], [0, 0, 1, 1], [], []>} : vector<256x384xbf16>, vector<384x128xbf16>, vector<256x128xf32> -> vector<256x128xf32>
    %19 = arith.addf %12, %18 : vector<256x128xf32>
    %c0_20 = arith.constant 0 : index
    %c0_21 = arith.constant 0 : index
    %20 = vector.load %arg4[%c0_20, %c0_21] : memref<1x128xf32, #tpu.memory_space<vmem>>, vector<1x128xf32>
    %21 = vector.broadcast %20 : vector<1x128xf32> to vector<256x128xf32>
    %22 = arith.addf %19, %21 : vector<256x128xf32>
    %cst_22 = arith.constant 0.000000e+00 : f32
    %23 = vector.broadcast %cst_22 : f32 to vector<256x128xf32>
    %24 = arith.maximumf %22, %23 : vector<256x128xf32>
    %25 = vector.shape_cast %24 : vector<256x128xf32> to vector<1x16x16x128xf32>
    %26 = arith.truncf %25 : vector<1x16x16x128xf32> to vector<1x16x16x128xbf16>
    %c0_23 = arith.constant 0 : index
    %c0_24 = arith.constant 0 : index
    %c0_25 = arith.constant 0 : index
    %c0_26 = arith.constant 0 : index
    %27 = vector.load %arg5[%c0_23, %c0_24, %c0_25, %c0_26] : memref<1x16x16x128xbf16, #tpu.memory_space<vmem>>, vector<1x16x16x128xbf16>
    tpu.vector_store %arg5[%c0_23, %c0_24, %c0_25, %c0_26], %26 {strides = array<i32>} : memref<1x16x16x128xbf16, #tpu.memory_space<vmem>>, vector<1x16x16x128xbf16>,
    return
  }
  func.func @transform_0(%arg0: i32, %arg1: i32) -> (i32, i32, i32, i32) {
    %c0_i32 = arith.constant 0 : i32
    %c0_i32_0 = arith.constant 0 : i32
    %c0_i32_1 = arith.constant 0 : i32
    %c0_i32_2 = arith.constant 0 : i32
    return %arg0, %c0_i32, %c0_i32_0, %c0_i32_1 : i32, i32, i32, i32
  }
  func.func @transform_1(%arg0: i32, %arg1: i32) -> (i32, i32, i32) {
    %c0_i32 = arith.constant 0 : i32
    %c0_i32_0 = arith.constant 0 : i32
    %c0_i32_1 = arith.constant 0 : i32
    return %c0_i32, %c0_i32_0, %arg1 : i32, i32, i32
  }
  func.func @transform_2(%arg0: i32, %arg1: i32) -> (i32, i32) {
    %c0_i32 = arith.constant 0 : i32
    %c0_i32_0 = arith.constant 0 : i32
    return %c0_i32, %arg1 : i32, i32
  }
  func.func @transform_3(%arg0: i32, %arg1: i32) -> (i32, i32, i32, i32) {
    %c0_i32 = arith.constant 0 : i32
    %c0_i32_0 = arith.constant 0 : i32
    %c0_i32_1 = arith.constant 0 : i32
    return %arg0, %c0_i32, %c0_i32_0, %arg1 : i32, i32, i32, i32
  }
}

module attributes {stable_mosaic.version = 11 : i64} {
  func.func @kernel(%arg0: i32, %arg1: memref<512x128xbf16, #tpu.memory_space<vmem>>, %arg2: memref<128x128xbf16, #tpu.memory_space<vmem>>, %arg3: memref<1x128xf32, #tpu.memory_space<vmem>>, %arg4: memref<512x128xbf16, #tpu.memory_space<vmem>>, %arg5: memref<512x128xf32, #tpu.memory_space<vmem>>) attributes {dimension_semantics = [#tpu.dimension_semantics<parallel>], iteration_bounds = array<i64: 1>, scalar_prefetch = 0 : i64, scratch_operands = 0 : i64, tpu.core_type = #tpu.core_type<tc>, window_params = [{transform_indices = @transform_0, window_bounds = array<i64: 512, 128>}, {pipeline_mode = #tpu.pipeline_mode<synchronous>, transform_indices = @transform_1, window_bounds = array<i64: 128, 128>}, {pipeline_mode = #tpu.pipeline_mode<synchronous>, transform_indices = @transform_2, window_bounds = array<i64: 1, 128>}, {transform_indices = @transform_3, window_bounds = array<i64: 512, 128>}, {transform_indices = @transform_4, window_bounds = array<i64: 512, 128>}]} {
    %c0 = arith.constant 0 : index
    %c0_0 = arith.constant 0 : index
    %0 = vector.load %arg1[%c0, %c0_0] : memref<512x128xbf16, #tpu.memory_space<vmem>>, vector<512x128xbf16>
    %c0_1 = arith.constant 0 : index
    %c0_2 = arith.constant 0 : index
    %1 = vector.load %arg2[%c0_1, %c0_2] : memref<128x128xbf16, #tpu.memory_space<vmem>>, vector<128x128xbf16>
    %cst = arith.constant dense<0.000000e+00> : vector<512x128xf32>
    %2 = tpu.matmul %0, %1, %cst {dimension_numbers = #tpu.dot_dimension_numbers<[1], [0], [0], [1], [0, 0, 1, 1], [], []>} : vector<512x128xbf16>, vector<128x128xbf16>, vector<512x128xf32> -> vector<512x128xf32>
    %c0_3 = arith.constant 0 : index
    %c0_4 = arith.constant 0 : index
    %3 = vector.load %arg3[%c0_3, %c0_4] : memref<1x128xf32, #tpu.memory_space<vmem>>, vector<1x128xf32>
    %4 = vector.broadcast %3 : vector<1x128xf32> to vector<512x128xf32>
    %5 = arith.addf %2, %4 : vector<512x128xf32>
    %c0_5 = arith.constant 0 : index
    %c0_6 = arith.constant 0 : index
    %6 = vector.load %arg4[%c0_5, %c0_6] : memref<512x128xbf16, #tpu.memory_space<vmem>>, vector<512x128xbf16>
    %7 = arith.extf %6 : vector<512x128xbf16> to vector<512x128xf32>
    %8 = arith.addf %5, %7 : vector<512x128xf32>
    %cst_7 = arith.constant 0.000000e+00 : f32
    %9 = vector.broadcast %cst_7 : f32 to vector<512x128xf32>
    %10 = arith.maximumf %8, %9 : vector<512x128xf32>
    %c0_8 = arith.constant 0 : index
    %c0_9 = arith.constant 0 : index
    %11 = vector.load %arg5[%c0_8, %c0_9] : memref<512x128xf32, #tpu.memory_space<vmem>>, vector<512x128xf32>
    tpu.vector_store %arg5[%c0_8, %c0_9], %10 {strides = array<i32>} : memref<512x128xf32, #tpu.memory_space<vmem>>, vector<512x128xf32>,
    return
  }
  func.func @transform_0(%arg0: i32) -> (i32, i32) {
    %c0_i32 = arith.constant 0 : i32
    %c0_i32_0 = arith.constant 0 : i32
    return %arg0, %c0_i32 : i32, i32
  }
  func.func @transform_1(%arg0: i32) -> (i32, i32) {
    %c0_i32 = arith.constant 0 : i32
    %c0_i32_0 = arith.constant 0 : i32
    %c0_i32_1 = arith.constant 0 : i32
    return %c0_i32, %c0_i32_0 : i32, i32
  }
  func.func @transform_2(%arg0: i32) -> (i32, i32) {
    %c0_i32 = arith.constant 0 : i32
    %c0_i32_0 = arith.constant 0 : i32
    %c0_i32_1 = arith.constant 0 : i32
    return %c0_i32, %c0_i32_0 : i32, i32
  }
  func.func @transform_3(%arg0: i32) -> (i32, i32) {
    %c0_i32 = arith.constant 0 : i32
    %c0_i32_0 = arith.constant 0 : i32
    return %arg0, %c0_i32 : i32, i32
  }
  func.func @transform_4(%arg0: i32) -> (i32, i32) {
    %c0_i32 = arith.constant 0 : i32
    %c0_i32_0 = arith.constant 0 : i32
    return %arg0, %c0_i32 : i32, i32
  }
}

</mosaic_0001>

<bundles_post_ra>
// kernel: bottleneck_forward.3
= control target key start
LH: loop header
LB: loop body
LE: loop exit
PB: predicated region body
PF: predicated region fallthrough
CT: control target
= control target key end

     0   :  { %s2222_s1 = inlined_call_operand.vmem [shape: bf16[128,256], index: 1, kind: input, shape index: {}]   ;;  %s2223_s0 = inlined_call_operand.vmem [shape: bf16[512,128], index: 0, kind: input, shape index: {}]   ;;  %s2224_s2 = inlined_call_operand.vmem [shape: f32[1,256], index: 2, kind: input, shape index: {}]   ;;  %s2225_s4 = inlined_call_operand.vmem [shape: bf16[512,128], index: 4, kind: output, shape index: {1}]   ;;  %s2226_s3 = inlined_call_operand.vmem [shape: bf16[512,128], index: 3, kind: output, shape index: {0}]  }
   0x1   :  { %v1226_v0 = vld [vmem:[%s2222_s1 + $0x70] sm:$0xf]  ;;  %v1279_v1 = vld [vmem:[%s2222_s1 + $0x74] sm:$0xf0]  ;;  %v1278_v2 = vld [vmem:[%s2222_s1 + $0x74] sm:$0xf] }
   0x2   :  { %v1227_v3 = vor.u32 %v1279_v1, %v1226_v0  ;;  %v1228_v4 = vld [vmem:[%s2222_s1 + $0x78] sm:$0xf0]  ;;  %v1218_v5 = vld [vmem:[%s2222_s1 + $0x60] sm:$0xf]  ;;  %v1277_v6 = vld [vmem:[%s2222_s1 + $0x64] sm:$0xf0] }
   0x3   :  { %v1231_v7 = vor.u32 %v1278_v2, %v1228_v4  ;;  %v1276_v8 = vld [vmem:[%s2222_s1 + $0x64] sm:$0xf]  ;;  %v1220_v9 = vld [vmem:[%s2222_s1 + $0x68] sm:$0xf0]  ;;  %v1219_v10 = vor.u32 %v1277_v6, %v1218_v5  ;;  %v1210_v12 = vld [vmem:[%s2222_s1 + $0x50] sm:$0xf] }
   0x4   :  { %374 = vmatpush.bf16.msra.mxu0 %v1227_v3  ;;  %1662 = vmatpush.bf16.msra.mxu2 %v1227_v3  ;;  %v1223_v11 = vor.u32 %v1276_v8, %v1220_v9  ;;  %v1275_v13 = vld [vmem:[%s2222_s1 + $0x54] sm:$0xf0]  ;;  %v1274_v14 = vld [vmem:[%s2222_s1 + $0x54] sm:$0xf]  ;;  %v1212_v15 = vld [vmem:[%s2222_s1 + $0x58] sm:$0xf0] }
   0x5   :  { %543 = vmatpush.bf16.msra.mxu1 %v1231_v7  ;;  %1670 = vmatpush.bf16.msra.mxu3 %v1231_v7  ;;  %v1211_v16 = vor.u32 %v1275_v13, %v1210_v12  ;;  %v1215_v17 = vor.u32 %v1274_v14, %v1212_v15  ;;  %v1202_v18 = vld [vmem:[%s2222_s1 + $0x40] sm:$0xf]  ;;  %v1273_v19 = vld [vmem:[%s2222_s1 + $0x44] sm:$0xf0]  ;;  %v1272_v20 = vld [vmem:[%s2222_s1 + $0x44] sm:$0xf] }
   0x6   :  { %v1204_v21 = vld [vmem:[%s2222_s1 + $0x48] sm:$0xf0]  ;;  %v1203_v22 = vor.u32 %v1273_v19, %v1202_v18  ;;  %v1194_v24 = vld [vmem:[%s2222_s1 + $0x30] sm:$0xf]  ;;  %v1271_v25 = vld [vmem:[%s2222_s1 + $0x34] sm:$0xf0] }
   0x7   :  { %v1207_v23 = vor.u32 %v1272_v20, %v1204_v21  ;;  %v1270_v26 = vld [vmem:[%s2222_s1 + $0x34] sm:$0xf]  ;;  %v1196_v27 = vld [vmem:[%s2222_s1 + $0x38] sm:$0xf0]  ;;  %v1195_v28 = vor.u32 %v1271_v25, %v1194_v24  ;;  %v1186_v30 = vld [vmem:[%s2222_s1 + $0x20] sm:$0xf] }
   0x8   :  { %375 = vmatpush.bf16.msra.mxu0 %v1219_v10  ;;  %1663 = vmatpush.bf16.msra.mxu2 %v1219_v10  ;;  %v1199_v29 = vor.u32 %v1270_v26, %v1196_v27  ;;  %v1269_v31 = vld [vmem:[%s2222_s1 + $0x24] sm:$0xf0]  ;;  %v1268_v32 = vld [vmem:[%s2222_s1 + $0x24] sm:$0xf]  ;;  %v1188_v33 = vld [vmem:[%s2222_s1 + $0x28] sm:$0xf0] }
   0x9   :  { %544 = vmatpush.bf16.msra.mxu1 %v1223_v11  ;;  %1671 = vmatpush.bf16.msra.mxu3 %v1223_v11  ;;  %v1187_v34 = vor.u32 %v1269_v31, %v1186_v30  ;;  %v1191_v35 = vor.u32 %v1268_v32, %v1188_v33  ;;  %v1178_v36 = vld [vmem:[%s2222_s1 + $0x10] sm:$0xf]  ;;  %v1267_v37 = vld [vmem:[%s2222_s1 + $0x14] sm:$0xf0]  ;;  %v1266_v38 = vld [vmem:[%s2222_s1 + $0x14] sm:$0xf] }
   0xa   :  { %v1180_v39 = vld [vmem:[%s2222_s1 + $0x18] sm:$0xf0]  ;;  %v1179_v40 = vor.u32 %v1267_v37, %v1178_v36  ;;  %v1170_v42 = vld [vmem:[%s2222_s1] sm:$0xf]  ;;  %v1265_v43 = vld [vmem:[%s2222_s1 + $0x4] sm:$0xf0] }
   0xb   :  { %v1183_v41 = vor.u32 %v1266_v38, %v1180_v39  ;;  %v1264_v44 = vld [vmem:[%s2222_s1 + $0x4] sm:$0xf]  ;;  %v1172_v45 = vld [vmem:[%s2222_s1 + $0x8] sm:$0xf0]  ;;  %v1171_v46 = vor.u32 %v1265_v43, %v1170_v42  ;;  %v1234_v52 = vld [vmem:[%s2223_s0 + $0x10] sm:$0xff] }
   0xc   :  { %376 = vmatpush.bf16.msra.mxu0 %v1211_v16  ;;  %1664 = vmatpush.bf16.msra.mxu2 %v1211_v16  ;;  %v1175_v47 = vor.u32 %v1264_v44, %v1172_v45  ;;  %v1232_v48 = vld [vmem:[%s2223_s0] sm:$0xff]  ;;  %v1233_v50 = vld [vmem:[%s2223_s0 + $0x8] sm:$0xff]  ;;  %v1250_v53 = vld [vmem:[%s2223_s0 + $0x90] sm:$0xff] }
   0xd   :  { %545 = vmatpush.bf16.msra.mxu1 %v1215_v17  ;;  %1672 = vmatpush.bf16.msra.mxu3 %v1215_v17  ;;  %v1248_v49 = vld [vmem:[%s2223_s0 + $0x80] sm:$0xff]  ;;  %v1249_v51 = vld [vmem:[%s2223_s0 + $0x88] sm:$0xff]  ;;  %v1235_v54 = vld [vmem:[%s2223_s0 + $0x18] sm:$0xff] }
   0xe   :  { %v1251_v55 = vld [vmem:[%s2223_s0 + $0x98] sm:$0xff]  ;;  %v1236_v56 = vld [vmem:[%s2223_s0 + $0x20] sm:$0xff]  ;;  %v1237_v58 = vld [vmem:[%s2223_s0 + $0x28] sm:$0xff] }
   0xf   :  { %v1252_v57 = vld [vmem:[%s2223_s0 + $0xa0] sm:$0xff]  ;;  %v1253_v59 = vld [vmem:[%s2223_s0 + $0xa8] sm:$0xff]  ;;  %v1238_v60 = vld [vmem:[%s2223_s0 + $0x30] sm:$0xff] }
  0x10   :  { %377 = vmatpush.bf16.msra.mxu0 %v1203_v22  ;;  %1665 = vmatpush.bf16.msra.mxu2 %v1203_v22  ;;  %v1254_v61 = vld [vmem:[%s2223_s0 + $0xb0] sm:$0xff]  ;;  %v1239_v62 = vld [vmem:[%s2223_s0 + $0x38] sm:$0xff]  ;;  %v1240_v0 = vld [vmem:[%s2223_s0 + $0x40] sm:$0xff] }
  0x11   :  { %546 = vmatpush.bf16.msra.mxu1 %v1207_v23  ;;  %1673 = vmatpush.bf16.msra.mxu3 %v1207_v23  ;;  %v1255_v63 = vld [vmem:[%s2223_s0 + $0xb8] sm:$0xff]  ;;  %v1256_v1 = vld [vmem:[%s2223_s0 + $0xc0] sm:$0xff]  ;;  %v1241_v23 = vld [vmem:[%s2223_s0 + $0x48] sm:$0xff] }
  0x12   :  { %v96_v2 = vld [vmem:[%s2224_s2] sm:$0x3]  ;;  %v1257_v24 = vld [vmem:[%s2223_s0 + $0xc8] sm:$0xff] }
  0x13   :  { %v1856_v5 = vperm.slane %v96_v2, 0  ;;  %v1858_v6 = vperm.slane %v96_v2, 1 }
  0x14   :  { %378 = vmatpush.bf16.msra.mxu0 %v1195_v28  ;;  %1666 = vmatpush.bf16.msra.mxu2 %v1195_v28 }
  0x15   :  { %547 = vmatpush.bf16.msra.mxu1 %v1199_v29  ;;  %1674 = vmatpush.bf16.msra.mxu3 %v1199_v29 }
  0x18   :  { %379 = vmatpush.bf16.msra.mxu0 %v1187_v34  ;;  %1667 = vmatpush.bf16.msra.mxu2 %v1187_v34 }
  0x19   :  { %548 = vmatpush.bf16.msra.mxu1 %v1191_v35  ;;  %1675 = vmatpush.bf16.msra.mxu3 %v1191_v35 }
  0x1c   :  { %380 = vmatpush.bf16.msra.mxu0 %v1179_v40  ;;  %1668 = vmatpush.bf16.msra.mxu2 %v1179_v40 }
  0x1d   :  { %549 = vmatpush.bf16.msra.mxu1 %v1183_v41  ;;  %1676 = vmatpush.bf16.msra.mxu3 %v1183_v41 }
  0x20   :  { %381 = vmatpush.bf16.msra.mxu0 %v1171_v46  ;;  %1669 = vmatpush.bf16.msra.mxu2 %v1171_v46 }
  0x21   :  { %550 = vmatpush.bf16.msra.mxu1 %v1175_v47  ;;  %1677 = vmatpush.bf16.msra.mxu3 %v1175_v47 }
  0x23   :  { %382 = vmatmul.bf16.vlgmr.msra.gmra.mxu0 %v1232_v48  ;;  %462 = vmatmul.bf16.vlgmr.msra.gmra.mxu2 %v1248_v49 }
  0x24   :  { %551 = vmatmul.bf16.vlgmr.msra.gmra.mxu1 %v1232_v48  ;;  %631 = vmatmul.bf16.vlgmr.msra.gmra.mxu3 %v1248_v49  ;;  %v1242_v49 = vld [vmem:[%s2223_s0 + $0x50] sm:$0xff] }
  0x33   :  { %387 = vmatmul.bf16.gmra.mxu0 %v1233_v50  ;;  %467 = vmatmul.bf16.gmra.mxu2 %v1249_v51 }
  0x34   :  { %556 = vmatmul.bf16.gmra.mxu1 %v1233_v50  ;;  %636 = vmatmul.bf16.gmra.mxu3 %v1249_v51  ;;  %v1258_v50 = vld [vmem:[%s2223_s0 + $0xd0] sm:$0xff] }
  0x43   :  { %392 = vmatmul.bf16.gmra.mxu0 %v1234_v52  ;;  %472 = vmatmul.bf16.gmra.mxu2 %v1250_v53 }
  0x44   :  { %561 = vmatmul.bf16.gmra.mxu1 %v1234_v52  ;;  %641 = vmatmul.bf16.gmra.mxu3 %v1250_v53 }
  0x53   :  { %397 = vmatmul.bf16.gmra.mxu0 %v1235_v54  ;;  %477 = vmatmul.bf16.gmra.mxu2 %v1251_v55 }
  0x54   :  { %566 = vmatmul.bf16.gmra.mxu1 %v1235_v54  ;;  %646 = vmatmul.bf16.gmra.mxu3 %v1251_v55 }
  0x63   :  { %402 = vmatmul.bf16.gmra.mxu0 %v1236_v56  ;;  %482 = vmatmul.bf16.gmra.mxu2 %v1252_v57 }
  0x64   :  { %571 = vmatmul.bf16.gmra.mxu1 %v1236_v56  ;;  %651 = vmatmul.bf16.gmra.mxu3 %v1252_v57 }
  0x73   :  { %407 = vmatmul.bf16.gmra.mxu0 %v1237_v58  ;;  %487 = vmatmul.bf16.gmra.mxu2 %v1253_v59 }
  0x74   :  { %576 = vmatmul.bf16.gmra.mxu1 %v1237_v58  ;;  %656 = vmatmul.bf16.gmra.mxu3 %v1253_v59 }
  0x83   :  { %412 = vmatmul.bf16.gmra.mxu0 %v1238_v60  ;;  %492 = vmatmul.bf16.gmra.mxu2 %v1254_v61 }
  0x84   :  { %581 = vmatmul.bf16.gmra.mxu1 %v1238_v60  ;;  %661 = vmatmul.bf16.gmra.mxu3 %v1254_v61 }
  0x93   :  { %417 = vmatmul.bf16.gmra.mxu0 %v1239_v62  ;;  %497 = vmatmul.bf16.gmra.mxu2 %v1255_v63 }
  0x94   :  { %586 = vmatmul.bf16.gmra.mxu1 %v1239_v62  ;;  %666 = vmatmul.bf16.gmra.mxu3 %v1255_v63 }
  0xa0   :  { %v383_v3 = vpop.f32.mrf.mxu0 }
  0xa1   :  { %v552_v4 = vpop.f32.mrf.mxu1  ;;  %v384_v8 = vadd.f32 %v383_v3, %v1856_v5 }
  0xa2   :  { %v553_v10 = vadd.f32 %v552_v4, %v1858_v6 }
  0xa3   :  { %422 = vmatmul.bf16.gmra.mxu0 %v1240_v0  ;;  %502 = vmatmul.bf16.gmra.mxu2 %v1256_v1  ;;  %v712_v15 = vmax.f32 %v384_v8, 0.0 }
  0xa4   :  { %591 = vmatmul.bf16.gmra.mxu1 %v1240_v0  ;;  %671 = vmatmul.bf16.gmra.mxu3 %v1256_v1 }
  0xa6   :  { %v463_v7 = vpop.f32.mrf.mxu2 }
  0xa7   :  { %v632_v9 = vpop.f32.mrf.mxu3  ;;  %v464_v18 = vadd.f32 %v463_v7, %v1856_v5 }
  0xa8   :  { %v385_v11 = vpop.f32.mrf.mxu0  ;;  %v633_v25 = vadd.f32 %v632_v9, %v1858_v6 }
  0xa9   :  { %v386_v12 = vadd.f32 %v385_v11, %v1856_v5  ;;  %v554_v13 = vpop.f32.mrf.mxu1  ;;  %v744_v28 = vmax.f32 %v464_v18, 0.0 }
  0xaa   :  { %v555_v14 = vadd.f32 %v554_v13, %v1858_v6  ;;  %v1243_v13 = vld [vmem:[%s2223_s0 + $0x58] sm:$0xff] }
  0xab   :  { %v713_v16 = vmax.f32 %v386_v12, 0.0 }
  0xac   :  { %v1443_v17 = vpack.c.bf16 %v555_v14, %v553_v10  ;;  %v1259_v14 = vld [vmem:[%s2223_s0 + $0xd8] sm:$0xff] }
  0xad   :  { %v1283_v19 = vpack.c.bf16 %v713_v16, %v712_v15 }
  0xae   :  { %1444 = vst [vmem:[%s2225_s4] sm:$0xff] %v1443_v17   ;;  %v465_v20 = vpop.f32.mrf.mxu2 }
  0xaf   :  { %1284 = vst [vmem:[%s2226_s3] sm:$0xff] %v1283_v19   ;;  %v466_v21 = vadd.f32 %v465_v20, %v1856_v5  ;;  %v634_v22 = vpop.f32.mrf.mxu3 }
  0xb0   :  { %v635_v26 = vadd.f32 %v634_v22, %v1858_v6  ;;  %v388_v27 = vpop.f32.mrf.mxu0 }
  0xb1   :  { %v745_v29 = vmax.f32 %v466_v21, 0.0  ;;  %v557_v30 = vpop.f32.mrf.mxu1  ;;  %v389_v34 = vadd.f32 %v388_v27, %v1856_v5 }
  0xb2   :  { %v1523_v31 = vpack.c.bf16 %v635_v26, %v633_v25  ;;  %v558_v36 = vadd.f32 %v557_v30, %v1858_v6 }
  0xb3   :  { %v1363_v32 = vpack.c.bf16 %v745_v29, %v744_v28  ;;  %427 = vmatmul.bf16.gmra.mxu0 %v1241_v23  ;;  %507 = vmatmul.bf16.gmra.mxu2 %v1257_v24  ;;  %v714_v41 = vmax.f32 %v389_v34, 0.0 }
  0xb4   :  { %1646 = vst [vmem:[%s2225_s4 + $0x80] sm:$0xff] %v1523_v31   ;;  %596 = vmatmul.bf16.gmra.mxu1 %v1241_v23  ;;  %676 = vmatmul.bf16.gmra.mxu3 %v1257_v24 }
  0xb5   :  { %1615 = vst [vmem:[%s2226_s3 + $0x80] sm:$0xff] %v1363_v32  }
  0xb6   :  { %v468_v33 = vpop.f32.mrf.mxu2 }
  0xb7   :  { %v637_v35 = vpop.f32.mrf.mxu3  ;;  %v469_v44 = vadd.f32 %v468_v33, %v1856_v5 }
  0xb8   :  { %v390_v37 = vpop.f32.mrf.mxu0  ;;  %v638_v51 = vadd.f32 %v637_v35, %v1858_v6 }
  0xb9   :  { %v391_v38 = vadd.f32 %v390_v37, %v1856_v5  ;;  %v559_v39 = vpop.f32.mrf.mxu1  ;;  %v746_v54 = vmax.f32 %v469_v44, 0.0 }
  0xba   :  { %v560_v40 = vadd.f32 %v559_v39, %v1858_v6  ;;  %v1244_v39 = vld [vmem:[%s2223_s0 + $0x60] sm:$0xff] }
  0xbb   :  { %v715_v42 = vmax.f32 %v391_v38, 0.0 }
  0xbc   :  { %v1448_v43 = vpack.c.bf16 %v560_v40, %v558_v36  ;;  %v1260_v40 = vld [vmem:[%s2223_s0 + $0xe0] sm:$0xff] }
  0xbd   :  { %v1288_v45 = vpack.c.bf16 %v715_v42, %v714_v41 }
  0xbe   :  { %1631 = vst [vmem:[%s2225_s4 + $0x8] sm:$0xff] %v1448_v43   ;;  %v470_v46 = vpop.f32.mrf.mxu2 }
  0xbf   :  { %1600 = vst [vmem:[%s2226_s3 + $0x8] sm:$0xff] %v1288_v45   ;;  %v471_v47 = vadd.f32 %v470_v46, %v1856_v5  ;;  %v639_v48 = vpop.f32.mrf.mxu3 }
  0xc0   :  { %v640_v52 = vadd.f32 %v639_v48, %v1858_v6  ;;  %v393_v53 = vpop.f32.mrf.mxu0 }
  0xc1   :  { %v747_v55 = vmax.f32 %v471_v47, 0.0  ;;  %v562_v56 = vpop.f32.mrf.mxu1  ;;  %v394_v60 = vadd.f32 %v393_v53, %v1856_v5 }
  0xc2   :  { %v1528_v57 = vpack.c.bf16 %v640_v52, %v638_v51  ;;  %v563_v62 = vadd.f32 %v562_v56, %v1858_v6 }
  0xc3   :  { %v1368_v58 = vpack.c.bf16 %v747_v55, %v746_v54  ;;  %432 = vmatmul.bf16.gmra.mxu0 %v1242_v49  ;;  %512 = vmatmul.bf16.gmra.mxu2 %v1258_v50  ;;  %v716_v3 = vmax.f32 %v394_v60, 0.0 }
  0xc4   :  { %1647 = vst [vmem:[%s2225_s4 + $0x88] sm:$0xff] %v1528_v57   ;;  %601 = vmatmul.bf16.gmra.mxu1 %v1242_v49  ;;  %681 = vmatmul.bf16.gmra.mxu3 %v1258_v50 }
  0xc5   :  { %1616 = vst [vmem:[%s2226_s3 + $0x88] sm:$0xff] %v1368_v58  }
  0xc6   :  { %v473_v59 = vpop.f32.mrf.mxu2 }
  0xc7   :  { %v642_v61 = vpop.f32.mrf.mxu3  ;;  %v474_v8 = vadd.f32 %v473_v59, %v1856_v5 }
  0xc8   :  { %v395_v63 = vpop.f32.mrf.mxu0  ;;  %v643_v15 = vadd.f32 %v642_v61, %v1858_v6 }
  0xc9   :  { %v396_v0 = vadd.f32 %v395_v63, %v1856_v5  ;;  %v564_v1 = vpop.f32.mrf.mxu1  ;;  %v748_v18 = vmax.f32 %v474_v8, 0.0 }
  0xca   :  { %v565_v2 = vadd.f32 %v564_v1, %v1858_v6  ;;  %v1245_v1 = vld [vmem:[%s2223_s0 + $0x68] sm:$0xff] }
  0xcb   :  { %v717_v4 = vmax.f32 %v396_v0, 0.0 }
  0xcc   :  { %v1453_v7 = vpack.c.bf16 %v565_v2, %v563_v62  ;;  %v1261_v2 = vld [vmem:[%s2223_s0 + $0xe8] sm:$0xff] }
  0xcd   :  { %v1293_v9 = vpack.c.bf16 %v717_v4, %v716_v3 }
  0xce   :  { %1632 = vst [vmem:[%s2225_s4 + $0x10] sm:$0xff] %v1453_v7   ;;  %v475_v10 = vpop.f32.mrf.mxu2 }
  0xcf   :  { %1601 = vst [vmem:[%s2226_s3 + $0x10] sm:$0xff] %v1293_v9   ;;  %v476_v11 = vadd.f32 %v475_v10, %v1856_v5  ;;  %v644_v12 = vpop.f32.mrf.mxu3 }
  0xd0   :  { %v645_v16 = vadd.f32 %v644_v12, %v1858_v6  ;;  %v398_v17 = vpop.f32.mrf.mxu0 }
  0xd1   :  { %v749_v19 = vmax.f32 %v476_v11, 0.0  ;;  %v567_v20 = vpop.f32.mrf.mxu1  ;;  %v399_v24 = vadd.f32 %v398_v17, %v1856_v5 }
  0xd2   :  { %v1533_v21 = vpack.c.bf16 %v645_v16, %v643_v15  ;;  %v568_v26 = vadd.f32 %v567_v20, %v1858_v6 }
  0xd3   :  { %v1373_v22 = vpack.c.bf16 %v749_v19, %v748_v18  ;;  %437 = vmatmul.bf16.gmra.mxu0 %v1243_v13  ;;  %517 = vmatmul.bf16.gmra.mxu2 %v1259_v14  ;;  %v718_v31 = vmax.f32 %v399_v24, 0.0 }
  0xd4   :  { %1648 = vst [vmem:[%s2225_s4 + $0x90] sm:$0xff] %v1533_v21   ;;  %606 = vmatmul.bf16.gmra.mxu1 %v1243_v13  ;;  %686 = vmatmul.bf16.gmra.mxu3 %v1259_v14 }
  0xd5   :  { %1617 = vst [vmem:[%s2226_s3 + $0x90] sm:$0xff] %v1373_v22  }
  0xd6   :  { %v478_v23 = vpop.f32.mrf.mxu2 }
  0xd7   :  { %v647_v25 = vpop.f32.mrf.mxu3  ;;  %v479_v34 = vadd.f32 %v478_v23, %v1856_v5 }
  0xd8   :  { %v400_v27 = vpop.f32.mrf.mxu0  ;;  %v648_v41 = vadd.f32 %v647_v25, %v1858_v6 }
  0xd9   :  { %v401_v28 = vadd.f32 %v400_v27, %v1856_v5  ;;  %v569_v29 = vpop.f32.mrf.mxu1  ;;  %v750_v44 = vmax.f32 %v479_v34, 0.0 }
  0xda   :  { %v570_v30 = vadd.f32 %v569_v29, %v1858_v6  ;;  %v1246_v29 = vld [vmem:[%s2223_s0 + $0x70] sm:$0xff] }
  0xdb   :  { %v719_v32 = vmax.f32 %v401_v28, 0.0 }
  0xdc   :  { %v1458_v33 = vpack.c.bf16 %v570_v30, %v568_v26  ;;  %v1262_v30 = vld [vmem:[%s2223_s0 + $0xf0] sm:$0xff] }
  0xdd   :  { %v1298_v35 = vpack.c.bf16 %v719_v32, %v718_v31 }
  0xde   :  { %1633 = vst [vmem:[%s2225_s4 + $0x18] sm:$0xff] %v1458_v33   ;;  %v480_v36 = vpop.f32.mrf.mxu2 }
  0xdf   :  { %1602 = vst [vmem:[%s2226_s3 + $0x18] sm:$0xff] %v1298_v35   ;;  %v481_v37 = vadd.f32 %v480_v36, %v1856_v5  ;;  %v649_v38 = vpop.f32.mrf.mxu3 }
  0xe0   :  { %v650_v42 = vadd.f32 %v649_v38, %v1858_v6  ;;  %v403_v43 = vpop.f32.mrf.mxu0 }
  0xe1   :  { %v751_v45 = vmax.f32 %v481_v37, 0.0  ;;  %v572_v46 = vpop.f32.mrf.mxu1  ;;  %v404_v50 = vadd.f32 %v403_v43, %v1856_v5 }
  0xe2   :  { %v1538_v47 = vpack.c.bf16 %v650_v42, %v648_v41  ;;  %v573_v52 = vadd.f32 %v572_v46, %v1858_v6 }
  0xe3   :  { %v1378_v48 = vpack.c.bf16 %v751_v45, %v750_v44  ;;  %442 = vmatmul.bf16.gmra.mxu0 %v1244_v39  ;;  %522 = vmatmul.bf16.gmra.mxu2 %v1260_v40  ;;  %v720_v57 = vmax.f32 %v404_v50, 0.0 }
  0xe4   :  { %1649 = vst [vmem:[%s2225_s4 + $0x98] sm:$0xff] %v1538_v47   ;;  %611 = vmatmul.bf16.gmra.mxu1 %v1244_v39  ;;  %691 = vmatmul.bf16.gmra.mxu3 %v1260_v40 }
  0xe5   :  { %1618 = vst [vmem:[%s2226_s3 + $0x98] sm:$0xff] %v1378_v48  }
  0xe6   :  { %v483_v49 = vpop.f32.mrf.mxu2 }
  0xe7   :  { %v652_v51 = vpop.f32.mrf.mxu3  ;;  %v484_v60 = vadd.f32 %v483_v49, %v1856_v5 }
  0xe8   :  { %v405_v53 = vpop.f32.mrf.mxu0  ;;  %v653_v3 = vadd.f32 %v652_v51, %v1858_v6 }
  0xe9   :  { %v406_v54 = vadd.f32 %v405_v53, %v1856_v5  ;;  %v574_v55 = vpop.f32.mrf.mxu1  ;;  %v752_v8 = vmax.f32 %v484_v60, 0.0 }
  0xea   :  { %v575_v56 = vadd.f32 %v574_v55, %v1858_v6  ;;  %v1247_v55 = vld [vmem:[%s2223_s0 + $0x78] sm:$0xff] }
  0xeb   :  { %v721_v58 = vmax.f32 %v406_v54, 0.0 }
  0xec   :  { %v1463_v59 = vpack.c.bf16 %v575_v56, %v573_v52  ;;  %v1263_v56 = vld [vmem:[%s2223_s0 + $0xf8] sm:$0xff] }
  0xed   :  { %v1303_v61 = vpack.c.bf16 %v721_v58, %v720_v57 }
  0xee   :  { %1634 = vst [vmem:[%s2225_s4 + $0x20] sm:$0xff] %v1463_v59   ;;  %v485_v62 = vpop.f32.mrf.mxu2 }
  0xef   :  { %1603 = vst [vmem:[%s2226_s3 + $0x20] sm:$0xff] %v1303_v61   ;;  %v486_v63 = vadd.f32 %v485_v62, %v1856_v5  ;;  %v654_v0 = vpop.f32.mrf.mxu3 }
  0xf0   :  { %v655_v4 = vadd.f32 %v654_v0, %v1858_v6  ;;  %v408_v7 = vpop.f32.mrf.mxu0 }
  0xf1   :  { %v753_v9 = vmax.f32 %v486_v63, 0.0  ;;  %v577_v10 = vpop.f32.mrf.mxu1  ;;  %v409_v14 = vadd.f32 %v408_v7, %v1856_v5 }
  0xf2   :  { %v1543_v11 = vpack.c.bf16 %v655_v4, %v653_v3  ;;  %v578_v16 = vadd.f32 %v577_v10, %v1858_v6 }
  0xf3   :  { %v1383_v12 = vpack.c.bf16 %v753_v9, %v752_v8  ;;  %447 = vmatmul.bf16.gmra.mxu0 %v1245_v1  ;;  %527 = vmatmul.bf16.gmra.mxu2 %v1261_v2  ;;  %v722_v21 = vmax.f32 %v409_v14, 0.0 }
  0xf4   :  { %1650 = vst [vmem:[%s2225_s4 + $0xa0] sm:$0xff] %v1543_v11   ;;  %616 = vmatmul.bf16.gmra.mxu1 %v1245_v1  ;;  %696 = vmatmul.bf16.gmra.mxu3 %v1261_v2 }
  0xf5   :  { %1619 = vst [vmem:[%s2226_s3 + $0xa0] sm:$0xff] %v1383_v12  }
  0xf6   :  { %v488_v13 = vpop.f32.mrf.mxu2 }
  0xf7   :  { %v657_v15 = vpop.f32.mrf.mxu3  ;;  %v489_v24 = vadd.f32 %v488_v13, %v1856_v5 }
  0xf8   :  { %v410_v17 = vpop.f32.mrf.mxu0  ;;  %v658_v31 = vadd.f32 %v657_v15, %v1858_v6 }
  0xf9   :  { %v411_v18 = vadd.f32 %v410_v17, %v1856_v5  ;;  %v579_v19 = vpop.f32.mrf.mxu1  ;;  %v754_v34 = vmax.f32 %v489_v24, 0.0 }
  0xfa   :  { %v580_v20 = vadd.f32 %v579_v19, %v1858_v6 }
  0xfb   :  { %v723_v22 = vmax.f32 %v411_v18, 0.0 }
  0xfc   :  { %v1468_v23 = vpack.c.bf16 %v580_v20, %v578_v16 }
  0xfd   :  { %v1308_v25 = vpack.c.bf16 %v723_v22, %v722_v21 }
  0xfe   :  { %1635 = vst [vmem:[%s2225_s4 + $0x28] sm:$0xff] %v1468_v23   ;;  %v490_v26 = vpop.f32.mrf.mxu2 }
  0xff   :  { %1604 = vst [vmem:[%s2226_s3 + $0x28] sm:$0xff] %v1308_v25   ;;  %v491_v27 = vadd.f32 %v490_v26, %v1856_v5  ;;  %v659_v28 = vpop.f32.mrf.mxu3 }
 0x100   :  { %v660_v32 = vadd.f32 %v659_v28, %v1858_v6  ;;  %v413_v33 = vpop.f32.mrf.mxu0 }
 0x101   :  { %v755_v35 = vmax.f32 %v491_v27, 0.0  ;;  %v582_v36 = vpop.f32.mrf.mxu1  ;;  %v414_v40 = vadd.f32 %v413_v33, %v1856_v5 }
 0x102   :  { %v1548_v37 = vpack.c.bf16 %v660_v32, %v658_v31  ;;  %v583_v42 = vadd.f32 %v582_v36, %v1858_v6 }
 0x103   :  { %v1388_v38 = vpack.c.bf16 %v755_v35, %v754_v34  ;;  %452 = vmatmul.bf16.gmra.mxu0 %v1246_v29  ;;  %532 = vmatmul.bf16.gmra.mxu2 %v1262_v30  ;;  %v724_v47 = vmax.f32 %v414_v40, 0.0 }
 0x104   :  { %1651 = vst [vmem:[%s2225_s4 + $0xa8] sm:$0xff] %v1548_v37   ;;  %621 = vmatmul.bf16.gmra.mxu1 %v1246_v29  ;;  %701 = vmatmul.bf16.gmra.mxu3 %v1262_v30 }
 0x105   :  { %1620 = vst [vmem:[%s2226_s3 + $0xa8] sm:$0xff] %v1388_v38  }
 0x106   :  { %v493_v39 = vpop.f32.mrf.mxu2 }
 0x107   :  { %v662_v41 = vpop.f32.mrf.mxu3  ;;  %v494_v50 = vadd.f32 %v493_v39, %v1856_v5 }
 0x108   :  { %v415_v43 = vpop.f32.mrf.mxu0  ;;  %v663_v57 = vadd.f32 %v662_v41, %v1858_v6 }
 0x109   :  { %v416_v44 = vadd.f32 %v415_v43, %v1856_v5  ;;  %v584_v45 = vpop.f32.mrf.mxu1  ;;  %v756_v60 = vmax.f32 %v494_v50, 0.0 }
 0x10a   :  { %v585_v46 = vadd.f32 %v584_v45, %v1858_v6 }
 0x10b   :  { %v725_v48 = vmax.f32 %v416_v44, 0.0 }
 0x10c   :  { %v1473_v49 = vpack.c.bf16 %v585_v46, %v583_v42 }
 0x10d   :  { %v1313_v51 = vpack.c.bf16 %v725_v48, %v724_v47 }
 0x10e   :  { %1636 = vst [vmem:[%s2225_s4 + $0x30] sm:$0xff] %v1473_v49   ;;  %v495_v52 = vpop.f32.mrf.mxu2 }
 0x10f   :  { %1605 = vst [vmem:[%s2226_s3 + $0x30] sm:$0xff] %v1313_v51   ;;  %v496_v53 = vadd.f32 %v495_v52, %v1856_v5  ;;  %v664_v54 = vpop.f32.mrf.mxu3 }
 0x110   :  { %v665_v58 = vadd.f32 %v664_v54, %v1858_v6  ;;  %v418_v59 = vpop.f32.mrf.mxu0 }
 0x111   :  { %v757_v61 = vmax.f32 %v496_v53, 0.0  ;;  %v587_v62 = vpop.f32.mrf.mxu1  ;;  %v419_v2 = vadd.f32 %v418_v59, %v1856_v5 }
 0x112   :  { %v1553_v63 = vpack.c.bf16 %v665_v58, %v663_v57  ;;  %v588_v4 = vadd.f32 %v587_v62, %v1858_v6 }
 0x113   :  { %v1393_v0 = vpack.c.bf16 %v757_v61, %v756_v60  ;;  %457 = vmatmul.bf16.gmra.mxu0 %v1247_v55  ;;  %537 = vmatmul.bf16.gmra.mxu2 %v1263_v56  ;;  %v726_v11 = vmax.f32 %v419_v2, 0.0 }
 0x114   :  { %1652 = vst [vmem:[%s2225_s4 + $0xb0] sm:$0xff] %v1553_v63   ;;  %626 = vmatmul.bf16.gmra.mxu1 %v1247_v55  ;;  %706 = vmatmul.bf16.gmra.mxu3 %v1263_v56 }
 0x115   :  { %1621 = vst [vmem:[%s2226_s3 + $0xb0] sm:$0xff] %v1393_v0  }
 0x116   :  { %v498_v1 = vpop.f32.mrf.mxu2 }
 0x117   :  { %v667_v3 = vpop.f32.mrf.mxu3  ;;  %v499_v14 = vadd.f32 %v498_v1, %v1856_v5 }
 0x118   :  { %v420_v7 = vpop.f32.mrf.mxu0  ;;  %v668_v19 = vadd.f32 %v667_v3, %v1858_v6 }
 0x119   :  { %v421_v8 = vadd.f32 %v420_v7, %v1856_v5  ;;  %v589_v9 = vpop.f32.mrf.mxu1  ;;  %v758_v22 = vmax.f32 %v499_v14, 0.0 }
 0x11a   :  { %v590_v10 = vadd.f32 %v589_v9, %v1858_v6 }
 0x11b   :  { %v727_v12 = vmax.f32 %v421_v8, 0.0 }
 0x11c   :  { %v1478_v13 = vpack.c.bf16 %v590_v10, %v588_v4 }
 0x11d   :  { %v1318_v15 = vpack.c.bf16 %v727_v12, %v726_v11 }
 0x11e   :  { %1637 = vst [vmem:[%s2225_s4 + $0x38] sm:$0xff] %v1478_v13   ;;  %v500_v16 = vpop.f32.mrf.mxu2 }
 0x11f   :  { %1606 = vst [vmem:[%s2226_s3 + $0x38] sm:$0xff] %v1318_v15   ;;  %v501_v17 = vadd.f32 %v500_v16, %v1856_v5  ;;  %v669_v18 = vpop.f32.mrf.mxu3 }
 0x120   :  { %v670_v20 = vadd.f32 %v669_v18, %v1858_v6  ;;  %v423_v21 = vpop.f32.mrf.mxu0 }
 0x121   :  { %v759_v23 = vmax.f32 %v501_v17, 0.0  ;;  %v592_v24 = vpop.f32.mrf.mxu1  ;;  %v424_v28 = vadd.f32 %v423_v21, %v1856_v5 }
 0x122   :  { %v1558_v25 = vpack.c.bf16 %v670_v20, %v668_v19  ;;  %v593_v30 = vadd.f32 %v592_v24, %v1858_v6 }
 0x123   :  { %v1398_v26 = vpack.c.bf16 %v759_v23, %v758_v22  ;;  %v728_v35 = vmax.f32 %v424_v28, 0.0 }
 0x124   :  { %1653 = vst [vmem:[%s2225_s4 + $0xb8] sm:$0xff] %v1558_v25  }
 0x125   :  { %1622 = vst [vmem:[%s2226_s3 + $0xb8] sm:$0xff] %v1398_v26  }
 0x126   :  { %v503_v27 = vpop.f32.mrf.mxu2 }
 0x127   :  { %v672_v29 = vpop.f32.mrf.mxu3  ;;  %v504_v38 = vadd.f32 %v503_v27, %v1856_v5 }
 0x128   :  { %v425_v31 = vpop.f32.mrf.mxu0  ;;  %v673_v43 = vadd.f32 %v672_v29, %v1858_v6 }
 0x129   :  { %v426_v32 = vadd.f32 %v425_v31, %v1856_v5  ;;  %v594_v33 = vpop.f32.mrf.mxu1  ;;  %v760_v46 = vmax.f32 %v504_v38, 0.0 }
 0x12a   :  { %v595_v34 = vadd.f32 %v594_v33, %v1858_v6 }
 0x12b   :  { %v729_v36 = vmax.f32 %v426_v32, 0.0 }
 0x12c   :  { %v1483_v37 = vpack.c.bf16 %v595_v34, %v593_v30 }
 0x12d   :  { %v1323_v39 = vpack.c.bf16 %v729_v36, %v728_v35 }
 0x12e   :  { %1638 = vst [vmem:[%s2225_s4 + $0x40] sm:$0xff] %v1483_v37   ;;  %v505_v40 = vpop.f32.mrf.mxu2 }
 0x12f   :  { %1607 = vst [vmem:[%s2226_s3 + $0x40] sm:$0xff] %v1323_v39   ;;  %v506_v41 = vadd.f32 %v505_v40, %v1856_v5  ;;  %v674_v42 = vpop.f32.mrf.mxu3 }
 0x130   :  { %v675_v44 = vadd.f32 %v674_v42, %v1858_v6  ;;  %v428_v45 = vpop.f32.mrf.mxu0 }
 0x131   :  { %v761_v47 = vmax.f32 %v506_v41, 0.0  ;;  %v597_v48 = vpop.f32.mrf.mxu1  ;;  %v429_v52 = vadd.f32 %v428_v45, %v1856_v5 }
 0x132   :  { %v1563_v49 = vpack.c.bf16 %v675_v44, %v673_v43  ;;  %v598_v54 = vadd.f32 %v597_v48, %v1858_v6 }
 0x133   :  { %v1403_v50 = vpack.c.bf16 %v761_v47, %v760_v46  ;;  %v730_v59 = vmax.f32 %v429_v52, 0.0 }
 0x134   :  { %1654 = vst [vmem:[%s2225_s4 + $0xc0] sm:$0xff] %v1563_v49  }
 0x135   :  { %1623 = vst [vmem:[%s2226_s3 + $0xc0] sm:$0xff] %v1403_v50  }
 0x136   :  { %v508_v51 = vpop.f32.mrf.mxu2 }
 0x137   :  { %v677_v53 = vpop.f32.mrf.mxu3  ;;  %v509_v62 = vadd.f32 %v508_v51, %v1856_v5 }
 0x138   :  { %v430_v55 = vpop.f32.mrf.mxu0  ;;  %v678_v3 = vadd.f32 %v677_v53, %v1858_v6 }
 0x139   :  { %v431_v56 = vadd.f32 %v430_v55, %v1856_v5  ;;  %v599_v57 = vpop.f32.mrf.mxu1  ;;  %v762_v8 = vmax.f32 %v509_v62, 0.0 }
 0x13a   :  { %v600_v58 = vadd.f32 %v599_v57, %v1858_v6 }
 0x13b   :  { %v731_v60 = vmax.f32 %v431_v56, 0.0 }
 0x13c   :  { %v1488_v61 = vpack.c.bf16 %v600_v58, %v598_v54 }
 0x13d   :  { %v1328_v63 = vpack.c.bf16 %v731_v60, %v730_v59 }
 0x13e   :  { %1639 = vst [vmem:[%s2225_s4 + $0x48] sm:$0xff] %v1488_v61   ;;  %v510_v0 = vpop.f32.mrf.mxu2 }
 0x13f   :  { %1608 = vst [vmem:[%s2226_s3 + $0x48] sm:$0xff] %v1328_v63   ;;  %v511_v1 = vadd.f32 %v510_v0, %v1856_v5  ;;  %v679_v2 = vpop.f32.mrf.mxu3 }
 0x140   :  { %v680_v4 = vadd.f32 %v679_v2, %v1858_v6  ;;  %v433_v7 = vpop.f32.mrf.mxu0 }
 0x141   :  { %v763_v9 = vmax.f32 %v511_v1, 0.0  ;;  %v602_v10 = vpop.f32.mrf.mxu1  ;;  %v434_v14 = vadd.f32 %v433_v7, %v1856_v5 }
 0x142   :  { %v1568_v11 = vpack.c.bf16 %v680_v4, %v678_v3  ;;  %v603_v16 = vadd.f32 %v602_v10, %v1858_v6 }
 0x143   :  { %v1408_v12 = vpack.c.bf16 %v763_v9, %v762_v8  ;;  %v732_v21 = vmax.f32 %v434_v14, 0.0 }
 0x144   :  { %1655 = vst [vmem:[%s2225_s4 + $0xc8] sm:$0xff] %v1568_v11  }
 0x145   :  { %1624 = vst [vmem:[%s2226_s3 + $0xc8] sm:$0xff] %v1408_v12  }
 0x146   :  { %v513_v13 = vpop.f32.mrf.mxu2 }
 0x147   :  { %v682_v15 = vpop.f32.mrf.mxu3  ;;  %v514_v24 = vadd.f32 %v513_v13, %v1856_v5 }
 0x148   :  { %v435_v17 = vpop.f32.mrf.mxu0  ;;  %v683_v29 = vadd.f32 %v682_v15, %v1858_v6 }
 0x149   :  { %v436_v18 = vadd.f32 %v435_v17, %v1856_v5  ;;  %v604_v19 = vpop.f32.mrf.mxu1  ;;  %v764_v32 = vmax.f32 %v514_v24, 0.0 }
 0x14a   :  { %v605_v20 = vadd.f32 %v604_v19, %v1858_v6 }
 0x14b   :  { %v733_v22 = vmax.f32 %v436_v18, 0.0 }
 0x14c   :  { %v1493_v23 = vpack.c.bf16 %v605_v20, %v603_v16 }
 0x14d   :  { %v1333_v25 = vpack.c.bf16 %v733_v22, %v732_v21 }
 0x14e   :  { %1640 = vst [vmem:[%s2225_s4 + $0x50] sm:$0xff] %v1493_v23   ;;  %v515_v26 = vpop.f32.mrf.mxu2 }
 0x14f   :  { %1609 = vst [vmem:[%s2226_s3 + $0x50] sm:$0xff] %v1333_v25   ;;  %v516_v27 = vadd.f32 %v515_v26, %v1856_v5  ;;  %v684_v28 = vpop.f32.mrf.mxu3 }
 0x150   :  { %v685_v30 = vadd.f32 %v684_v28, %v1858_v6  ;;  %v438_v31 = vpop.f32.mrf.mxu0 }
 0x151   :  { %v765_v33 = vmax.f32 %v516_v27, 0.0  ;;  %v607_v34 = vpop.f32.mrf.mxu1  ;;  %v439_v38 = vadd.f32 %v438_v31, %v1856_v5 }
 0x152   :  { %v1573_v35 = vpack.c.bf16 %v685_v30, %v683_v29  ;;  %v608_v40 = vadd.f32 %v607_v34, %v1858_v6 }
 0x153   :  { %v1413_v36 = vpack.c.bf16 %v765_v33, %v764_v32  ;;  %v734_v45 = vmax.f32 %v439_v38, 0.0 }
 0x154   :  { %1656 = vst [vmem:[%s2225_s4 + $0xd0] sm:$0xff] %v1573_v35  }
 0x155   :  { %1625 = vst [vmem:[%s2226_s3 + $0xd0] sm:$0xff] %v1413_v36  }
 0x156   :  { %v518_v37 = vpop.f32.mrf.mxu2 }
 0x157   :  { %v687_v39 = vpop.f32.mrf.mxu3  ;;  %v519_v48 = vadd.f32 %v518_v37, %v1856_v5 }
 0x158   :  { %v440_v41 = vpop.f32.mrf.mxu0  ;;  %v688_v53 = vadd.f32 %v687_v39, %v1858_v6 }
 0x159   :  { %v441_v42 = vadd.f32 %v440_v41, %v1856_v5  ;;  %v609_v43 = vpop.f32.mrf.mxu1  ;;  %v766_v56 = vmax.f32 %v519_v48, 0.0 }
 0x15a   :  { %v610_v44 = vadd.f32 %v609_v43, %v1858_v6 }
 0x15b   :  { %v735_v46 = vmax.f32 %v441_v42, 0.0 }
 0x15c   :  { %v1498_v47 = vpack.c.bf16 %v610_v44, %v608_v40 }
 0x15d   :  { %v1338_v49 = vpack.c.bf16 %v735_v46, %v734_v45 }
 0x15e   :  { %1641 = vst [vmem:[%s2225_s4 + $0x58] sm:$0xff] %v1498_v47   ;;  %v520_v50 = vpop.f32.mrf.mxu2 }
 0x15f   :  { %1610 = vst [vmem:[%s2226_s3 + $0x58] sm:$0xff] %v1338_v49   ;;  %v521_v51 = vadd.f32 %v520_v50, %v1856_v5  ;;  %v689_v52 = vpop.f32.mrf.mxu3 }
 0x160   :  { %v690_v54 = vadd.f32 %v689_v52, %v1858_v6  ;;  %v443_v55 = vpop.f32.mrf.mxu0 }
 0x161   :  { %v767_v57 = vmax.f32 %v521_v51, 0.0  ;;  %v612_v58 = vpop.f32.mrf.mxu1  ;;  %v444_v62 = vadd.f32 %v443_v55, %v1856_v5 }
 0x162   :  { %v1578_v59 = vpack.c.bf16 %v690_v54, %v688_v53  ;;  %v613_v0 = vadd.f32 %v612_v58, %v1858_v6 }
 0x163   :  { %v1418_v60 = vpack.c.bf16 %v767_v57, %v766_v56  ;;  %v736_v7 = vmax.f32 %v444_v62, 0.0 }
 0x164   :  { %1657 = vst [vmem:[%s2225_s4 + $0xd8] sm:$0xff] %v1578_v59  }
 0x165   :  { %1626 = vst [vmem:[%s2226_s3 + $0xd8] sm:$0xff] %v1418_v60  }
 0x166   :  { %v523_v61 = vpop.f32.mrf.mxu2 }
 0x167   :  { %v692_v63 = vpop.f32.mrf.mxu3  ;;  %v524_v10 = vadd.f32 %v523_v61, %v1856_v5 }
 0x168   :  { %v445_v1 = vpop.f32.mrf.mxu0  ;;  %v693_v15 = vadd.f32 %v692_v63, %v1858_v6 }
 0x169   :  { %v446_v2 = vadd.f32 %v445_v1, %v1856_v5  ;;  %v614_v3 = vpop.f32.mrf.mxu1  ;;  %v768_v18 = vmax.f32 %v524_v10, 0.0 }
 0x16a   :  { %v615_v4 = vadd.f32 %v614_v3, %v1858_v6 }
 0x16b   :  { %v737_v8 = vmax.f32 %v446_v2, 0.0 }
 0x16c   :  { %v1503_v9 = vpack.c.bf16 %v615_v4, %v613_v0 }
 0x16d   :  { %v1343_v11 = vpack.c.bf16 %v737_v8, %v736_v7 }
 0x16e   :  { %1642 = vst [vmem:[%s2225_s4 + $0x60] sm:$0xff] %v1503_v9   ;;  %v525_v12 = vpop.f32.mrf.mxu2 }
 0x16f   :  { %1611 = vst [vmem:[%s2226_s3 + $0x60] sm:$0xff] %v1343_v11   ;;  %v526_v13 = vadd.f32 %v525_v12, %v1856_v5  ;;  %v694_v14 = vpop.f32.mrf.mxu3 }
 0x170   :  { %v695_v16 = vadd.f32 %v694_v14, %v1858_v6  ;;  %v448_v17 = vpop.f32.mrf.mxu0 }
 0x171   :  { %v769_v19 = vmax.f32 %v526_v13, 0.0  ;;  %v617_v20 = vpop.f32.mrf.mxu1  ;;  %v449_v24 = vadd.f32 %v448_v17, %v1856_v5 }
 0x172   :  { %v1583_v21 = vpack.c.bf16 %v695_v16, %v693_v15  ;;  %v618_v26 = vadd.f32 %v617_v20, %v1858_v6 }
 0x173   :  { %v1423_v22 = vpack.c.bf16 %v769_v19, %v768_v18  ;;  %v738_v31 = vmax.f32 %v449_v24, 0.0 }
 0x174   :  { %1658 = vst [vmem:[%s2225_s4 + $0xe0] sm:$0xff] %v1583_v21  }
 0x175   :  { %1627 = vst [vmem:[%s2226_s3 + $0xe0] sm:$0xff] %v1423_v22  }
 0x176   :  { %v528_v23 = vpop.f32.mrf.mxu2 }
 0x177   :  { %v697_v25 = vpop.f32.mrf.mxu3  ;;  %v529_v34 = vadd.f32 %v528_v23, %v1856_v5 }
 0x178   :  { %v450_v27 = vpop.f32.mrf.mxu0  ;;  %v698_v39 = vadd.f32 %v697_v25, %v1858_v6 }
 0x179   :  { %v451_v28 = vadd.f32 %v450_v27, %v1856_v5  ;;  %v619_v29 = vpop.f32.mrf.mxu1  ;;  %v770_v42 = vmax.f32 %v529_v34, 0.0 }
 0x17a   :  { %v620_v30 = vadd.f32 %v619_v29, %v1858_v6 }
 0x17b   :  { %v739_v32 = vmax.f32 %v451_v28, 0.0 }
 0x17c   :  { %v1508_v33 = vpack.c.bf16 %v620_v30, %v618_v26 }
 0x17d   :  { %v1348_v35 = vpack.c.bf16 %v739_v32, %v738_v31 }
 0x17e   :  { %1643 = vst [vmem:[%s2225_s4 + $0x68] sm:$0xff] %v1508_v33   ;;  %v530_v36 = vpop.f32.mrf.mxu2 }
 0x17f   :  { %1612 = vst [vmem:[%s2226_s3 + $0x68] sm:$0xff] %v1348_v35   ;;  %v531_v37 = vadd.f32 %v530_v36, %v1856_v5  ;;  %v699_v38 = vpop.f32.mrf.mxu3 }
 0x180   :  { %v700_v40 = vadd.f32 %v699_v38, %v1858_v6  ;;  %v453_v41 = vpop.f32.mrf.mxu0 }
 0x181   :  { %v771_v43 = vmax.f32 %v531_v37, 0.0  ;;  %v622_v44 = vpop.f32.mrf.mxu1  ;;  %v454_v48 = vadd.f32 %v453_v41, %v1856_v5 }
 0x182   :  { %v1588_v45 = vpack.c.bf16 %v700_v40, %v698_v39  ;;  %v623_v50 = vadd.f32 %v622_v44, %v1858_v6 }
 0x183   :  { %v1428_v46 = vpack.c.bf16 %v771_v43, %v770_v42  ;;  %v740_v55 = vmax.f32 %v454_v48, 0.0 }
 0x184   :  { %1659 = vst [vmem:[%s2225_s4 + $0xe8] sm:$0xff] %v1588_v45  }
 0x185   :  { %1628 = vst [vmem:[%s2226_s3 + $0xe8] sm:$0xff] %v1428_v46  }
 0x186   :  { %v533_v47 = vpop.f32.mrf.mxu2 }
 0x187   :  { %v702_v49 = vpop.f32.mrf.mxu3  ;;  %v534_v58 = vadd.f32 %v533_v47, %v1856_v5 }
 0x188   :  { %v455_v51 = vpop.f32.mrf.mxu0  ;;  %v703_v63 = vadd.f32 %v702_v49, %v1858_v6 }
 0x189   :  { %v456_v52 = vadd.f32 %v455_v51, %v1856_v5  ;;  %v624_v53 = vpop.f32.mrf.mxu1  ;;  %v772_v2 = vmax.f32 %v534_v58, 0.0 }
 0x18a   :  { %v625_v54 = vadd.f32 %v624_v53, %v1858_v6 }
 0x18b   :  { %v741_v56 = vmax.f32 %v456_v52, 0.0 }
 0x18c   :  { %v1513_v57 = vpack.c.bf16 %v625_v54, %v623_v50 }
 0x18d   :  { %v1353_v59 = vpack.c.bf16 %v741_v56, %v740_v55 }
 0x18e   :  { %1644 = vst [vmem:[%s2225_s4 + $0x70] sm:$0xff] %v1513_v57   ;;  %v535_v60 = vpop.f32.mrf.mxu2 }
 0x18f   :  { %1613 = vst [vmem:[%s2226_s3 + $0x70] sm:$0xff] %v1353_v59   ;;  %v536_v61 = vadd.f32 %v535_v60, %v1856_v5  ;;  %v704_v62 = vpop.f32.mrf.mxu3 }
 0x190   :  { %v705_v0 = vadd.f32 %v704_v62, %v1858_v6  ;;  %v458_v1 = vpop.f32.mrf.mxu0 }
 0x191   :  { %v773_v3 = vmax.f32 %v536_v61, 0.0  ;;  %v627_v4 = vpop.f32.mrf.mxu1  ;;  %v459_v10 = vadd.f32 %v458_v1, %v1856_v5 }
 0x192   :  { %v1593_v7 = vpack.c.bf16 %v705_v0, %v703_v63  ;;  %v628_v12 = vadd.f32 %v627_v4, %v1858_v6 }
 0x193   :  { %v1433_v8 = vpack.c.bf16 %v773_v3, %v772_v2  ;;  %v742_v17 = vmax.f32 %v459_v10, 0.0 }
 0x194   :  { %1660 = vst [vmem:[%s2225_s4 + $0xf0] sm:$0xff] %v1593_v7  }
 0x195   :  { %1629 = vst [vmem:[%s2226_s3 + $0xf0] sm:$0xff] %v1433_v8  }
 0x196   :  { %v538_v9 = vpop.f32.mrf.mxu2 }
 0x197   :  { %v707_v11 = vpop.f32.mrf.mxu3  ;;  %v539_v20 = vadd.f32 %v538_v9, %v1856_v5 }
 0x198   :  { %v460_v13 = vpop.f32.mrf.mxu0  ;;  %v708_v25 = vadd.f32 %v707_v11, %v1858_v6 }
 0x199   :  { %v461_v14 = vadd.f32 %v460_v13, %v1856_v5  ;;  %v629_v15 = vpop.f32.mrf.mxu1  ;;  %v774_v27 = vmax.f32 %v539_v20, 0.0 }
 0x19a   :  { %v630_v16 = vadd.f32 %v629_v15, %v1858_v6 }
 0x19b   :  { %v743_v18 = vmax.f32 %v461_v14, 0.0 }
 0x19c   :  { %v1518_v19 = vpack.c.bf16 %v630_v16, %v628_v12 }
 0x19d   :  { %v1358_v21 = vpack.c.bf16 %v743_v18, %v742_v17 }
 0x19e   :  { %1645 = vst [vmem:[%s2225_s4 + $0x78] sm:$0xff] %v1518_v19   ;;  %v540_v22 = vpop.f32.mrf.mxu2 }
 0x19f   :  { %1614 = vst [vmem:[%s2226_s3 + $0x78] sm:$0xff] %v1358_v21   ;;  %v541_v23 = vadd.f32 %v540_v22, %v1856_v5  ;;  %v709_v24 = vpop.f32.mrf.mxu3 }
 0x1a0   :  { %v710_v26 = vadd.f32 %v709_v24, %v1858_v6 }
 0x1a1   :  { %v775_v28 = vmax.f32 %v541_v23, 0.0 }
 0x1a2   :  { %v1598_v29 = vpack.c.bf16 %v710_v26, %v708_v25 }
 0x1a3   :  { %v1438_v30 = vpack.c.bf16 %v775_v28, %v774_v27 }
 0x1a4   :  { %1661 = vst [vmem:[%s2225_s4 + $0xf8] sm:$0xff] %v1598_v29  }
 0x1a5   :  { %1630 = vst [vmem:[%s2226_s3 + $0xf8] sm:$0xff] %v1438_v30  }

// kernel: bottleneck_forward.5
= control target key start
LH: loop header
LB: loop body
LE: loop exit
PB: predicated region body
PF: predicated region fallthrough
CT: control target
= control target key end

     0   :  { %s1720_s1 = inlined_call_operand.vmem [shape: bf16[128,128], index: 1, kind: input, shape index: {}]   ;;  %s1721_s2 = inlined_call_operand.vmem [shape: f32[1,128], index: 2, kind: input, shape index: {}]   ;;  %s1722_s0 = inlined_call_operand.vmem [shape: bf16[512,128], index: 0, kind: input, shape index: {}]   ;;  %s1723_s3 = inlined_call_operand.vmem [shape: bf16[512,128], index: 3, kind: input, shape index: {}]   ;;  %s1724_s4 = inlined_call_operand.vmem [shape: f32[512,128], index: 4, kind: output, shape index: {}]  }
   0x1   :  { %v1033_v0 = vld [vmem:[%s1720_s1 + $0x38] sm:$0xff]  ;;  %v1032_v1 = vld [vmem:[%s1720_s1 + $0x30] sm:$0xff]  ;;  %v1031_v2 = vld [vmem:[%s1720_s1 + $0x28] sm:$0xff] }
   0x2   :  { %341 = vmatpush.bf16.msra.mxu0 %v1033_v0  ;;  %1193 = vmatpush.bf16.msra.mxu1 %v1033_v0  ;;  %v1030_v3 = vld [vmem:[%s1720_s1 + $0x20] sm:$0xff]  ;;  %v1029_v4 = vld [vmem:[%s1720_s1 + $0x18] sm:$0xff]  ;;  %v1028_v5 = vld [vmem:[%s1720_s1 + $0x10] sm:$0xff] }
   0x3   :  { %1194 = vmatpush.bf16.msra.mxu2 %v1033_v0  ;;  %1195 = vmatpush.bf16.msra.mxu3 %v1033_v0  ;;  %v1027_v6 = vld [vmem:[%s1720_s1 + $0x8] sm:$0xff]  ;;  %v1026_v7 = vld [vmem:[%s1720_s1] sm:$0xff]  ;;  %v996_v16 = vld [vmem:[%s1722_s0 + $0x10] sm:$0xff] }
   0x4   :  { %v994_v8 = vld [vmem:[%s1722_s0] sm:$0xff]  ;;  %v995_v12 = vld [vmem:[%s1722_s0 + $0x8] sm:$0xff]  ;;  %v1004_v17 = vld [vmem:[%s1722_s0 + $0x50] sm:$0xff] }
   0x5   :  { %v1002_v9 = vld [vmem:[%s1722_s0 + $0x40] sm:$0xff]  ;;  %v1003_v13 = vld [vmem:[%s1722_s0 + $0x48] sm:$0xff]  ;;  %v1012_v18 = vld [vmem:[%s1722_s0 + $0x90] sm:$0xff] }
   0x6   :  { %342 = vmatpush.bf16.msra.mxu0 %v1032_v1  ;;  %1196 = vmatpush.bf16.msra.mxu1 %v1032_v1  ;;  %v1010_v10 = vld [vmem:[%s1722_s0 + $0x80] sm:$0xff]  ;;  %v1011_v14 = vld [vmem:[%s1722_s0 + $0x88] sm:$0xff]  ;;  %v1020_v19 = vld [vmem:[%s1722_s0 + $0xd0] sm:$0xff] }
   0x7   :  { %1197 = vmatpush.bf16.msra.mxu2 %v1032_v1  ;;  %1198 = vmatpush.bf16.msra.mxu3 %v1032_v1  ;;  %v1018_v11 = vld [vmem:[%s1722_s0 + $0xc0] sm:$0xff]  ;;  %v1019_v15 = vld [vmem:[%s1722_s0 + $0xc8] sm:$0xff]  ;;  %v997_v20 = vld [vmem:[%s1722_s0 + $0x18] sm:$0xff] }
   0x8   :  { %v1005_v21 = vld [vmem:[%s1722_s0 + $0x58] sm:$0xff]  ;;  %v998_v24 = vld [vmem:[%s1722_s0 + $0x20] sm:$0xff]  ;;  %v999_v28 = vld [vmem:[%s1722_s0 + $0x28] sm:$0xff] }
   0x9   :  { %v1013_v22 = vld [vmem:[%s1722_s0 + $0x98] sm:$0xff]  ;;  %v1006_v25 = vld [vmem:[%s1722_s0 + $0x60] sm:$0xff]  ;;  %v1007_v29 = vld [vmem:[%s1722_s0 + $0x68] sm:$0xff] }
   0xa   :  { %343 = vmatpush.bf16.msra.mxu0 %v1031_v2  ;;  %1199 = vmatpush.bf16.msra.mxu1 %v1031_v2  ;;  %v1021_v23 = vld [vmem:[%s1722_s0 + $0xd8] sm:$0xff]  ;;  %v1014_v26 = vld [vmem:[%s1722_s0 + $0xa0] sm:$0xff]  ;;  %v1015_v30 = vld [vmem:[%s1722_s0 + $0xa8] sm:$0xff] }
   0xb   :  { %1200 = vmatpush.bf16.msra.mxu2 %v1031_v2  ;;  %1201 = vmatpush.bf16.msra.mxu3 %v1031_v2  ;;  %v1022_v27 = vld [vmem:[%s1722_s0 + $0xe0] sm:$0xff]  ;;  %v1023_v31 = vld [vmem:[%s1722_s0 + $0xe8] sm:$0xff]  ;;  %v1000_v32 = vld [vmem:[%s1722_s0 + $0x30] sm:$0xff] }
   0xc   :  { %v1008_v33 = vld [vmem:[%s1722_s0 + $0x70] sm:$0xff]  ;;  %v1001_v36 = vld [vmem:[%s1722_s0 + $0x38] sm:$0xff]  ;;  %v1035_v40 = vld [vmem:[%s1723_s3] sm:$0xff]  }
   0xd   :  { %v1016_v34 = vld [vmem:[%s1722_s0 + $0xb0] sm:$0xff]  ;;  %v1009_v37 = vld [vmem:[%s1722_s0 + $0x78] sm:$0xff]  ;;  %v1169_v41 = vld [vmem:[%s1723_s3 + $0x40] sm:$0xff]   ;;  %v1036_v43 = vunpack.c.l.bf16 %v1035_v40  ;;  %v1037_v59 = vunpack.c.h.bf16 %v1035_v40 }
   0xe   :  { %344 = vmatpush.bf16.msra.mxu0 %v1030_v3  ;;  %1202 = vmatpush.bf16.msra.mxu1 %v1030_v3  ;;  %v1024_v35 = vld [vmem:[%s1722_s0 + $0xf0] sm:$0xff]  ;;  %v1017_v38 = vld [vmem:[%s1722_s0 + $0xb8] sm:$0xff]  ;;  %v1372_v42 = vld [vmem:[%s1721_s2] ss:$0 sm:$0xff]  ;;  %v1068_v44 = vunpack.c.l.bf16 %v1169_v41  ;;  %v1069_v60 = vunpack.c.h.bf16 %v1169_v41 }
   0xf   :  { %1203 = vmatpush.bf16.msra.mxu2 %v1030_v3  ;;  %1204 = vmatpush.bf16.msra.mxu3 %v1030_v3  ;;  %v1025_v39 = vld [vmem:[%s1722_s0 + $0xf8] sm:$0xff]  ;;  %v1177_v51 = vld [vmem:[%s1723_s3 + $0x80] sm:$0xff]  }
  0x10   :  { %v1185_v52 = vld [vmem:[%s1723_s3 + $0xc0] sm:$0xff]   ;;  %v1100_v55 = vunpack.c.l.bf16 %v1177_v51 }
  0x11   :  { %v1132_v56 = vunpack.c.l.bf16 %v1185_v52 }
  0x12   :  { %345 = vmatpush.bf16.msra.mxu0 %v1029_v4  ;;  %1205 = vmatpush.bf16.msra.mxu1 %v1029_v4 }
  0x13   :  { %1206 = vmatpush.bf16.msra.mxu2 %v1029_v4  ;;  %1207 = vmatpush.bf16.msra.mxu3 %v1029_v4 }
  0x16   :  { %346 = vmatpush.bf16.msra.mxu0 %v1028_v5  ;;  %1208 = vmatpush.bf16.msra.mxu1 %v1028_v5 }
  0x17   :  { %1209 = vmatpush.bf16.msra.mxu2 %v1028_v5  ;;  %1210 = vmatpush.bf16.msra.mxu3 %v1028_v5 }
  0x1a   :  { %347 = vmatpush.bf16.msra.mxu0 %v1027_v6  ;;  %1211 = vmatpush.bf16.msra.mxu1 %v1027_v6 }
  0x1b   :  { %1212 = vmatpush.bf16.msra.mxu2 %v1027_v6  ;;  %1213 = vmatpush.bf16.msra.mxu3 %v1027_v6 }
  0x1e   :  { %348 = vmatpush.bf16.msra.mxu0 %v1026_v7  ;;  %1214 = vmatpush.bf16.msra.mxu1 %v1026_v7 }
  0x1f   :  { %1215 = vmatpush.bf16.msra.mxu2 %v1026_v7  ;;  %1216 = vmatpush.bf16.msra.mxu3 %v1026_v7 }
  0x21   :  { %349 = vmatmul.bf16.vlgmr.msra.gmra.mxu0 %v994_v8  ;;  %389 = vmatmul.bf16.vlgmr.msra.gmra.mxu1 %v1002_v9  ;;  %v1162_v9 = vld [vmem:[%s1723_s3 + $0x8] sm:$0xff]  }
  0x22   :  { %429 = vmatmul.bf16.vlgmr.msra.gmra.mxu2 %v1010_v10  ;;  %469 = vmatmul.bf16.vlgmr.msra.gmra.mxu3 %v1018_v11  ;;  %v1170_v10 = vld [vmem:[%s1723_s3 + $0x48] sm:$0xff]  }
  0x23   :  { %v1073_v40 = vunpack.c.h.bf16 %v1170_v10 }
  0x31   :  { %354 = vmatmul.bf16.gmra.mxu0 %v995_v12  ;;  %394 = vmatmul.bf16.gmra.mxu1 %v1003_v13  ;;  %v1101_v13 = vunpack.c.h.bf16 %v1177_v51 }
  0x32   :  { %434 = vmatmul.bf16.gmra.mxu2 %v1011_v14  ;;  %474 = vmatmul.bf16.gmra.mxu3 %v1019_v15  ;;  %v1133_v14 = vunpack.c.h.bf16 %v1185_v52 }
  0x41   :  { %359 = vmatmul.bf16.gmra.mxu0 %v996_v16  ;;  %399 = vmatmul.bf16.gmra.mxu1 %v1004_v17  ;;  %v1040_v17 = vunpack.c.l.bf16 %v1162_v9 }
  0x42   :  { %439 = vmatmul.bf16.gmra.mxu2 %v1012_v18  ;;  %479 = vmatmul.bf16.gmra.mxu3 %v1020_v19  ;;  %v1072_v18 = vunpack.c.l.bf16 %v1170_v10  ;;  %v1179_v10 = vld [vmem:[%s1723_s3 + $0x90] sm:$0xff]  }
  0x51   :  { %364 = vmatmul.bf16.gmra.mxu0 %v997_v20  ;;  %404 = vmatmul.bf16.gmra.mxu1 %v1005_v21 }
  0x52   :  { %444 = vmatmul.bf16.gmra.mxu2 %v1013_v22  ;;  %484 = vmatmul.bf16.gmra.mxu3 %v1021_v23 }
  0x61   :  { %369 = vmatmul.bf16.gmra.mxu0 %v998_v24  ;;  %409 = vmatmul.bf16.gmra.mxu1 %v1006_v25 }
  0x62   :  { %449 = vmatmul.bf16.gmra.mxu2 %v1014_v26  ;;  %489 = vmatmul.bf16.gmra.mxu3 %v1022_v27 }
  0x71   :  { %374 = vmatmul.bf16.gmra.mxu0 %v999_v28  ;;  %414 = vmatmul.bf16.gmra.mxu1 %v1007_v29  ;;  %v1178_v29 = vld [vmem:[%s1723_s3 + $0x88] sm:$0xff]  }
  0x72   :  { %454 = vmatmul.bf16.gmra.mxu2 %v1015_v30  ;;  %494 = vmatmul.bf16.gmra.mxu3 %v1023_v31  ;;  %v1186_v30 = vld [vmem:[%s1723_s3 + $0xc8] sm:$0xff]  }
  0x81   :  { %379 = vmatmul.bf16.gmra.mxu0 %v1000_v32  ;;  %419 = vmatmul.bf16.gmra.mxu1 %v1008_v33 }
  0x82   :  { %459 = vmatmul.bf16.gmra.mxu2 %v1016_v34  ;;  %499 = vmatmul.bf16.gmra.mxu3 %v1024_v35  ;;  %v1104_v35 = vunpack.c.l.bf16 %v1178_v29 }
  0x91   :  { %384 = vmatmul.bf16.gmra.mxu0 %v1001_v36  ;;  %424 = vmatmul.bf16.gmra.mxu1 %v1009_v37  ;;  %v1136_v36 = vunpack.c.l.bf16 %v1186_v30 }
  0x92   :  { %464 = vmatmul.bf16.gmra.mxu2 %v1017_v38  ;;  %504 = vmatmul.bf16.gmra.mxu3 %v1025_v39  ;;  %v1041_v39 = vunpack.c.h.bf16 %v1162_v9 }
  0x9e   :  { %v350_v45 = vpop.f32.mrf.mxu0  ;;  %v390_v46 = vpop.f32.mrf.mxu1 }
  0x9f   :  { %v351_v47 = vadd.f32 %v1372_v42, %v350_v45  ;;  %v391_v48 = vadd.f32 %v1372_v42, %v390_v46 }
  0xa1   :  { %v638_v49 = vadd.f32 %v1036_v43, %v351_v47  ;;  %v654_v50 = vadd.f32 %v1068_v44, %v391_v48 }
  0xa3   :  { %v702_v53 = vmax.f32 %v638_v49, 0.0  ;;  %v718_v54 = vmax.f32 %v654_v50, 0.0 }
  0xa5   :  { %766 = vst [vmem:[%s1724_s4] sm:$0xff] %v702_v53  ;;  %v430_v57 = vpop.f32.mrf.mxu2  ;;  %v470_v58 = vpop.f32.mrf.mxu3 }
  0xa6   :  { %782 = vst [vmem:[%s1724_s4 + $0x80] sm:$0xff] %v718_v54  ;;  %v431_v61 = vadd.f32 %v1372_v42, %v430_v57  ;;  %v471_v62 = vadd.f32 %v1372_v42, %v470_v58  ;;  %v352_v63 = vpop.f32.mrf.mxu0  ;;  %v392_v0 = vpop.f32.mrf.mxu1  ;;  %v1163_v54 = vld [vmem:[%s1723_s3 + $0x10] sm:$0xff]   ;;  %v1105_v58 = vunpack.c.h.bf16 %v1178_v29 }
  0xa7   :  { %v353_v1 = vadd.f32 %v1372_v42, %v352_v63  ;;  %v393_v2 = vadd.f32 %v1372_v42, %v392_v0 }
  0xa8   :  { %v670_v3 = vadd.f32 %v1100_v55, %v431_v61  ;;  %v686_v4 = vadd.f32 %v1132_v56, %v471_v62  ;;  %v1171_v55 = vld [vmem:[%s1723_s3 + $0x50] sm:$0xff]   ;;  %v1044_v62 = vunpack.c.l.bf16 %v1163_v54 }
  0xa9   :  { %v639_v5 = vadd.f32 %v1037_v59, %v353_v1  ;;  %v655_v6 = vadd.f32 %v1069_v60, %v393_v2  ;;  %v1137_v59 = vunpack.c.h.bf16 %v1186_v30  ;;  %v1076_v63 = vunpack.c.l.bf16 %v1171_v55 }
  0xaa   :  { %v734_v7 = vmax.f32 %v670_v3, 0.0  ;;  %v750_v8 = vmax.f32 %v686_v4, 0.0 }
  0xab   :  { %v703_v11 = vmax.f32 %v639_v5, 0.0  ;;  %v719_v12 = vmax.f32 %v655_v6, 0.0 }
  0xac   :  { %798 = vst [vmem:[%s1724_s4 + $0x100] sm:$0xff] %v734_v7 }
  0xad   :  { %814 = vst [vmem:[%s1724_s4 + $0x180] sm:$0xff] %v750_v8  ;;  %v432_v15 = vpop.f32.mrf.mxu2  ;;  %v472_v16 = vpop.f32.mrf.mxu3 }
  0xae   :  { %767 = vst [vmem:[%s1724_s4 + $0x8] sm:$0xff] %v703_v11  ;;  %v433_v19 = vadd.f32 %v1372_v42, %v432_v15  ;;  %v473_v20 = vadd.f32 %v1372_v42, %v472_v16  ;;  %v355_v21 = vpop.f32.mrf.mxu0  ;;  %v395_v22 = vpop.f32.mrf.mxu1  ;;  %v1187_v11 = vld [vmem:[%s1723_s3 + $0xd0] sm:$0xff]   ;;  %v1108_v16 = vunpack.c.l.bf16 %v1179_v10 }
  0xaf   :  { %783 = vst [vmem:[%s1724_s4 + $0x88] sm:$0xff] %v719_v12  ;;  %v356_v23 = vadd.f32 %v1372_v42, %v355_v21  ;;  %v396_v24 = vadd.f32 %v1372_v42, %v395_v22  ;;  %v1077_v21 = vunpack.c.h.bf16 %v1171_v55  ;;  %v1180_v55 = vld [vmem:[%s1723_s3 + $0x98] sm:$0xff]  }
  0xb0   :  { %v671_v25 = vadd.f32 %v1101_v13, %v433_v19  ;;  %v687_v26 = vadd.f32 %v1133_v14, %v473_v20  ;;  %v1045_v20 = vunpack.c.h.bf16 %v1163_v54 }
  0xb1   :  { %v640_v27 = vadd.f32 %v1040_v17, %v356_v23  ;;  %v656_v28 = vadd.f32 %v1072_v18, %v396_v24  ;;  %v1140_v17 = vunpack.c.l.bf16 %v1187_v11 }
  0xb2   :  { %v735_v31 = vmax.f32 %v671_v25, 0.0  ;;  %v751_v32 = vmax.f32 %v687_v26, 0.0 }
  0xb3   :  { %v704_v33 = vmax.f32 %v640_v27, 0.0  ;;  %v720_v34 = vmax.f32 %v656_v28, 0.0 }
  0xb4   :  { %799 = vst [vmem:[%s1724_s4 + $0x108] sm:$0xff] %v735_v31 }
  0xb5   :  { %815 = vst [vmem:[%s1724_s4 + $0x188] sm:$0xff] %v751_v32  ;;  %v435_v37 = vpop.f32.mrf.mxu2  ;;  %v475_v38 = vpop.f32.mrf.mxu3 }
  0xb6   :  { %768 = vst [vmem:[%s1724_s4 + $0x10] sm:$0xff] %v704_v33  ;;  %v436_v41 = vadd.f32 %v1372_v42, %v435_v37  ;;  %v476_v43 = vadd.f32 %v1372_v42, %v475_v38  ;;  %v357_v44 = vpop.f32.mrf.mxu0  ;;  %v397_v45 = vpop.f32.mrf.mxu1  ;;  %v1109_v38 = vunpack.c.h.bf16 %v1179_v10 }
  0xb7   :  { %784 = vst [vmem:[%s1724_s4 + $0x90] sm:$0xff] %v720_v34  ;;  %v358_v46 = vadd.f32 %v1372_v42, %v357_v44  ;;  %v398_v47 = vadd.f32 %v1372_v42, %v397_v45  ;;  %v1164_v34 = vld [vmem:[%s1723_s3 + $0x18] sm:$0xff]  }
  0xb8   :  { %v672_v48 = vadd.f32 %v1104_v35, %v436_v41  ;;  %v688_v49 = vadd.f32 %v1136_v36, %v476_v43  ;;  %v1172_v35 = vld [vmem:[%s1723_s3 + $0x58] sm:$0xff]   ;;  %v1048_v43 = vunpack.c.l.bf16 %v1164_v34 }
  0xb9   :  { %v641_v50 = vadd.f32 %v1041_v39, %v358_v46  ;;  %v657_v51 = vadd.f32 %v1073_v40, %v398_v47  ;;  %v1141_v39 = vunpack.c.h.bf16 %v1187_v11  ;;  %v1080_v44 = vunpack.c.l.bf16 %v1172_v35 }
  0xba   :  { %v736_v52 = vmax.f32 %v672_v48, 0.0  ;;  %v752_v53 = vmax.f32 %v688_v49, 0.0 }
  0xbb   :  { %v705_v56 = vmax.f32 %v641_v50, 0.0  ;;  %v721_v57 = vmax.f32 %v657_v51, 0.0 }
  0xbc   :  { %800 = vst [vmem:[%s1724_s4 + $0x110] sm:$0xff] %v736_v52 }
  0xbd   :  { %816 = vst [vmem:[%s1724_s4 + $0x190] sm:$0xff] %v752_v53  ;;  %v437_v60 = vpop.f32.mrf.mxu2  ;;  %v477_v61 = vpop.f32.mrf.mxu3 }
  0xbe   :  { %769 = vst [vmem:[%s1724_s4 + $0x18] sm:$0xff] %v705_v56  ;;  %v438_v0 = vadd.f32 %v1372_v42, %v437_v60  ;;  %v478_v1 = vadd.f32 %v1372_v42, %v477_v61  ;;  %v360_v2 = vpop.f32.mrf.mxu0  ;;  %v400_v3 = vpop.f32.mrf.mxu1  ;;  %v1188_v56 = vld [vmem:[%s1723_s3 + $0xd8] sm:$0xff]   ;;  %v1112_v61 = vunpack.c.l.bf16 %v1180_v55 }
  0xbf   :  { %785 = vst [vmem:[%s1724_s4 + $0x98] sm:$0xff] %v721_v57  ;;  %v361_v4 = vadd.f32 %v1372_v42, %v360_v2  ;;  %v401_v5 = vadd.f32 %v1372_v42, %v400_v3  ;;  %v1081_v2 = vunpack.c.h.bf16 %v1172_v35  ;;  %v1181_v35 = vld [vmem:[%s1723_s3 + $0xa0] sm:$0xff]  }
  0xc0   :  { %v673_v6 = vadd.f32 %v1105_v58, %v438_v0  ;;  %v689_v7 = vadd.f32 %v1137_v59, %v478_v1  ;;  %v1049_v1 = vunpack.c.h.bf16 %v1164_v34 }
  0xc1   :  { %v642_v8 = vadd.f32 %v1044_v62, %v361_v4  ;;  %v658_v9 = vadd.f32 %v1076_v63, %v401_v5  ;;  %v1144_v62 = vunpack.c.l.bf16 %v1188_v56 }
  0xc2   :  { %v737_v12 = vmax.f32 %v673_v6, 0.0  ;;  %v753_v13 = vmax.f32 %v689_v7, 0.0 }
  0xc3   :  { %v706_v14 = vmax.f32 %v642_v8, 0.0  ;;  %v722_v15 = vmax.f32 %v658_v9, 0.0 }
  0xc4   :  { %801 = vst [vmem:[%s1724_s4 + $0x118] sm:$0xff] %v737_v12 }
  0xc5   :  { %817 = vst [vmem:[%s1724_s4 + $0x198] sm:$0xff] %v753_v13  ;;  %v440_v18 = vpop.f32.mrf.mxu2  ;;  %v480_v19 = vpop.f32.mrf.mxu3 }
  0xc6   :  { %770 = vst [vmem:[%s1724_s4 + $0x20] sm:$0xff] %v706_v14  ;;  %v441_v22 = vadd.f32 %v1372_v42, %v440_v18  ;;  %v481_v23 = vadd.f32 %v1372_v42, %v480_v19  ;;  %v362_v24 = vpop.f32.mrf.mxu0  ;;  %v402_v25 = vpop.f32.mrf.mxu1  ;;  %v1113_v19 = vunpack.c.h.bf16 %v1180_v55 }
  0xc7   :  { %786 = vst [vmem:[%s1724_s4 + $0xa0] sm:$0xff] %v722_v15  ;;  %v363_v26 = vadd.f32 %v1372_v42, %v362_v24  ;;  %v403_v27 = vadd.f32 %v1372_v42, %v402_v25  ;;  %v1165_v15 = vld [vmem:[%s1723_s3 + $0x20] sm:$0xff]  }
  0xc8   :  { %v674_v28 = vadd.f32 %v1108_v16, %v441_v22  ;;  %v690_v29 = vadd.f32 %v1140_v17, %v481_v23  ;;  %v1173_v16 = vld [vmem:[%s1723_s3 + $0x60] sm:$0xff]   ;;  %v1052_v23 = vunpack.c.l.bf16 %v1165_v15 }
  0xc9   :  { %v643_v30 = vadd.f32 %v1045_v20, %v363_v26  ;;  %v659_v31 = vadd.f32 %v1077_v21, %v403_v27  ;;  %v1145_v20 = vunpack.c.h.bf16 %v1188_v56  ;;  %v1084_v24 = vunpack.c.l.bf16 %v1173_v16 }
  0xca   :  { %v738_v32 = vmax.f32 %v674_v28, 0.0  ;;  %v754_v33 = vmax.f32 %v690_v29, 0.0 }
  0xcb   :  { %v707_v36 = vmax.f32 %v643_v30, 0.0  ;;  %v723_v37 = vmax.f32 %v659_v31, 0.0 }
  0xcc   :  { %802 = vst [vmem:[%s1724_s4 + $0x120] sm:$0xff] %v738_v32 }
  0xcd   :  { %818 = vst [vmem:[%s1724_s4 + $0x1a0] sm:$0xff] %v754_v33  ;;  %v442_v40 = vpop.f32.mrf.mxu2  ;;  %v482_v41 = vpop.f32.mrf.mxu3 }
  0xce   :  { %771 = vst [vmem:[%s1724_s4 + $0x28] sm:$0xff] %v707_v36  ;;  %v443_v45 = vadd.f32 %v1372_v42, %v442_v40  ;;  %v483_v46 = vadd.f32 %v1372_v42, %v482_v41  ;;  %v365_v47 = vpop.f32.mrf.mxu0  ;;  %v405_v48 = vpop.f32.mrf.mxu1  ;;  %v1189_v36 = vld [vmem:[%s1723_s3 + $0xe0] sm:$0xff]   ;;  %v1116_v41 = vunpack.c.l.bf16 %v1181_v35 }
  0xcf   :  { %787 = vst [vmem:[%s1724_s4 + $0xa8] sm:$0xff] %v723_v37  ;;  %v366_v49 = vadd.f32 %v1372_v42, %v365_v47  ;;  %v406_v50 = vadd.f32 %v1372_v42, %v405_v48  ;;  %v1085_v47 = vunpack.c.h.bf16 %v1173_v16  ;;  %v1182_v16 = vld [vmem:[%s1723_s3 + $0xa8] sm:$0xff]  }
  0xd0   :  { %v675_v51 = vadd.f32 %v1109_v38, %v443_v45  ;;  %v691_v52 = vadd.f32 %v1141_v39, %v483_v46  ;;  %v1053_v46 = vunpack.c.h.bf16 %v1165_v15 }
  0xd1   :  { %v644_v53 = vadd.f32 %v1048_v43, %v366_v49  ;;  %v660_v54 = vadd.f32 %v1080_v44, %v406_v50  ;;  %v1148_v43 = vunpack.c.l.bf16 %v1189_v36 }
  0xd2   :  { %v739_v57 = vmax.f32 %v675_v51, 0.0  ;;  %v755_v58 = vmax.f32 %v691_v52, 0.0 }
  0xd3   :  { %v708_v59 = vmax.f32 %v644_v53, 0.0  ;;  %v724_v60 = vmax.f32 %v660_v54, 0.0 }
  0xd4   :  { %803 = vst [vmem:[%s1724_s4 + $0x128] sm:$0xff] %v739_v57 }
  0xd5   :  { %819 = vst [vmem:[%s1724_s4 + $0x1a8] sm:$0xff] %v755_v58  ;;  %v445_v63 = vpop.f32.mrf.mxu2  ;;  %v485_v0 = vpop.f32.mrf.mxu3 }
  0xd6   :  { %772 = vst [vmem:[%s1724_s4 + $0x30] sm:$0xff] %v708_v59  ;;  %v446_v3 = vadd.f32 %v1372_v42, %v445_v63  ;;  %v486_v4 = vadd.f32 %v1372_v42, %v485_v0  ;;  %v367_v5 = vpop.f32.mrf.mxu0  ;;  %v407_v6 = vpop.f32.mrf.mxu1  ;;  %v1117_v0 = vunpack.c.h.bf16 %v1181_v35 }
  0xd7   :  { %788 = vst [vmem:[%s1724_s4 + $0xb0] sm:$0xff] %v724_v60  ;;  %v368_v7 = vadd.f32 %v1372_v42, %v367_v5  ;;  %v408_v8 = vadd.f32 %v1372_v42, %v407_v6  ;;  %v1166_v60 = vld [vmem:[%s1723_s3 + $0x28] sm:$0xff]  }
  0xd8   :  { %v676_v9 = vadd.f32 %v1112_v61, %v446_v3  ;;  %v692_v10 = vadd.f32 %v1144_v62, %v486_v4  ;;  %v1174_v61 = vld [vmem:[%s1723_s3 + $0x68] sm:$0xff]   ;;  %v1056_v4 = vunpack.c.l.bf16 %v1166_v60 }
  0xd9   :  { %v645_v11 = vadd.f32 %v1049_v1, %v368_v7  ;;  %v661_v12 = vadd.f32 %v1081_v2, %v408_v8  ;;  %v1149_v1 = vunpack.c.h.bf16 %v1189_v36  ;;  %v1088_v5 = vunpack.c.l.bf16 %v1174_v61 }
  0xda   :  { %v740_v13 = vmax.f32 %v676_v9, 0.0  ;;  %v756_v14 = vmax.f32 %v692_v10, 0.0 }
  0xdb   :  { %v709_v17 = vmax.f32 %v645_v11, 0.0  ;;  %v725_v18 = vmax.f32 %v661_v12, 0.0 }
  0xdc   :  { %804 = vst [vmem:[%s1724_s4 + $0x130] sm:$0xff] %v740_v13 }
  0xdd   :  { %820 = vst [vmem:[%s1724_s4 + $0x1b0] sm:$0xff] %v756_v14  ;;  %v447_v21 = vpop.f32.mrf.mxu2  ;;  %v487_v22 = vpop.f32.mrf.mxu3 }
  0xde   :  { %773 = vst [vmem:[%s1724_s4 + $0x38] sm:$0xff] %v709_v17  ;;  %v448_v25 = vadd.f32 %v1372_v42, %v447_v21  ;;  %v488_v26 = vadd.f32 %v1372_v42, %v487_v22  ;;  %v370_v27 = vpop.f32.mrf.mxu0  ;;  %v410_v28 = vpop.f32.mrf.mxu1  ;;  %v1190_v17 = vld [vmem:[%s1723_s3 + $0xe8] sm:$0xff]   ;;  %v1120_v22 = vunpack.c.l.bf16 %v1182_v16 }
  0xdf   :  { %789 = vst [vmem:[%s1724_s4 + $0xb8] sm:$0xff] %v725_v18  ;;  %v371_v29 = vadd.f32 %v1372_v42, %v370_v27  ;;  %v411_v30 = vadd.f32 %v1372_v42, %v410_v28  ;;  %v1089_v27 = vunpack.c.h.bf16 %v1174_v61  ;;  %v1183_v61 = vld [vmem:[%s1723_s3 + $0xb0] sm:$0xff]  }
  0xe0   :  { %v677_v31 = vadd.f32 %v1113_v19, %v448_v25  ;;  %v693_v32 = vadd.f32 %v1145_v20, %v488_v26  ;;  %v1057_v26 = vunpack.c.h.bf16 %v1166_v60 }
  0xe1   :  { %v646_v33 = vadd.f32 %v1052_v23, %v371_v29  ;;  %v662_v34 = vadd.f32 %v1084_v24, %v411_v30  ;;  %v1152_v23 = vunpack.c.l.bf16 %v1190_v17 }
  0xe2   :  { %v741_v37 = vmax.f32 %v677_v31, 0.0  ;;  %v757_v38 = vmax.f32 %v693_v32, 0.0 }
  0xe3   :  { %v710_v39 = vmax.f32 %v646_v33, 0.0  ;;  %v726_v40 = vmax.f32 %v662_v34, 0.0 }
  0xe4   :  { %805 = vst [vmem:[%s1724_s4 + $0x138] sm:$0xff] %v741_v37 }
  0xe5   :  { %821 = vst [vmem:[%s1724_s4 + $0x1b8] sm:$0xff] %v757_v38  ;;  %v450_v44 = vpop.f32.mrf.mxu2  ;;  %v490_v45 = vpop.f32.mrf.mxu3 }
  0xe6   :  { %774 = vst [vmem:[%s1724_s4 + $0x40] sm:$0xff] %v710_v39  ;;  %v451_v48 = vadd.f32 %v1372_v42, %v450_v44  ;;  %v491_v49 = vadd.f32 %v1372_v42, %v490_v45  ;;  %v372_v50 = vpop.f32.mrf.mxu0  ;;  %v412_v51 = vpop.f32.mrf.mxu1  ;;  %v1121_v45 = vunpack.c.h.bf16 %v1182_v16 }
  0xe7   :  { %790 = vst [vmem:[%s1724_s4 + $0xc0] sm:$0xff] %v726_v40  ;;  %v373_v52 = vadd.f32 %v1372_v42, %v372_v50  ;;  %v413_v53 = vadd.f32 %v1372_v42, %v412_v51  ;;  %v1167_v40 = vld [vmem:[%s1723_s3 + $0x30] sm:$0xff]  }
  0xe8   :  { %v678_v54 = vadd.f32 %v1116_v41, %v451_v48  ;;  %v694_v55 = vadd.f32 %v1148_v43, %v491_v49  ;;  %v1175_v41 = vld [vmem:[%s1723_s3 + $0x70] sm:$0xff]   ;;  %v1060_v49 = vunpack.c.l.bf16 %v1167_v40 }
  0xe9   :  { %v647_v56 = vadd.f32 %v1053_v46, %v373_v52  ;;  %v663_v57 = vadd.f32 %v1085_v47, %v413_v53  ;;  %v1153_v46 = vunpack.c.h.bf16 %v1190_v17  ;;  %v1092_v50 = vunpack.c.l.bf16 %v1175_v41 }
  0xea   :  { %v742_v58 = vmax.f32 %v678_v54, 0.0  ;;  %v758_v59 = vmax.f32 %v694_v55, 0.0 }
  0xeb   :  { %v711_v62 = vmax.f32 %v647_v56, 0.0  ;;  %v727_v63 = vmax.f32 %v663_v57, 0.0 }
  0xec   :  { %806 = vst [vmem:[%s1724_s4 + $0x140] sm:$0xff] %v742_v58 }
  0xed   :  { %822 = vst [vmem:[%s1724_s4 + $0x1c0] sm:$0xff] %v758_v59  ;;  %v452_v2 = vpop.f32.mrf.mxu2  ;;  %v492_v3 = vpop.f32.mrf.mxu3 }
  0xee   :  { %775 = vst [vmem:[%s1724_s4 + $0x48] sm:$0xff] %v711_v62  ;;  %v453_v6 = vadd.f32 %v1372_v42, %v452_v2  ;;  %v493_v7 = vadd.f32 %v1372_v42, %v492_v3  ;;  %v375_v8 = vpop.f32.mrf.mxu0  ;;  %v415_v9 = vpop.f32.mrf.mxu1  ;;  %v1191_v62 = vld [vmem:[%s1723_s3 + $0xf0] sm:$0xff]   ;;  %v1124_v3 = vunpack.c.l.bf16 %v1183_v61 }
  0xef   :  { %791 = vst [vmem:[%s1724_s4 + $0xc8] sm:$0xff] %v727_v63  ;;  %v376_v10 = vadd.f32 %v1372_v42, %v375_v8  ;;  %v416_v11 = vadd.f32 %v1372_v42, %v415_v9  ;;  %v1093_v8 = vunpack.c.h.bf16 %v1175_v41  ;;  %v1184_v41 = vld [vmem:[%s1723_s3 + $0xb8] sm:$0xff]  }
  0xf0   :  { %v679_v12 = vadd.f32 %v1117_v0, %v453_v6  ;;  %v695_v13 = vadd.f32 %v1149_v1, %v493_v7  ;;  %v1061_v7 = vunpack.c.h.bf16 %v1167_v40 }
  0xf1   :  { %v648_v14 = vadd.f32 %v1056_v4, %v376_v10  ;;  %v664_v15 = vadd.f32 %v1088_v5, %v416_v11  ;;  %v1156_v4 = vunpack.c.l.bf16 %v1191_v62 }
  0xf2   :  { %v743_v18 = vmax.f32 %v679_v12, 0.0  ;;  %v759_v19 = vmax.f32 %v695_v13, 0.0 }
  0xf3   :  { %v712_v20 = vmax.f32 %v648_v14, 0.0  ;;  %v728_v21 = vmax.f32 %v664_v15, 0.0 }
  0xf4   :  { %807 = vst [vmem:[%s1724_s4 + $0x148] sm:$0xff] %v743_v18 }
  0xf5   :  { %823 = vst [vmem:[%s1724_s4 + $0x1c8] sm:$0xff] %v759_v19  ;;  %v455_v24 = vpop.f32.mrf.mxu2  ;;  %v495_v25 = vpop.f32.mrf.mxu3 }
  0xf6   :  { %776 = vst [vmem:[%s1724_s4 + $0x50] sm:$0xff] %v712_v20  ;;  %v456_v28 = vadd.f32 %v1372_v42, %v455_v24  ;;  %v496_v29 = vadd.f32 %v1372_v42, %v495_v25  ;;  %v377_v30 = vpop.f32.mrf.mxu0  ;;  %v417_v31 = vpop.f32.mrf.mxu1  ;;  %v1125_v25 = vunpack.c.h.bf16 %v1183_v61 }
  0xf7   :  { %792 = vst [vmem:[%s1724_s4 + $0xd0] sm:$0xff] %v728_v21  ;;  %v378_v32 = vadd.f32 %v1372_v42, %v377_v30  ;;  %v418_v33 = vadd.f32 %v1372_v42, %v417_v31  ;;  %v1168_v21 = vld [vmem:[%s1723_s3 + $0x38] sm:$0xff]  }
  0xf8   :  { %v680_v34 = vadd.f32 %v1120_v22, %v456_v28  ;;  %v696_v35 = vadd.f32 %v1152_v23, %v496_v29  ;;  %v1176_v22 = vld [vmem:[%s1723_s3 + $0x78] sm:$0xff]   ;;  %v1064_v29 = vunpack.c.l.bf16 %v1168_v21 }
  0xf9   :  { %v649_v36 = vadd.f32 %v1057_v26, %v378_v32  ;;  %v665_v37 = vadd.f32 %v1089_v27, %v418_v33  ;;  %v1157_v26 = vunpack.c.h.bf16 %v1191_v62  ;;  %v1096_v30 = vunpack.c.l.bf16 %v1176_v22 }
  0xfa   :  { %v744_v38 = vmax.f32 %v680_v34, 0.0  ;;  %v760_v39 = vmax.f32 %v696_v35, 0.0 }
  0xfb   :  { %v713_v43 = vmax.f32 %v649_v36, 0.0  ;;  %v729_v44 = vmax.f32 %v665_v37, 0.0 }
  0xfc   :  { %808 = vst [vmem:[%s1724_s4 + $0x150] sm:$0xff] %v744_v38 }
  0xfd   :  { %824 = vst [vmem:[%s1724_s4 + $0x1d0] sm:$0xff] %v760_v39  ;;  %v457_v47 = vpop.f32.mrf.mxu2  ;;  %v497_v48 = vpop.f32.mrf.mxu3 }
  0xfe   :  { %777 = vst [vmem:[%s1724_s4 + $0x58] sm:$0xff] %v713_v43  ;;  %v458_v51 = vadd.f32 %v1372_v42, %v457_v47  ;;  %v498_v52 = vadd.f32 %v1372_v42, %v497_v48  ;;  %v380_v53 = vpop.f32.mrf.mxu0  ;;  %v420_v54 = vpop.f32.mrf.mxu1  ;;  %v1192_v43 = vld [vmem:[%s1723_s3 + $0xf8] sm:$0xff]   ;;  %v1128_v48 = vunpack.c.l.bf16 %v1184_v41 }
  0xff   :  { %793 = vst [vmem:[%s1724_s4 + $0xd8] sm:$0xff] %v729_v44  ;;  %v381_v55 = vadd.f32 %v1372_v42, %v380_v53  ;;  %v421_v56 = vadd.f32 %v1372_v42, %v420_v54  ;;  %v1097_v53 = vunpack.c.h.bf16 %v1176_v22 }
 0x100   :  { %v681_v57 = vadd.f32 %v1121_v45, %v458_v51  ;;  %v697_v58 = vadd.f32 %v1153_v46, %v498_v52  ;;  %v1065_v52 = vunpack.c.h.bf16 %v1168_v21 }
 0x101   :  { %v650_v59 = vadd.f32 %v1060_v49, %v381_v55  ;;  %v666_v60 = vadd.f32 %v1092_v50, %v421_v56  ;;  %v1160_v49 = vunpack.c.l.bf16 %v1192_v43 }
 0x102   :  { %v745_v63 = vmax.f32 %v681_v57, 0.0  ;;  %v761_v0 = vmax.f32 %v697_v58, 0.0 }
 0x103   :  { %v714_v1 = vmax.f32 %v650_v59, 0.0  ;;  %v730_v2 = vmax.f32 %v666_v60, 0.0 }
 0x104   :  { %809 = vst [vmem:[%s1724_s4 + $0x158] sm:$0xff] %v745_v63 }
 0x105   :  { %825 = vst [vmem:[%s1724_s4 + $0x1d8] sm:$0xff] %v761_v0  ;;  %v460_v5 = vpop.f32.mrf.mxu2  ;;  %v500_v6 = vpop.f32.mrf.mxu3 }
 0x106   :  { %778 = vst [vmem:[%s1724_s4 + $0x60] sm:$0xff] %v714_v1  ;;  %v461_v9 = vadd.f32 %v1372_v42, %v460_v5  ;;  %v501_v10 = vadd.f32 %v1372_v42, %v500_v6  ;;  %v382_v11 = vpop.f32.mrf.mxu0  ;;  %v422_v12 = vpop.f32.mrf.mxu1  ;;  %v1161_v5 = vunpack.c.h.bf16 %v1192_v43 }
 0x107   :  { %794 = vst [vmem:[%s1724_s4 + $0xe0] sm:$0xff] %v730_v2  ;;  %v383_v13 = vadd.f32 %v1372_v42, %v382_v11  ;;  %v423_v14 = vadd.f32 %v1372_v42, %v422_v12 }
 0x108   :  { %v682_v15 = vadd.f32 %v1124_v3, %v461_v9  ;;  %v698_v16 = vadd.f32 %v1156_v4, %v501_v10  ;;  %v1129_v4 = vunpack.c.h.bf16 %v1184_v41 }
 0x109   :  { %v651_v17 = vadd.f32 %v1061_v7, %v383_v13  ;;  %v667_v18 = vadd.f32 %v1093_v8, %v423_v14 }
 0x10a   :  { %v746_v19 = vmax.f32 %v682_v15, 0.0  ;;  %v762_v20 = vmax.f32 %v698_v16, 0.0 }
 0x10b   :  { %v715_v23 = vmax.f32 %v651_v17, 0.0  ;;  %v731_v24 = vmax.f32 %v667_v18, 0.0 }
 0x10c   :  { %810 = vst [vmem:[%s1724_s4 + $0x160] sm:$0xff] %v746_v19 }
 0x10d   :  { %826 = vst [vmem:[%s1724_s4 + $0x1e0] sm:$0xff] %v762_v20  ;;  %v462_v27 = vpop.f32.mrf.mxu2  ;;  %v502_v28 = vpop.f32.mrf.mxu3 }
 0x10e   :  { %779 = vst [vmem:[%s1724_s4 + $0x68] sm:$0xff] %v715_v23  ;;  %v463_v31 = vadd.f32 %v1372_v42, %v462_v27  ;;  %v503_v32 = vadd.f32 %v1372_v42, %v502_v28  ;;  %v385_v33 = vpop.f32.mrf.mxu0  ;;  %v425_v34 = vpop.f32.mrf.mxu1 }
 0x10f   :  { %795 = vst [vmem:[%s1724_s4 + $0xe8] sm:$0xff] %v731_v24  ;;  %v386_v35 = vadd.f32 %v1372_v42, %v385_v33  ;;  %v426_v36 = vadd.f32 %v1372_v42, %v425_v34 }
 0x110   :  { %v683_v37 = vadd.f32 %v1125_v25, %v463_v31  ;;  %v699_v38 = vadd.f32 %v1157_v26, %v503_v32 }
 0x111   :  { %v652_v39 = vadd.f32 %v1064_v29, %v386_v35  ;;  %v668_v40 = vadd.f32 %v1096_v30, %v426_v36 }
 0x112   :  { %v747_v44 = vmax.f32 %v683_v37, 0.0  ;;  %v763_v45 = vmax.f32 %v699_v38, 0.0 }
 0x113   :  { %v716_v46 = vmax.f32 %v652_v39, 0.0  ;;  %v732_v47 = vmax.f32 %v668_v40, 0.0 }
 0x114   :  { %811 = vst [vmem:[%s1724_s4 + $0x168] sm:$0xff] %v747_v44 }
 0x115   :  { %827 = vst [vmem:[%s1724_s4 + $0x1e8] sm:$0xff] %v763_v45  ;;  %v465_v50 = vpop.f32.mrf.mxu2  ;;  %v505_v51 = vpop.f32.mrf.mxu3 }
 0x116   :  { %780 = vst [vmem:[%s1724_s4 + $0x70] sm:$0xff] %v716_v46  ;;  %v466_v54 = vadd.f32 %v1372_v42, %v465_v50  ;;  %v506_v55 = vadd.f32 %v1372_v42, %v505_v51  ;;  %v387_v56 = vpop.f32.mrf.mxu0  ;;  %v427_v57 = vpop.f32.mrf.mxu1 }
 0x117   :  { %796 = vst [vmem:[%s1724_s4 + $0xf0] sm:$0xff] %v732_v47  ;;  %v388_v58 = vadd.f32 %v1372_v42, %v387_v56  ;;  %v428_v59 = vadd.f32 %v1372_v42, %v427_v57 }
 0x118   :  { %v684_v60 = vadd.f32 %v1128_v48, %v466_v54  ;;  %v700_v61 = vadd.f32 %v1160_v49, %v506_v55 }
 0x119   :  { %v653_v62 = vadd.f32 %v1065_v52, %v388_v58  ;;  %v669_v63 = vadd.f32 %v1097_v53, %v428_v59 }
 0x11a   :  { %v748_v0 = vmax.f32 %v684_v60, 0.0  ;;  %v764_v1 = vmax.f32 %v700_v61, 0.0 }
 0x11b   :  { %v717_v2 = vmax.f32 %v653_v62, 0.0  ;;  %v733_v3 = vmax.f32 %v669_v63, 0.0 }
 0x11c   :  { %812 = vst [vmem:[%s1724_s4 + $0x170] sm:$0xff] %v748_v0 }
 0x11d   :  { %828 = vst [vmem:[%s1724_s4 + $0x1f0] sm:$0xff] %v764_v1  ;;  %v467_v6 = vpop.f32.mrf.mxu2  ;;  %v507_v7 = vpop.f32.mrf.mxu3 }
 0x11e   :  { %781 = vst [vmem:[%s1724_s4 + $0x78] sm:$0xff] %v717_v2  ;;  %v468_v8 = vadd.f32 %v1372_v42, %v467_v6  ;;  %v508_v9 = vadd.f32 %v1372_v42, %v507_v7 }
 0x11f   :  { %797 = vst [vmem:[%s1724_s4 + $0xf8] sm:$0xff] %v733_v3 }
 0x120   :  { %v685_v10 = vadd.f32 %v1129_v4, %v468_v8  ;;  %v701_v11 = vadd.f32 %v1161_v5, %v508_v9 }
 0x122   :  { %v749_v12 = vmax.f32 %v685_v10, 0.0  ;;  %v765_v13 = vmax.f32 %v701_v11, 0.0 }
 0x124   :  { %813 = vst [vmem:[%s1724_s4 + $0x178] sm:$0xff] %v749_v12 }
 0x125   :  { %829 = vst [vmem:[%s1724_s4 + $0x1f8] sm:$0xff] %v765_v13 }

// kernel: bottleneck_forward.4
= control target key start
LH: loop header
LB: loop body
LE: loop exit
PB: predicated region body
PF: predicated region fallthrough
CT: control target
= control target key end

     0   :  { %s4338_s12 = smov 0   ;;  %s4340_s13 = smov 0   ;;  %s5132_s0 = inlined_call_operand.vmem [shape: bf16[2,18,16,384], index: 0, kind: input, shape index: {}]   ;;  %s5133_s1 = inlined_call_operand.vmem [shape: bf16[3,384,128], index: 1, kind: input, shape index: {}]   ;;  %s5134_s2 = inlined_call_operand.vmem [shape: f32[1,128], index: 2, kind: input, shape index: {}]   ;;  %s5135_s3 = inlined_call_operand.vmem [shape: bf16[2,16,16,128], index: 3, kind: output, shape index: {}]  }
   0x1   :  { %s4342_s14 = smov 0  }
   0x2 LB: > { %s25_s15 = sadd.s32 1, %s4312_s13  ;;  %p2838_p0 = scmp.ge.s32.totalorder %s4316_s14, 1  ;;  %s4316_s14 = sphi %s4342_s14, %s13_s14   ;;  %s4312_s13 = sphi %s4340_s13, %s5137_s13   ;;  %s4308_s12 = sphi %s4338_s12, %s5136_s12  }
   0x3   : > { %p27_p1 = scmp.ge.s32.totalorder %s25_s15, 2  ;;  %p168_p2 = scmp.lt.s32.totalorder %s4316_s14, 3 }
   0x5   : > { %s5139_s15 = smov (%p27_p1, %s25_s15), 0  ;;  %p169_p3 = pnand %p2838_p0, %p168_p2 }
   0x6   : > { %p202_p4 = scmp.lt.s32.totalorder (!%p169_p3), %s4308_s12, 1 }
   0x7   : > { %172 = sbr.rel (%p169_p3) target bundleno = 758 (0x2f6), region = 32 }
   0xc   : > { %v4060_v0 = vld [vmem:[%s5133_s1 + $0xf8] sm:$0xff]  ;;  %v4059_v1 = vld [vmem:[%s5133_s1 + $0xf0] sm:$0xff]  ;;  %v4058_v2 = vld [vmem:[%s5133_s1 + $0xe8] sm:$0xff]  ;;  %s5141_s12 = smov (!%p202_p4, %s4308_s12), 1 }
   0xd   : > { %848 = vmatpush.bf16.msra.mxu0 %v4060_v0  ;;  %4244 = vmatpush.bf16.msra.mxu1 %v4060_v0  ;;  %v4057_v3 = vld [vmem:[%s5133_s1 + $0xe0] sm:$0xff]  ;;  %v4056_v4 = vld [vmem:[%s5133_s1 + $0xd8] sm:$0xff]  ;;  %v4055_v5 = vld [vmem:[%s5133_s1 + $0xd0] sm:$0xff]  ;;  %s4268_s28 = smul.u32 432, %s5141_s12  ;;  %s3932_s7 = sshll.u32 %s5141_s12, 7 }
   0xe   : > { %4245 = vmatpush.bf16.msra.mxu2 %v4060_v0  ;;  %4246 = vmatpush.bf16.msra.mxu3 %v4060_v0  ;;  %v4054_v6 = vld [vmem:[%s5133_s1 + $0xc8] sm:$0xff]  ;;  %v4053_v7 = vld [vmem:[%s5133_s1 + $0xc0] sm:$0xff]  ;;  %v4076_v16 = vld [vmem:[%s5133_s1 + $0x178] sm:$0xff]  ;;  %s4997_s10 = scalar_lea.vmem %s5135_s3, %s3932_s7 }
   0xf   : > { %s4387_s6 = scalar_lea.vmem %s5132_s0, %s4268_s28  ;;  %v3988_v17 = vld [vmem:[%s5133_s1 + $0x38] sm:$0xff]  ;;  %v4075_v24 = vld [vmem:[%s5133_s1 + $0x170] sm:$0xff]  ;;  %v4074_v28 = vld [vmem:[%s5133_s1 + $0x168] sm:$0xff] }
  0x10   : > { %v2956_v8 = vld [vmem:[%s4387_s6 + $0x18] sm:$0xf]  ;;  %v4006_v9 = vld [vmem:[%s4387_s6 + $0x20] sm:$0xf0]  ;;  %v3987_v25 = vld [vmem:[%s5133_s1 + $0x30] sm:$0xff] }
  0x11   : > { %849 = vmatpush.bf16.msra.mxu0 %v4059_v1  ;;  %4247 = vmatpush.bf16.msra.mxu1 %v4059_v1  ;;  %v3004_v10 = vld [vmem:[%s4387_s6 + $0x78] sm:$0xf]  ;;  %v4018_v11 = vld [vmem:[%s4387_s6 + $0x80] sm:$0xf0]  ;;  %v2957_v18 = vor.u32 %v4006_v9, %v2956_v8  ;;  %v4067_v26 = vld [vmem:[%s5133_s1 + $0x130] sm:$0xff] }
  0x12   : > { %4248 = vmatpush.bf16.msra.mxu2 %v4059_v1  ;;  %4249 = vmatpush.bf16.msra.mxu3 %v4059_v1  ;;  %v3052_v12 = vld [vmem:[%s4387_s6 + $0xd8] sm:$0xf]  ;;  %v4030_v13 = vld [vmem:[%s4387_s6 + $0xe0] sm:$0xf0]  ;;  %v3005_v19 = vor.u32 %v4018_v11, %v3004_v10  ;;  %v3995_v27 = vld [vmem:[%s5133_s1 + $0x70] sm:$0xff] }
  0x13   : > { %v3100_v14 = vld [vmem:[%s4387_s6 + $0x138] sm:$0xf]  ;;  %v4042_v15 = vld [vmem:[%s4387_s6 + $0x140] sm:$0xf0]  ;;  %v3053_v20 = vor.u32 %v4030_v13, %v3052_v12  ;;  %v3986_v29 = vld [vmem:[%s5133_s1 + $0x28] sm:$0xff] }
  0x14   : > { %v3101_v21 = vor.u32 %v4042_v15, %v3100_v14  ;;  %v4068_v22 = vld [vmem:[%s5133_s1 + $0x138] sm:$0xff]  ;;  %v4066_v30 = vld [vmem:[%s5133_s1 + $0x128] sm:$0xff]  ;;  %v2968_v32 = vld [vmem:[%s4387_s6 + $0x30] sm:$0xf] }
  0x15   : > { %850 = vmatpush.bf16.msra.mxu0 %v4058_v2  ;;  %4250 = vmatpush.bf16.msra.mxu1 %v4058_v2  ;;  %v3996_v23 = vld [vmem:[%s5133_s1 + $0x78] sm:$0xff]  ;;  %v3994_v31 = vld [vmem:[%s5133_s1 + $0x68] sm:$0xff]  ;;  %v4073_v33 = vld [vmem:[%s5133_s1 + $0x160] sm:$0xff] }
  0x16   : > { %4251 = vmatpush.bf16.msra.mxu2 %v4058_v2  ;;  %4252 = vmatpush.bf16.msra.mxu3 %v4058_v2  ;;  %v3985_v34 = vld [vmem:[%s5133_s1 + $0x20] sm:$0xff]  ;;  %v4009_v35 = vld [vmem:[%s4387_s6 + $0x38] sm:$0xf0]  ;;  %v3016_v36 = vld [vmem:[%s4387_s6 + $0x90] sm:$0xf] }
  0x17   : > { %v4021_v37 = vld [vmem:[%s4387_s6 + $0x98] sm:$0xf0]  ;;  %v3064_v38 = vld [vmem:[%s4387_s6 + $0xf0] sm:$0xf]  ;;  %v4065_v42 = vld [vmem:[%s5133_s1 + $0x120] sm:$0xff]  ;;  %v2969_v46 = vor.u32 %v4009_v35, %v2968_v32 }
  0x18   : > { %v4033_v39 = vld [vmem:[%s4387_s6 + $0xf8] sm:$0xf0]  ;;  %v3112_v40 = vld [vmem:[%s4387_s6 + $0x150] sm:$0xf]  ;;  %v3993_v43 = vld [vmem:[%s5133_s1 + $0x60] sm:$0xff]  ;;  %v3017_v47 = vor.u32 %v4021_v37, %v3016_v36 }
  0x19   : > { %851 = vmatpush.bf16.msra.mxu0 %v4057_v3  ;;  %4253 = vmatpush.bf16.msra.mxu1 %v4057_v3  ;;  %v4045_v41 = vld [vmem:[%s4387_s6 + $0x158] sm:$0xf0]  ;;  %v3065_v48 = vor.u32 %v4033_v39, %v3064_v38  ;;  %v4071_v52 = vld [vmem:[%s5133_s1 + $0x150] sm:$0xff]  ;;  %v4070_v56 = vld [vmem:[%s5133_s1 + $0x148] sm:$0xff] }
  0x1a   : > { %4254 = vmatpush.bf16.msra.mxu2 %v4057_v3  ;;  %4255 = vmatpush.bf16.msra.mxu3 %v4057_v3  ;;  %v4072_v44 = vld [vmem:[%s5133_s1 + $0x158] sm:$0xff]  ;;  %v3113_v49 = vor.u32 %v4045_v41, %v3112_v40  ;;  %v3983_v53 = vld [vmem:[%s5133_s1 + $0x10] sm:$0xff]  ;;  %v3982_v57 = vld [vmem:[%s5133_s1 + $0x8] sm:$0xff] }
  0x1b   : > { %v3984_v45 = vld [vmem:[%s5133_s1 + $0x18] sm:$0xff]  ;;  %v4063_v54 = vld [vmem:[%s5133_s1 + $0x110] sm:$0xff]  ;;  %v4062_v58 = vld [vmem:[%s5133_s1 + $0x108] sm:$0xff] }
  0x1c   : > { %v4064_v50 = vld [vmem:[%s5133_s1 + $0x118] sm:$0xff]  ;;  %v3991_v55 = vld [vmem:[%s5133_s1 + $0x50] sm:$0xff]  ;;  %v3990_v59 = vld [vmem:[%s5133_s1 + $0x48] sm:$0xff] }
  0x1d   : > { %852 = vmatpush.bf16.msra.mxu0 %v4056_v4  ;;  %4256 = vmatpush.bf16.msra.mxu1 %v4056_v4  ;;  %v3992_v51 = vld [vmem:[%s5133_s1 + $0x58] sm:$0xff]  ;;  %v2980_v60 = vld [vmem:[%s4387_s6 + $0x48] sm:$0xf]  ;;  %v4069_v61 = vld [vmem:[%s5133_s1 + $0x140] sm:$0xff] }
  0x1e   : > { %4257 = vmatpush.bf16.msra.mxu2 %v4056_v4  ;;  %4258 = vmatpush.bf16.msra.mxu3 %v4056_v4  ;;  %v3981_v62 = vld [vmem:[%s5133_s1] sm:$0xff]  ;;  %v4012_v63 = vld [vmem:[%s4387_s6 + $0x50] sm:$0xf0]  ;;  %v3028_v0 = vld [vmem:[%s4387_s6 + $0xa8] sm:$0xf] }
  0x1f   : > { %v4024_v1 = vld [vmem:[%s4387_s6 + $0xb0] sm:$0xf0]  ;;  %v3076_v2 = vld [vmem:[%s4387_s6 + $0x108] sm:$0xf]  ;;  %v2981_v8 = vor.u32 %v4012_v63, %v2980_v60  ;;  %v4132_v12 = vld [vmem:[%s5133_s1 + $0x1b8] sm:$0xff] }
  0x20   : > { %v4036_v3 = vld [vmem:[%s4387_s6 + $0x110] sm:$0xf0]  ;;  %v3124_v4 = vld [vmem:[%s4387_s6 + $0x168] sm:$0xf]  ;;  %v3029_v9 = vor.u32 %v4024_v1, %v3028_v0  ;;  %v4140_v13 = vld [vmem:[%s5133_s1 + $0x1f8] sm:$0xff] }
  0x21   : > { %853 = vmatpush.bf16.msra.mxu0 %v4055_v5  ;;  %4259 = vmatpush.bf16.msra.mxu1 %v4055_v5  ;;  %v3077_v10 = vor.u32 %v4036_v3, %v3076_v2  ;;  %v4004_v14 = vld [vmem:[%s5133_s1 + $0xb8] sm:$0xff]  ;;  %v3246_v32 = vld [vmem:[%s4387_s6 + $0xc] sm:$0xf0]  ;;  %v3934_v35 = vld [vmem:[%s4387_s6 + $0x8] sm:$0xf0] }
  0x22   : > { %4260 = vmatpush.bf16.msra.mxu2 %v4055_v5  ;;  %4261 = vmatpush.bf16.msra.mxu3 %v4055_v5  ;;  %v4048_v5 = vld [vmem:[%s4387_s6 + $0x170] sm:$0xf0]  ;;  %v4148_v15 = vld [vmem:[%s5133_s1 + $0x238] sm:$0xff]  ;;  %v3270_v60 = vld [vmem:[%s4387_s6 + $0x3c] sm:$0xf0] }
  0x23   : > { %v3125_v11 = vor.u32 %v4048_v5, %v3124_v4  ;;  %v4131_v40 = vld [vmem:[%s5133_s1 + $0x1b0] sm:$0xff]  ;;  %v3940_v63 = vld [vmem:[%s4387_s6 + $0x38] sm:$0xf0]  ;;  %v4130_v4 = vld [vmem:[%s5133_s1 + $0x1a8] sm:$0xff] }
  0x24   : > { %v4139_v41 = vld [vmem:[%s5133_s1 + $0x1f0] sm:$0xff]  ;;  %v4138_v5 = vld [vmem:[%s5133_s1 + $0x1e8] sm:$0xff] }
  0x25   : > { %854 = vmatpush.bf16.msra.mxu0 %v4054_v6  ;;  %4262 = vmatpush.bf16.msra.mxu1 %v4054_v6 }
  0x26   : > { %4263 = vmatpush.bf16.msra.mxu2 %v4054_v6  ;;  %4264 = vmatpush.bf16.msra.mxu3 %v4054_v6  ;;  %v4061_v6 = vld [vmem:[%s5133_s1 + $0x100] sm:$0xff] }
  0x29   : > { %855 = vmatpush.bf16.msra.mxu0 %v4053_v7  ;;  %4265 = vmatpush.bf16.msra.mxu1 %v4053_v7 }
  0x2a   : > { %4266 = vmatpush.bf16.msra.mxu2 %v4053_v7  ;;  %4267 = vmatpush.bf16.msra.mxu3 %v4053_v7  ;;  %v3989_v7 = vld [vmem:[%s5133_s1 + $0x40] sm:$0xff] }
  0x2c   : > { %856 = vmatmul.bf16.vlgmr.msra.gmra.mxu0 %v2957_v18  ;;  %876 = vmatmul.bf16.vlgmr.msra.gmra.mxu1 %v3005_v19  ;;  %v3040_v18 = vld [vmem:[%s4387_s6 + $0xc0] sm:$0xf]  ;;  %v4027_v19 = vld [vmem:[%s4387_s6 + $0xc8] sm:$0xf0] }
  0x2d   : > { %896 = vmatmul.bf16.vlgmr.msra.gmra.mxu2 %v3053_v20  ;;  %916 = vmatmul.bf16.vlgmr.msra.gmra.mxu3 %v3101_v21  ;;  %v3088_v20 = vld [vmem:[%s4387_s6 + $0x120] sm:$0xf]  ;;  %v4039_v21 = vld [vmem:[%s4387_s6 + $0x128] sm:$0xf0] }
  0x2e   : > { %1026 = vmatpush.bf16.msrb.mxu2 %v4076_v16  ;;  %1515 = vmatpush.bf16.msrb.mxu3 %v3988_v17  ;;  %v2992_v16 = vld [vmem:[%s4387_s6 + $0x60] sm:$0xf]  ;;  %v4015_v17 = vld [vmem:[%s4387_s6 + $0x68] sm:$0xf0] }
  0x2f   : > { %937 = vmatpush.bf16.msrb.mxu1 %v4068_v22  ;;  %1604 = vmatpush.bf16.msrb.mxu0 %v3996_v23  ;;  %v3136_v22 = vld [vmem:[%s4387_s6 + $0x180] sm:$0xf]  ;;  %v4051_v23 = vld [vmem:[%s4387_s6 + $0x188] sm:$0xf0] }
  0x32   : > { %1027 = vmatpush.bf16.msrb.mxu2 %v4075_v24  ;;  %1516 = vmatpush.bf16.msrb.mxu3 %v3987_v25  ;;  %v2993_v24 = vor.u32 %v4015_v17, %v2992_v16  ;;  %v3041_v25 = vor.u32 %v4027_v19, %v3040_v18 }
  0x33   : > { %938 = vmatpush.bf16.msrb.mxu1 %v4067_v26  ;;  %1605 = vmatpush.bf16.msrb.mxu0 %v3995_v27  ;;  %v3089_v26 = vor.u32 %v4039_v21, %v3088_v20  ;;  %v3137_v27 = vor.u32 %v4051_v23, %v3136_v22  ;;  %v4017_v20 = vld [vmem:[%s4387_s6 + $0x7c] sm:$0xf]  ;;  %v3006_v21 = vld [vmem:[%s4387_s6 + $0x84] sm:$0xf0]  ;;  %v3012_v22 = vld [vmem:[%s4387_s6 + $0x80] sm:$0xf] }
  0x34   : > { %v3945_v23 = vld [vmem:[%s4387_s6 + $0x64] sm:$0xf] }
  0x36   : > { %1028 = vmatpush.bf16.msrb.mxu2 %v4074_v28  ;;  %1517 = vmatpush.bf16.msrb.mxu3 %v3986_v29  ;;  %v4005_v28 = vld [vmem:[%s4387_s6 + $0x1c] sm:$0xf]  ;;  %v2958_v29 = vld [vmem:[%s4387_s6 + $0x24] sm:$0xf0] }
  0x37   : > { %939 = vmatpush.bf16.msrb.mxu1 %v4066_v30  ;;  %1606 = vmatpush.bf16.msrb.mxu0 %v3994_v31  ;;  %v2964_v30 = vld [vmem:[%s4387_s6 + $0x20] sm:$0xf]  ;;  %v3933_v31 = vld [vmem:[%s4387_s6 + $0x4] sm:$0xf]  ;;  %v2961_v36 = vor.u32 %v4005_v28, %v2958_v29  ;;  %v3009_v28 = vor.u32 %v4017_v20, %v3006_v21  ;;  %v4000_v20 = vld [vmem:[%s5133_s1 + $0x98] sm:$0xff] }
  0x38   : > { %v3249_v37 = vor.u32 %v3933_v31, %v3246_v32  ;;  %v4144_v21 = vld [vmem:[%s5133_s1 + $0x218] sm:$0xff] }
  0x3a   : > { %1029 = vmatpush.bf16.msrb.mxu2 %v4073_v33  ;;  %1518 = vmatpush.bf16.msrb.mxu3 %v3985_v34  ;;  %v4007_v33 = vld [vmem:[%s4387_s6 + $0x28] sm:$0xf0]  ;;  %v3244_v34 = vld [vmem:[%s4387_s6] sm:$0xf] }
  0x3b   : > { %940 = vmatpush.bf16.msrb.mxu1 %v4065_v42  ;;  %1607 = vmatpush.bf16.msrb.mxu0 %v3993_v43  ;;  %v2965_v38 = vor.u32 %v4007_v33, %v2964_v30  ;;  %v3245_v39 = vor.u32 %v3934_v35, %v3244_v34  ;;  %v4003_v42 = vld [vmem:[%s5133_s1 + $0xb0] sm:$0xff]  ;;  %v4129_v34 = vld [vmem:[%s5133_s1 + $0x1a0] sm:$0xff] }
  0x3c   : > { %861 = vmatmul.bf16.gmra.mxu0 %v2969_v46  ;;  %881 = vmatmul.bf16.gmra.mxu1 %v3017_v47  ;;  %v4147_v43 = vld [vmem:[%s5133_s1 + $0x230] sm:$0xff]  ;;  %v2976_v46 = vld [vmem:[%s4387_s6 + $0x38] sm:$0xf]  ;;  %v3936_v47 = vld [vmem:[%s4387_s6 + $0x1c] sm:$0xf] }
  0x3d   : > { %901 = vmatmul.bf16.gmra.mxu2 %v3065_v48  ;;  %921 = vmatmul.bf16.gmra.mxu3 %v3113_v49  ;;  %v3258_v48 = vld [vmem:[%s4387_s6 + $0x24] sm:$0xf0]  ;;  %v4010_v49 = vld [vmem:[%s4387_s6 + $0x40] sm:$0xf0] }
  0x3e   : > { %1030 = vmatpush.bf16.msrb.mxu2 %v4072_v44  ;;  %1519 = vmatpush.bf16.msrb.mxu3 %v3984_v45  ;;  %v4008_v44 = vld [vmem:[%s4387_s6 + $0x34] sm:$0xf]  ;;  %v2970_v45 = vld [vmem:[%s4387_s6 + $0x3c] sm:$0xf0] }
  0x3f   : > { %941 = vmatpush.bf16.msrb.mxu1 %v4064_v50  ;;  %1608 = vmatpush.bf16.msrb.mxu0 %v3992_v51  ;;  %v3256_v50 = vld [vmem:[%s4387_s6 + $0x18] sm:$0xf]  ;;  %v3937_v51 = vld [vmem:[%s4387_s6 + $0x20] sm:$0xf0] }
  0x40   : > { %v4137_v35 = vld [vmem:[%s5133_s1 + $0x1e0] sm:$0xff] }
  0x42   : > { %1031 = vmatpush.bf16.msrb.mxu2 %v4071_v52  ;;  %1520 = vmatpush.bf16.msrb.mxu3 %v3983_v53  ;;  %v2973_v52 = vor.u32 %v4008_v44, %v2970_v45  ;;  %v3261_v53 = vor.u32 %v3936_v47, %v3258_v48  ;;  %v3024_v44 = vld [vmem:[%s4387_s6 + $0x98] sm:$0xf]  ;;  %v3948_v45 = vld [vmem:[%s4387_s6 + $0x7c] sm:$0xf]  ;;  %v4022_v47 = vld [vmem:[%s4387_s6 + $0xa0] sm:$0xf0] }
  0x43   : > { %942 = vmatpush.bf16.msrb.mxu1 %v4063_v54  ;;  %1609 = vmatpush.bf16.msrb.mxu0 %v3991_v55  ;;  %v2977_v54 = vor.u32 %v4010_v49, %v2976_v46  ;;  %v3257_v55 = vor.u32 %v3937_v51, %v3256_v50  ;;  %v3306_v46 = vld [vmem:[%s4387_s6 + $0x84] sm:$0xf0]  ;;  %v3304_v48 = vld [vmem:[%s4387_s6 + $0x78] sm:$0xf]  ;;  %v3949_v49 = vld [vmem:[%s4387_s6 + $0x80] sm:$0xf0] }
  0x46   : > { %1032 = vmatpush.bf16.msrb.mxu2 %v4070_v56  ;;  %1521 = vmatpush.bf16.msrb.mxu3 %v3982_v57  ;;  %v4011_v56 = vld [vmem:[%s4387_s6 + $0x4c] sm:$0xf]  ;;  %v2982_v57 = vld [vmem:[%s4387_s6 + $0x54] sm:$0xf0] }
  0x47   : > { %943 = vmatpush.bf16.msrb.mxu1 %v4062_v58  ;;  %1610 = vmatpush.bf16.msrb.mxu0 %v3990_v59  ;;  %v2988_v58 = vld [vmem:[%s4387_s6 + $0x50] sm:$0xf]  ;;  %v3939_v59 = vld [vmem:[%s4387_s6 + $0x34] sm:$0xf]  ;;  %v2985_v0 = vor.u32 %v4011_v56, %v2982_v57  ;;  %v3025_v56 = vor.u32 %v4022_v47, %v3024_v44  ;;  %v3305_v57 = vor.u32 %v3949_v49, %v3304_v48  ;;  %v4029_v48 = vld [vmem:[%s4387_s6 + $0xdc] sm:$0xf] }
  0x48   : > { %v3273_v1 = vor.u32 %v3939_v59, %v3270_v60  ;;  %v3054_v49 = vld [vmem:[%s4387_s6 + $0xe4] sm:$0xf0] }
  0x4a   : > { %1033 = vmatpush.bf16.msrb.mxu2 %v4069_v61  ;;  %1522 = vmatpush.bf16.msrb.mxu3 %v3981_v62  ;;  %v4013_v61 = vld [vmem:[%s4387_s6 + $0x58] sm:$0xf0]  ;;  %v3268_v62 = vld [vmem:[%s4387_s6 + $0x30] sm:$0xf] }
  0x4b   : > { %944 = vmatpush.bf16.msrb.mxu1 %v4061_v6  ;;  %1611 = vmatpush.bf16.msrb.mxu0 %v3989_v7  ;;  %v2989_v2 = vor.u32 %v4013_v61, %v2988_v58  ;;  %v3269_v3 = vor.u32 %v3940_v63, %v3268_v62  ;;  %v4002_v6 = vld [vmem:[%s5133_s1 + $0xa8] sm:$0xff]  ;;  %v3030_v63 = vld [vmem:[%s4387_s6 + $0xb4] sm:$0xf0] }
  0x4c   : > { %866 = vmatmul.bf16.gmra.mxu0 %v2981_v8  ;;  %886 = vmatmul.bf16.gmra.mxu1 %v3029_v9  ;;  %v4146_v7 = vld [vmem:[%s5133_s1 + $0x228] sm:$0xff]  ;;  %v4014_v8 = vld [vmem:[%s4387_s6 + $0x64] sm:$0xf]  ;;  %v2994_v9 = vld [vmem:[%s4387_s6 + $0x6c] sm:$0xf0] }
  0x4d   : > { %906 = vmatmul.bf16.gmra.mxu2 %v3077_v10  ;;  %926 = vmatmul.bf16.gmra.mxu3 %v3125_v11  ;;  %v3000_v10 = vld [vmem:[%s4387_s6 + $0x68] sm:$0xf]  ;;  %v3942_v11 = vld [vmem:[%s4387_s6 + $0x4c] sm:$0xf]  ;;  %v2997_v16 = vor.u32 %v4014_v8, %v2994_v9 }
  0x4e   : > { %2296 = vmatpush.bf16.msra.mxu2 %v4132_v12  ;;  %2385 = vmatpush.bf16.msra.mxu3 %v4140_v13  ;;  %v3282_v12 = vld [vmem:[%s4387_s6 + $0x54] sm:$0xf0]  ;;  %v4016_v13 = vld [vmem:[%s4387_s6 + $0x70] sm:$0xf0]  ;;  %v4023_v62 = vld [vmem:[%s4387_s6 + $0xac] sm:$0xf] }
  0x4f   : > { %1693 = vmatpush.bf16.msra.mxu1 %v4004_v14  ;;  %2474 = vmatpush.bf16.msra.mxu0 %v4148_v15  ;;  %v3280_v14 = vld [vmem:[%s4387_s6 + $0x48] sm:$0xf]  ;;  %v3943_v15 = vld [vmem:[%s4387_s6 + $0x50] sm:$0xf0]  ;;  %v3285_v17 = vor.u32 %v3942_v11, %v3282_v12  ;;  %v3001_v18 = vor.u32 %v4016_v13, %v3000_v10  ;;  %v3033_v8 = vor.u32 %v4023_v62, %v3030_v63  ;;  %v3340_v62 = vld [vmem:[%s4387_s6 + $0xc0] sm:$0xf] }
  0x50   : > { %v3281_v19 = vor.u32 %v3943_v15, %v3280_v14  ;;  %v4128_v14 = vld [vmem:[%s5133_s1 + $0x198] sm:$0xff]  ;;  %v3958_v63 = vld [vmem:[%s4387_s6 + $0xc8] sm:$0xf0] }
  0x51   : > { %v4136_v15 = vld [vmem:[%s5133_s1 + $0x1d8] sm:$0xff] }
  0x52   : > { %2297 = vmatpush.bf16.msra.mxu2 %v4131_v40  ;;  %2386 = vmatpush.bf16.msra.mxu3 %v4139_v41  ;;  %v4001_v40 = vld [vmem:[%s5133_s1 + $0xa0] sm:$0xff] }
  0x53   : > { %1694 = vmatpush.bf16.msra.mxu1 %v4003_v42  ;;  %2475 = vmatpush.bf16.msra.mxu0 %v4147_v43  ;;  %v4145_v41 = vld [vmem:[%s5133_s1 + $0x220] sm:$0xff]  ;;  %v4020_v42 = vld [vmem:[%s4387_s6 + $0x94] sm:$0xf] }
  0x54   : > { %v3018_v43 = vld [vmem:[%s4387_s6 + $0x9c] sm:$0xf0] }
  0x56   : > { %2298 = vmatpush.bf16.msra.mxu2 %v4130_v4  ;;  %2387 = vmatpush.bf16.msra.mxu3 %v4138_v5  ;;  %v3316_v4 = vld [vmem:[%s4387_s6 + $0x90] sm:$0xf]  ;;  %v3952_v5 = vld [vmem:[%s4387_s6 + $0x98] sm:$0xf0] }
  0x57   : > { %1695 = vmatpush.bf16.msra.mxu1 %v4002_v6  ;;  %2476 = vmatpush.bf16.msra.mxu0 %v4146_v7  ;;  %v3317_v13 = vor.u32 %v3952_v5, %v3316_v4 }
  0x5a   : > { %2299 = vmatpush.bf16.msra.mxu2 %v4129_v34  ;;  %2388 = vmatpush.bf16.msra.mxu3 %v4137_v35 }
  0x5b   : > { %1696 = vmatpush.bf16.msra.mxu1 %v4001_v40  ;;  %2477 = vmatpush.bf16.msra.mxu0 %v4145_v41 }
  0x5c   : > { %871 = vmatmul.bf16.gmra.mxu0 %v2993_v24  ;;  %891 = vmatmul.bf16.gmra.mxu1 %v3041_v25  ;;  %v3294_v24 = vld [vmem:[%s4387_s6 + $0x6c] sm:$0xf0]  ;;  %v4019_v25 = vld [vmem:[%s4387_s6 + $0x88] sm:$0xf0] }
  0x5d   : > { %911 = vmatmul.bf16.gmra.mxu2 %v3089_v26  ;;  %931 = vmatmul.bf16.gmra.mxu3 %v3137_v27  ;;  %v3292_v26 = vld [vmem:[%s4387_s6 + $0x60] sm:$0xf]  ;;  %v3946_v27 = vld [vmem:[%s4387_s6 + $0x68] sm:$0xf0]  ;;  %v3297_v29 = vor.u32 %v3945_v23, %v3294_v24  ;;  %v3013_v32 = vor.u32 %v4019_v25, %v3012_v22  ;;  %v4026_v22 = vld [vmem:[%s4387_s6 + $0xc4] sm:$0xf] }
  0x5e   : > { %v3293_v33 = vor.u32 %v3946_v27, %v3292_v26  ;;  %2300 = vmatpush.bf16.msra.mxu2 %v4128_v14  ;;  %2389 = vmatpush.bf16.msra.mxu3 %v4136_v15  ;;  %v3042_v23 = vld [vmem:[%s4387_s6 + $0xcc] sm:$0xf0]  ;;  %v3048_v24 = vld [vmem:[%s4387_s6 + $0xc8] sm:$0xf]  ;;  %v3954_v25 = vld [vmem:[%s4387_s6 + $0xac] sm:$0xf] }
  0x5f   : > { %v3330_v26 = vld [vmem:[%s4387_s6 + $0xb4] sm:$0xf0]  ;;  %1697 = vmatpush.bf16.msra.mxu1 %v4000_v20  ;;  %2478 = vmatpush.bf16.msra.mxu0 %v4144_v21  ;;  %v4028_v27 = vld [vmem:[%s4387_s6 + $0xd0] sm:$0xf0]  ;;  %v3045_v34 = vor.u32 %v4026_v22, %v3042_v23 }
  0x60   : > { %v3333_v35 = vor.u32 %v3954_v25, %v3330_v26  ;;  %v4135_v14 = vld [vmem:[%s5133_s1 + $0x1d0] sm:$0xff] }
  0x61   : > { %v3999_v25 = vld [vmem:[%s5133_s1 + $0x90] sm:$0xff] }
  0x62   : > { %2390 = vmatpush.bf16.msra.mxu3 %v4135_v14  ;;  %v4143_v26 = vld [vmem:[%s5133_s1 + $0x210] sm:$0xff] }
  0x63   : > { %1698 = vmatpush.bf16.msra.mxu1 %v3999_v25  ;;  %2479 = vmatpush.bf16.msra.mxu0 %v4143_v26  ;;  %v3366_v25 = vld [vmem:[%s4387_s6 + $0xfc] sm:$0xf0] }
  0x6c   : > { %945 = vmatmul.bf16.vlgmr.msrb.gmra.mxu1 %v2961_v36  ;;  %1612 = vmatmul.bf16.vlgmr.msrb.gmra.mxu0 %v3249_v37 }
  0x6d   : > { %1034 = vmatmul.bf16.vlgmr.msrb.gmra.mxu2 %v2965_v38  ;;  %1523 = vmatmul.bf16.vlgmr.msrb.gmra.mxu3 %v3245_v39 }
  0x7c   : > { %950 = vmatmul.bf16.gmra.mxu1 %v2973_v52  ;;  %1617 = vmatmul.bf16.gmra.mxu0 %v3261_v53  ;;  %v3021_v52 = vor.u32 %v4020_v42, %v3018_v43  ;;  %v3309_v53 = vor.u32 %v3948_v45, %v3306_v46  ;;  %v3049_v42 = vor.u32 %v4028_v27, %v3048_v24  ;;  %v4032_v27 = vld [vmem:[%s4387_s6 + $0xf4] sm:$0xf] }
  0x7d   : > { %1039 = vmatmul.bf16.gmra.mxu2 %v2977_v54  ;;  %1528 = vmatmul.bf16.gmra.mxu3 %v3257_v55 }
  0x8c   : > { %955 = vmatmul.bf16.gmra.mxu1 %v2985_v0  ;;  %1622 = vmatmul.bf16.gmra.mxu0 %v3273_v1  ;;  %v3036_v0 = vld [vmem:[%s4387_s6 + $0xb0] sm:$0xf]  ;;  %v3951_v1 = vld [vmem:[%s4387_s6 + $0x94] sm:$0xf] }
  0x8d   : > { %1044 = vmatmul.bf16.gmra.mxu2 %v2989_v2  ;;  %1533 = vmatmul.bf16.gmra.mxu3 %v3269_v3  ;;  %v3318_v2 = vld [vmem:[%s4387_s6 + $0x9c] sm:$0xf0]  ;;  %v4025_v3 = vld [vmem:[%s4387_s6 + $0xb8] sm:$0xf0] }
  0x8e   : > { %v3321_v9 = vor.u32 %v3951_v1, %v3318_v2  ;;  %v3037_v12 = vor.u32 %v4025_v3, %v3036_v0  ;;  %v3057_v2 = vor.u32 %v4029_v48, %v3054_v49  ;;  %v3961_v48 = vld [vmem:[%s4387_s6 + $0xe0] sm:$0xf0] }
  0x9c   : > { %960 = vmatmul.bf16.gmra.mxu1 %v2997_v16  ;;  %1627 = vmatmul.bf16.gmra.mxu0 %v3285_v17 }
  0x9d   : > { %1049 = vmatmul.bf16.gmra.mxu2 %v3001_v18  ;;  %1538 = vmatmul.bf16.gmra.mxu3 %v3281_v19 }
  0xa9   : > { %v4596_v30 = vpop.f32.mrf.mxu0  ;;  %v4598_v31 = vpop.f32.mrf.mxu1 }
  0xac   : > { %965 = vmatmul.bf16.gmra.mxu1 %v3009_v28  ;;  %1632 = vmatmul.bf16.gmra.mxu0 %v3297_v29  ;;  %v3328_v28 = vld [vmem:[%s4387_s6 + $0xa8] sm:$0xf]  ;;  %v3955_v29 = vld [vmem:[%s4387_s6 + $0xb0] sm:$0xf0] }
  0xad   : > { %1054 = vmatmul.bf16.gmra.mxu2 %v3013_v32  ;;  %1543 = vmatmul.bf16.gmra.mxu3 %v3293_v33  ;;  %v3329_v43 = vor.u32 %v3955_v29, %v3328_v28  ;;  %v3066_v28 = vld [vmem:[%s4387_s6 + $0xfc] sm:$0xf0]  ;;  %v3072_v29 = vld [vmem:[%s4387_s6 + $0xf8] sm:$0xf] }
  0xb0   : > { %v4606_v36 = vpop.f32.mrf.mxu2  ;;  %v4608_v37 = vpop.f32.mrf.mxu3 }
  0xb1   : > { %v4610_v38 = vpop.f32.mrf.mxu0  ;;  %v4612_v39 = vpop.f32.mrf.mxu1 }
  0xb8   : > { %v4628_v50 = vpop.f32.mrf.mxu2  ;;  %v4630_v51 = vpop.f32.mrf.mxu3 }
  0xb9   : > { %v4632_v54 = vpop.f32.mrf.mxu0  ;;  %v4634_v55 = vpop.f32.mrf.mxu1 }
  0xbc   : > { %970 = vmatmul.bf16.gmra.mxu1 %v3021_v52  ;;  %1637 = vmatmul.bf16.gmra.mxu0 %v3309_v53  ;;  %v3060_v52 = vld [vmem:[%s4387_s6 + $0xe0] sm:$0xf]  ;;  %v3957_v53 = vld [vmem:[%s4387_s6 + $0xc4] sm:$0xf] }
  0xbd   : > { %1059 = vmatmul.bf16.gmra.mxu2 %v3025_v56  ;;  %1548 = vmatmul.bf16.gmra.mxu3 %v3305_v57  ;;  %v3342_v56 = vld [vmem:[%s4387_s6 + $0xcc] sm:$0xf0]  ;;  %v4031_v57 = vld [vmem:[%s4387_s6 + $0xe8] sm:$0xf0] }
  0xbe   : > { %v3345_v3 = vor.u32 %v3957_v53, %v3342_v56  ;;  %v3069_v53 = vor.u32 %v4032_v27, %v3066_v28  ;;  %v4037_v27 = vld [vmem:[%s4387_s6 + $0x118] sm:$0xf0]  ;;  %v3364_v28 = vld [vmem:[%s4387_s6 + $0xf0] sm:$0xf] }
  0xc0   : > { %v4636_v58 = vpop.f32.mrf.mxu2  ;;  %v4638_v59 = vpop.f32.mrf.mxu3 }
  0xc1   : > { %v4640_v60 = vpop.f32.mrf.mxu0  ;;  %v4642_v61 = vpop.f32.mrf.mxu1 }
  0xc8   : > { %v4652_v6 = vpop.f32.mrf.mxu2  ;;  %v4654_v7 = vpop.f32.mrf.mxu3 }
  0xc9   : > { %v4656_v10 = vpop.f32.mrf.mxu0  ;;  %v4658_v11 = vpop.f32.mrf.mxu1 }
  0xcc   : > { %975 = vmatmul.bf16.gmra.mxu1 %v3033_v8  ;;  %1642 = vmatmul.bf16.gmra.mxu0 %v3321_v9  ;;  %v3061_v8 = vor.u32 %v4031_v57, %v3060_v52  ;;  %v3341_v9 = vor.u32 %v3958_v63, %v3340_v62 }
  0xcd   : > { %1064 = vmatmul.bf16.gmra.mxu2 %v3037_v12  ;;  %1553 = vmatmul.bf16.gmra.mxu3 %v3317_v13  ;;  %v4127_v13 = vld [vmem:[%s5133_s1 + $0x190] sm:$0xff] }
  0xce   : > { %2301 = vmatpush.bf16.msra.mxu2 %v4127_v13 }
  0xd0   : > { %v4666_v16 = vpop.f32.mrf.mxu2  ;;  %v4668_v17 = vpop.f32.mrf.mxu3 }
  0xd1   : > { %v4670_v18 = vpop.f32.mrf.mxu0  ;;  %v4672_v19 = vpop.f32.mrf.mxu1 }
  0xd8   : > { %v4688_v32 = vpop.f32.mrf.mxu2  ;;  %v4690_v33 = vpop.f32.mrf.mxu3 }
  0xd9   : > { %v4692_v40 = vpop.f32.mrf.mxu0  ;;  %v4694_v41 = vpop.f32.mrf.mxu1 }
  0xdc   : > { %980 = vmatmul.bf16.gmra.mxu1 %v3045_v34  ;;  %1647 = vmatmul.bf16.gmra.mxu0 %v3333_v35  ;;  %v3960_v34 = vld [vmem:[%s4387_s6 + $0xdc] sm:$0xf]  ;;  %v3354_v35 = vld [vmem:[%s4387_s6 + $0xe4] sm:$0xf0] }
  0xdd   : > { %1069 = vmatmul.bf16.gmra.mxu2 %v3049_v42  ;;  %1558 = vmatmul.bf16.gmra.mxu3 %v3329_v43  ;;  %v4034_v43 = vld [vmem:[%s4387_s6 + $0x100] sm:$0xf0]  ;;  %v3357_v56 = vor.u32 %v3960_v34, %v3354_v35 }
  0xe0   : > { %v4696_v44 = vpop.f32.mrf.mxu2  ;;  %v4698_v45 = vpop.f32.mrf.mxu3 }
  0xe1   : > { %v4700_v46 = vpop.f32.mrf.mxu0  ;;  %v4702_v47 = vpop.f32.mrf.mxu1 }
  0xe8   : > { %v4712_v0 = vpop.f32.mrf.mxu2  ;;  %v4714_v1 = vpop.f32.mrf.mxu3 }
  0xe9   : > { %v946_v4 = vpop.f32.mrf.mxu1  ;;  %v1613_v5 = vpop.f32.mrf.mxu0 }
  0xea   : > { %v947_v12 = vadd.f32 %v946_v4, %v4596_v30 }
  0xec   : > { %985 = vmatmul.bf16.gmra.mxu1 %v3057_v2  ;;  %1652 = vmatmul.bf16.gmra.mxu0 %v3345_v3  ;;  %v3073_v2 = vor.u32 %v4034_v43, %v3072_v29 }
  0xed   : > { %1074 = vmatmul.bf16.gmra.mxu2 %v3061_v8  ;;  %1563 = vmatmul.bf16.gmra.mxu3 %v3341_v9 }
  0xf0   : > { %v1035_v30 = vpop.f32.mrf.mxu2  ;;  %v1524_v15 = vpop.f32.mrf.mxu3 }
  0xf1   : > { %v1036_v20 = vadd.f32 %v1035_v30, %v947_v12  ;;  %v948_v21 = vpop.f32.mrf.mxu1  ;;  %v1615_v22 = vpop.f32.mrf.mxu0 }
  0xf2   : > { %v949_v23 = vadd.f32 %v948_v21, %v4610_v38  ;;  %v3352_v38 = vld [vmem:[%s4387_s6 + $0xd8] sm:$0xf] }
  0xf3   : > { %v1525_v24 = vadd.f32 %v1524_v15, %v1036_v20  ;;  %v3353_v3 = vor.u32 %v3961_v48, %v3352_v38  ;;  %v4035_v20 = vld [vmem:[%s4387_s6 + $0x10c] sm:$0xf]  ;;  %v3078_v21 = vld [vmem:[%s4387_s6 + $0x114] sm:$0xf0] }
  0xf4   : > { %v3081_v35 = vor.u32 %v4035_v20, %v3078_v21  ;;  %v3966_v20 = vld [vmem:[%s4387_s6 + $0x10c] sm:$0xf]  ;;  %v3378_v21 = vld [vmem:[%s4387_s6 + $0x114] sm:$0xf0] }
  0xf5   : > { %v4735_v42 = vadd.f32 %v1613_v5, %v1525_v24  ;;  %v3963_v24 = vld [vmem:[%s4387_s6 + $0xf4] sm:$0xf] }
  0xf6   : > { %v3369_v43 = vor.u32 %v3963_v24, %v3366_v25  ;;  %v4040_v24 = vld [vmem:[%s4387_s6 + $0x130] sm:$0xf0] }
  0xf7   : > { %v3967_v25 = vld [vmem:[%s4387_s6 + $0x110] sm:$0xf0] }
  0xf8   : > { %v1037_v49 = vpop.f32.mrf.mxu2  ;;  %v1526_v52 = vpop.f32.mrf.mxu3 }
  0xf9   : > { %v1038_v57 = vadd.f32 %v1037_v49, %v949_v23  ;;  %v951_v62 = vpop.f32.mrf.mxu1  ;;  %v1618_v63 = vpop.f32.mrf.mxu0  ;;  %v3084_v23 = vld [vmem:[%s4387_s6 + $0x110] sm:$0xf] }
  0xfa   : > { %v952_v4 = vadd.f32 %v951_v62, %v4632_v54  ;;  %v4134_v62 = vld [vmem:[%s5133_s1 + $0x1c8] sm:$0xff] }
  0xfb   : > { %v1527_v8 = vadd.f32 %v1526_v52, %v1038_v57  ;;  %v3085_v52 = vor.u32 %v4037_v27, %v3084_v23  ;;  %v4126_v57 = vld [vmem:[%s5133_s1 + $0x188] sm:$0xff]  ;;  %2391 = vmatpush.bf16.msra.mxu3 %v4134_v62 }
  0xfc   : > { %990 = vmatmul.bf16.gmra.mxu1 %v3069_v53  ;;  %1657 = vmatmul.bf16.gmra.mxu0 %v3357_v56 }
  0xfd   : > { %1079 = vmatmul.bf16.gmra.mxu2 %v3073_v2  ;;  %1568 = vmatmul.bf16.gmra.mxu3 %v3353_v3  ;;  %v4741_v5 = vadd.f32 %v1615_v22, %v1527_v8  ;;  %v3964_v22 = vld [vmem:[%s4387_s6 + $0xf8] sm:$0xf0] }
  0xfe   : > { %2302 = vmatpush.bf16.msra.mxu2 %v4126_v57 }
 0x100   : > { %v1040_v9 = vpop.f32.mrf.mxu2  ;;  %v1529_v12 = vpop.f32.mrf.mxu3 }
 0x101   : > { %v1041_v13 = vadd.f32 %v1040_v9, %v952_v4  ;;  %v953_v14 = vpop.f32.mrf.mxu1  ;;  %v1620_v30 = vpop.f32.mrf.mxu0 }
 0x102   : > { %v954_v54 = vadd.f32 %v953_v14, %v4640_v60  ;;  %v3365_v60 = vor.u32 %v3964_v22, %v3364_v28  ;;  %v4142_v14 = vld [vmem:[%s5133_s1 + $0x208] sm:$0xff] }
 0x103   : > { %v1530_v15 = vadd.f32 %v1529_v12, %v1041_v13  ;;  %v3998_v13 = vld [vmem:[%s5133_s1 + $0x88] sm:$0xff]  ;;  %2480 = vmatpush.bf16.msra.mxu0 %v4142_v14 }
 0x104   : > { %1699 = vmatpush.bf16.msra.mxu1 %v3998_v13  ;;  %v3390_v13 = vld [vmem:[%s4387_s6 + $0x12c] sm:$0xf0] }
 0x105   : > { %v4749_v26 = vadd.f32 %v1618_v63, %v1530_v15  ;;  %v3096_v15 = vld [vmem:[%s4387_s6 + $0x128] sm:$0xf] }
 0x108   : > { %v1042_v29 = vpop.f32.mrf.mxu2  ;;  %v1531_v34 = vpop.f32.mrf.mxu3 }
 0x109   : > { %v1043_v38 = vadd.f32 %v1042_v29, %v954_v54  ;;  %v956_v48 = vpop.f32.mrf.mxu1  ;;  %v1623_v49 = vpop.f32.mrf.mxu0  ;;  %v3090_v54 = vld [vmem:[%s4387_s6 + $0x12c] sm:$0xf0]  ;;  %v3381_v29 = vor.u32 %v3966_v20, %v3378_v21 }
 0x10a   : > { %v957_v53 = vadd.f32 %v956_v48, %v4656_v10 }
 0x10b   : > { %v1532_v56 = vadd.f32 %v1531_v34, %v1043_v38  ;;  %v3097_v38 = vor.u32 %v4040_v24, %v3096_v15 }
 0x10c   : > { %995 = vmatmul.bf16.gmra.mxu1 %v3081_v35  ;;  %1662 = vmatmul.bf16.gmra.mxu0 %v3369_v43 }
 0x10d   : > { %1084 = vmatmul.bf16.gmra.mxu2 %v3085_v52  ;;  %1573 = vmatmul.bf16.gmra.mxu3 %v3365_v60  ;;  %v4761_v63 = vadd.f32 %v1620_v30, %v1532_v56  ;;  %v4038_v30 = vld [vmem:[%s4387_s6 + $0x124] sm:$0xf] }
 0x10e   : > { %v3093_v22 = vor.u32 %v4038_v30, %v3090_v54  ;;  %v4043_v30 = vld [vmem:[%s4387_s6 + $0x148] sm:$0xf0]  ;;  %v3388_v54 = vld [vmem:[%s4387_s6 + $0x120] sm:$0xf] }
 0x110   : > { %v1045_v10 = vpop.f32.mrf.mxu2  ;;  %v1534_v2 = vpop.f32.mrf.mxu3 }
 0x111   : > { %v1046_v3 = vadd.f32 %v1045_v10, %v957_v53  ;;  %v958_v4 = vpop.f32.mrf.mxu1  ;;  %v1625_v8 = vpop.f32.mrf.mxu0 }
 0x112   : > { %v959_v9 = vadd.f32 %v958_v4, %v4670_v18  ;;  %v3376_v18 = vld [vmem:[%s4387_s6 + $0x108] sm:$0xf] }
 0x113   : > { %v1535_v12 = vadd.f32 %v1534_v2, %v1046_v3  ;;  %v3377_v48 = vor.u32 %v3967_v25, %v3376_v18  ;;  %v4041_v3 = vld [vmem:[%s4387_s6 + $0x13c] sm:$0xf]  ;;  %v3102_v4 = vld [vmem:[%s4387_s6 + $0x144] sm:$0xf0] }
 0x114   : > { %v3105_v21 = vor.u32 %v4041_v3, %v3102_v4  ;;  %v3402_v3 = vld [vmem:[%s4387_s6 + $0x144] sm:$0xf0] }
 0x115   : > { %v4775_v23 = vadd.f32 %v1623_v49, %v1535_v12  ;;  %v3969_v12 = vld [vmem:[%s4387_s6 + $0x124] sm:$0xf] }
 0x116   : > { %v3393_v24 = vor.u32 %v3969_v12, %v3390_v13  ;;  %v3400_v12 = vld [vmem:[%s4387_s6 + $0x138] sm:$0xf]  ;;  %v3973_v13 = vld [vmem:[%s4387_s6 + $0x140] sm:$0xf0] }
 0x118   : > { %v1047_v27 = vpop.f32.mrf.mxu2  ;;  %v1536_v28 = vpop.f32.mrf.mxu3 }
 0x119   : > { %v1048_v34 = vadd.f32 %v1047_v27, %v959_v9  ;;  %v961_v35 = vpop.f32.mrf.mxu1  ;;  %v1628_v43 = vpop.f32.mrf.mxu0  ;;  %v3108_v9 = vld [vmem:[%s4387_s6 + $0x140] sm:$0xf] }
 0x11a   : > { %v962_v52 = vadd.f32 %v961_v35, %v4692_v40 }
 0x11b   : > { %v1537_v60 = vadd.f32 %v1536_v28, %v1048_v34  ;;  %v3109_v28 = vor.u32 %v4043_v30, %v3108_v9  ;;  %v4133_v34 = vld [vmem:[%s5133_s1 + $0x1c0] sm:$0xff] }
 0x11c   : > { %1000 = vmatmul.bf16.gmra.mxu1 %v3093_v22  ;;  %1667 = vmatmul.bf16.gmra.mxu0 %v3381_v29  ;;  %v4125_v29 = vld [vmem:[%s5133_s1 + $0x180] sm:$0xff] }
 0x11d   : > { %1089 = vmatmul.bf16.gmra.mxu2 %v3097_v38  ;;  %1578 = vmatmul.bf16.gmra.mxu3 %v3377_v48  ;;  %v4781_v49 = vadd.f32 %v1625_v8, %v1537_v60  ;;  %v3970_v8 = vld [vmem:[%s4387_s6 + $0x128] sm:$0xf0]  ;;  %v4046_v9 = vld [vmem:[%s4387_s6 + $0x160] sm:$0xf0] }
 0x11e   : > { %2303 = vmatpush.bf16.msra.mxu2 %v4125_v29  ;;  %2392 = vmatpush.bf16.msra.mxu3 %v4133_v34 }
 0x120   : > { %v1050_v53 = vpop.f32.mrf.mxu2  ;;  %v1539_v56 = vpop.f32.mrf.mxu3 }
 0x121   : > { %v1051_v57 = vadd.f32 %v1050_v53, %v962_v52  ;;  %v963_v62 = vpop.f32.mrf.mxu1  ;;  %v1630_v10 = vpop.f32.mrf.mxu0 }
 0x122   : > { %v964_v40 = vadd.f32 %v963_v62, %v4700_v46  ;;  %v3389_v46 = vor.u32 %v3970_v8, %v3388_v54  ;;  %v4141_v62 = vld [vmem:[%s5133_s1 + $0x200] sm:$0xff] }
 0x123   : > { %v1540_v2 = vadd.f32 %v1539_v56, %v1051_v57  ;;  %v3997_v57 = vld [vmem:[%s5133_s1 + $0x80] sm:$0xff]  ;;  %2481 = vmatpush.bf16.msra.mxu0 %v4141_v62 }
 0x124   : > { %1700 = vmatpush.bf16.msra.mxu1 %v3997_v57  ;;  %v3975_v57 = vld [vmem:[%s4387_s6 + $0x154] sm:$0xf]  ;;  %v3414_v62 = vld [vmem:[%s4387_s6 + $0x15c] sm:$0xf0] }
 0x125   : > { %v4789_v14 = vadd.f32 %v1628_v43, %v1540_v2  ;;  %v3972_v2 = vld [vmem:[%s4387_s6 + $0x13c] sm:$0xf] }
 0x128   : > { %v1052_v15 = vpop.f32.mrf.mxu2  ;;  %v1541_v20 = vpop.f32.mrf.mxu3 }
 0x129   : > { %v1053_v18 = vadd.f32 %v1052_v15, %v964_v40  ;;  %v966_v25 = vpop.f32.mrf.mxu1  ;;  %v1633_v27 = vpop.f32.mrf.mxu0  ;;  %v3120_v40 = vld [vmem:[%s4387_s6 + $0x158] sm:$0xf] }
 0x12a   : > { %v967_v43 = vadd.f32 %v966_v25, %v4598_v31  ;;  %v4044_v31 = vld [vmem:[%s4387_s6 + $0x154] sm:$0xf]  ;;  %v3121_v25 = vor.u32 %v4046_v9, %v3120_v40  ;;  %v3412_v40 = vld [vmem:[%s4387_s6 + $0x150] sm:$0xf] }
 0x12b   : > { %v1542_v22 = vadd.f32 %v1541_v20, %v1053_v18  ;;  %v3405_v20 = vor.u32 %v3972_v2, %v3402_v3 }
 0x12c   : > { %1005 = vmatmul.bf16.gmra.mxu1 %v3105_v21  ;;  %1672 = vmatmul.bf16.gmra.mxu0 %v3393_v24 }
 0x12d   : > { %1094 = vmatmul.bf16.gmra.mxu2 %v3109_v28  ;;  %1583 = vmatmul.bf16.gmra.mxu3 %v3389_v46  ;;  %v4800_v35 = vadd.f32 %v1630_v10, %v1542_v22  ;;  %v3114_v10 = vld [vmem:[%s4387_s6 + $0x15c] sm:$0xf0]  ;;  %v3401_v28 = vor.u32 %v3973_v13, %v3400_v12  ;;  %v3417_v12 = vor.u32 %v3975_v57, %v3414_v62 }
 0x12e   : > { %v3117_v15 = vor.u32 %v4044_v31, %v3114_v10  ;;  %v4049_v10 = vld [vmem:[%s4387_s6 + $0x178] sm:$0xf0] }
 0x130   : > { %v1055_v38 = vpop.f32.mrf.mxu2  ;;  %v1544_v48 = vpop.f32.mrf.mxu3 }
 0x131   : > { %v1056_v52 = vadd.f32 %v1055_v38, %v967_v43  ;;  %v968_v60 = vpop.f32.mrf.mxu1  ;;  %v1635_v53 = vpop.f32.mrf.mxu0 }
 0x132   : > { %v969_v30 = vadd.f32 %v968_v60, %v4612_v39  ;;  %v3126_v60 = vld [vmem:[%s4387_s6 + $0x174] sm:$0xf0] }
 0x133   : > { %v1545_v56 = vadd.f32 %v1544_v48, %v1056_v52  ;;  %v4047_v52 = vld [vmem:[%s4387_s6 + $0x16c] sm:$0xf] }
 0x134   : > { %v3129_v9 = vor.u32 %v4047_v52, %v3126_v60  ;;  %v4052_v60 = vld [vmem:[%s4387_s6 + $0x190] sm:$0xf0] }
 0x135   : > { %v4814_v4 = vadd.f32 %v1633_v27, %v1545_v56  ;;  %v3132_v56 = vld [vmem:[%s4387_s6 + $0x170] sm:$0xf] }
 0x138   : > { %v1057_v54 = vpop.f32.mrf.mxu2  ;;  %v1546_v8 = vpop.f32.mrf.mxu3 }
 0x139   : > { %v1058_v21 = vadd.f32 %v1057_v54, %v969_v30  ;;  %v971_v24 = vpop.f32.mrf.mxu1  ;;  %v1638_v18 = vpop.f32.mrf.mxu0 }
 0x13a   : > { %v972_v27 = vadd.f32 %v971_v24, %v4634_v55 }
 0x13b   : > { %v1547_v46 = vadd.f32 %v1546_v8, %v1058_v21  ;;  %v3133_v8 = vor.u32 %v4049_v10, %v3132_v56  ;;  %v3424_v56 = vld [vmem:[%s4387_s6 + $0x168] sm:$0xf] }
 0x13c   : > { %1010 = vmatmul.bf16.gmra.mxu1 %v3117_v15  ;;  %1677 = vmatmul.bf16.gmra.mxu0 %v3405_v20 }
 0x13d   : > { %1099 = vmatmul.bf16.gmra.mxu2 %v3121_v25  ;;  %1588 = vmatmul.bf16.gmra.mxu3 %v3401_v28  ;;  %v4820_v39 = vadd.f32 %v1635_v53, %v1547_v46  ;;  %v3976_v53 = vld [vmem:[%s4387_s6 + $0x158] sm:$0xf0] }
 0x13e   : > { %v3413_v15 = vor.u32 %v3976_v53, %v3412_v40 }
 0x140   : > { %v1060_v22 = vpop.f32.mrf.mxu2  ;;  %v1549_v29 = vpop.f32.mrf.mxu3 }
 0x141   : > { %v1061_v34 = vadd.f32 %v1060_v22, %v972_v27  ;;  %v973_v43 = vpop.f32.mrf.mxu1  ;;  %v1640_v38 = vpop.f32.mrf.mxu0  ;;  %v4050_v22 = vld [vmem:[%s4387_s6 + $0x184] sm:$0xf] }
 0x142   : > { %v974_v2 = vadd.f32 %v973_v43, %v4642_v61  ;;  %v3978_v43 = vld [vmem:[%s4387_s6 + $0x16c] sm:$0xf] }
 0x143   : > { %v1550_v48 = vadd.f32 %v1549_v29, %v1061_v34  ;;  %v3138_v29 = vld [vmem:[%s4387_s6 + $0x18c] sm:$0xf0]  ;;  %v3144_v34 = vld [vmem:[%s4387_s6 + $0x188] sm:$0xf] }
 0x144   : > { %v3141_v10 = vor.u32 %v4050_v22, %v3138_v29  ;;  %v4078_v29 = vld [vmem:[%s4387_s6 + $0x38] sm:$0xf0] }
 0x145   : > { %v4828_v31 = vadd.f32 %v1638_v18, %v1550_v48  ;;  %v3426_v48 = vld [vmem:[%s4387_s6 + $0x174] sm:$0xf0] }
 0x146   : > { %v3429_v40 = vor.u32 %v3978_v43, %v3426_v48 }
 0x148   : > { %v1062_v3 = vpop.f32.mrf.mxu2  ;;  %v1551_v55 = vpop.f32.mrf.mxu3 }
 0x149   : > { %v1063_v13 = vadd.f32 %v1062_v3, %v974_v2  ;;  %v976_v30 = vpop.f32.mrf.mxu1  ;;  %v1643_v54 = vpop.f32.mrf.mxu0 }
 0x14a   : > { %v977_v21 = vadd.f32 %v976_v30, %v4658_v11 }
 0x14b   : > { %v1552_v20 = vadd.f32 %v1551_v55, %v1063_v13  ;;  %v3145_v55 = vor.u32 %v4052_v60, %v3144_v34  ;;  %v4077_v34 = vld [vmem:[%s4387_s6 + $0x34] sm:$0xf] }
 0x14c   : > { %1015 = vmatmul.bf16.gmra.mxu1 %v3129_v9  ;;  %1682 = vmatmul.bf16.gmra.mxu0 %v3417_v12 }
 0x14d   : > { %1104 = vmatmul.bf16.gmra.mxu2 %v3133_v8  ;;  %1593 = vmatmul.bf16.gmra.mxu3 %v3413_v15  ;;  %v4834_v61 = vadd.f32 %v1640_v38, %v1552_v20  ;;  %v3979_v38 = vld [vmem:[%s4387_s6 + $0x170] sm:$0xf0] }
 0x14e   : > { %v3425_v9 = vor.u32 %v3979_v38, %v3424_v56 }
 0x150   : > { %v1065_v24 = vpop.f32.mrf.mxu2  ;;  %v1554_v18 = vpop.f32.mrf.mxu3 }
 0x151   : > { %v1066_v25 = vadd.f32 %v1065_v24, %v977_v21  ;;  %v978_v28 = vpop.f32.mrf.mxu1  ;;  %v1645_v46 = vpop.f32.mrf.mxu0  ;;  %v3252_v24 = vld [vmem:[%s4387_s6 + $0x8] sm:$0xf] }
 0x152   : > { %v979_v57 = vadd.f32 %v978_v28, %v4672_v19  ;;  %v3652_v28 = vld [vmem:[%s4387_s6 + $0x38] sm:$0xf] }
 0x153   : > { %v1555_v27 = vadd.f32 %v1554_v18, %v1066_v25  ;;  %v3935_v18 = vld [vmem:[%s4387_s6 + $0x10] sm:$0xf0]  ;;  %v3644_v25 = vld [vmem:[%s4387_s6 + $0x30] sm:$0xf] }
 0x154   : > { %v3253_v60 = vor.u32 %v3935_v18, %v3252_v24  ;;  %v4081_v18 = vld [vmem:[%s4387_s6 + $0x50] sm:$0xf0] }
 0x155   : > { %v4842_v52 = vadd.f32 %v1643_v54, %v1555_v27  ;;  %v4079_v27 = vld [vmem:[%s4387_s6 + $0x40] sm:$0xf0] }
 0x156   : > { %v3653_v56 = vor.u32 %v4079_v27, %v3652_v28 }
 0x158   : > { %v1067_v62 = vpop.f32.mrf.mxu2  ;;  %v1556_v11 = vpop.f32.mrf.mxu3 }
 0x159   : > { %v1068_v53 = vadd.f32 %v1067_v62, %v979_v57  ;;  %v981_v2 = vpop.f32.mrf.mxu1  ;;  %v1648_v3 = vpop.f32.mrf.mxu0 }
 0x15a   : > { %v982_v13 = vadd.f32 %v981_v2, %v4694_v41 }
 0x15b   : > { %v1557_v12 = vadd.f32 %v1556_v11, %v1068_v53  ;;  %v3645_v11 = vor.u32 %v4078_v29, %v3644_v25  ;;  %v4080_v25 = vld [vmem:[%s4387_s6 + $0x4c] sm:$0xf] }
 0x15c   : > { %1020 = vmatmul.bf16.gmra.mxu1 %v3141_v10  ;;  %1687 = vmatmul.bf16.gmra.mxu0 %v3429_v40 }
 0x15d   : > { %1109 = vmatmul.bf16.gmra.mxu2 %v3145_v55  ;;  %1598 = vmatmul.bf16.gmra.mxu3 %v3425_v9  ;;  %v4848_v19 = vadd.f32 %v1645_v46, %v1557_v12  ;;  %v3646_v46 = vld [vmem:[%s4387_s6 + $0x3c] sm:$0xf0] }
 0x15e   : > { %v3649_v10 = vor.u32 %v4077_v34, %v3646_v46 }
 0x160   : > { %v1070_v30 = vpop.f32.mrf.mxu2  ;;  %v1559_v54 = vpop.f32.mrf.mxu3 }
 0x161   : > { %v1071_v8 = vadd.f32 %v1070_v30, %v982_v13  ;;  %v983_v15 = vpop.f32.mrf.mxu1  ;;  %v1650_v20 = vpop.f32.mrf.mxu0  ;;  %v3264_v30 = vld [vmem:[%s4387_s6 + $0x20] sm:$0xf] }
 0x162   : > { %v984_v43 = vadd.f32 %v983_v15, %v4702_v47  ;;  %v3664_v15 = vld [vmem:[%s4387_s6 + $0x50] sm:$0xf] }
 0x163   : > { %v1560_v21 = vadd.f32 %v1559_v54, %v1071_v8  ;;  %v3938_v54 = vld [vmem:[%s4387_s6 + $0x28] sm:$0xf0]  ;;  %v3656_v8 = vld [vmem:[%s4387_s6 + $0x48] sm:$0xf] }
 0x164   : > { %v3265_v29 = vor.u32 %v3938_v54, %v3264_v30  ;;  %v4084_v54 = vld [vmem:[%s4387_s6 + $0x68] sm:$0xf0] }
 0x165   : > { %v4856_v22 = vadd.f32 %v1648_v3, %v1560_v21  ;;  %v4082_v21 = vld [vmem:[%s4387_s6 + $0x58] sm:$0xf0] }
 0x166   : > { %v3665_v34 = vor.u32 %v4082_v21, %v3664_v15 }
 0x168   : > { %v1072_v48 = vpop.f32.mrf.mxu2  ;;  %v1561_v41 = vpop.f32.mrf.mxu3 }
 0x169   : > { %v1073_v38 = vadd.f32 %v1072_v48, %v984_v43  ;;  %v986_v57 = vpop.f32.mrf.mxu1  ;;  %v1653_v62 = vpop.f32.mrf.mxu0 }
 0x16a   : > { %v987_v53 = vadd.f32 %v986_v57, %v4606_v36 }
 0x16b   : > { %v1562_v40 = vadd.f32 %v1561_v41, %v1073_v38  ;;  %v3657_v41 = vor.u32 %v4081_v18, %v3656_v8  ;;  %v4083_v8 = vld [vmem:[%s4387_s6 + $0x64] sm:$0xf] }
 0x16c   : > { %1701 = vmatmul.bf16.vlgmr.msra.gmra.mxu1 %v3253_v60  ;;  %2482 = vmatmul.bf16.vlgmr.msra.gmra.mxu0 %v3653_v56 }
 0x16d   : > { %2304 = vmatmul.bf16.vlgmr.msra.gmra.mxu2 %v3645_v11  ;;  %2393 = vmatmul.bf16.vlgmr.msra.gmra.mxu3 %v3649_v10  ;;  %v4862_v47 = vadd.f32 %v1650_v20, %v1562_v40  ;;  %v3658_v20 = vld [vmem:[%s4387_s6 + $0x54] sm:$0xf0] }
 0x16e   : > { %v3661_v60 = vor.u32 %v4080_v25, %v3658_v20 }
 0x170   : > { %v1075_v2 = vpop.f32.mrf.mxu2  ;;  %v1564_v3 = vpop.f32.mrf.mxu3 }
 0x171   : > { %v1076_v55 = vadd.f32 %v1075_v2, %v987_v53  ;;  %v988_v9 = vpop.f32.mrf.mxu1  ;;  %v1655_v12 = vpop.f32.mrf.mxu0  ;;  %v3276_v2 = vld [vmem:[%s4387_s6 + $0x38] sm:$0xf] }
 0x172   : > { %v989_v28 = vadd.f32 %v988_v9, %v4628_v50  ;;  %v3676_v9 = vld [vmem:[%s4387_s6 + $0x68] sm:$0xf] }
 0x173   : > { %v1565_v13 = vadd.f32 %v1564_v3, %v1076_v55  ;;  %v3941_v3 = vld [vmem:[%s4387_s6 + $0x40] sm:$0xf0]  ;;  %v3668_v55 = vld [vmem:[%s4387_s6 + $0x60] sm:$0xf] }
 0x174   : > { %v3277_v18 = vor.u32 %v3941_v3, %v3276_v2  ;;  %v4087_v3 = vld [vmem:[%s4387_s6 + $0x80] sm:$0xf0] }
 0x175   : > { %v4870_v24 = vadd.f32 %v1653_v62, %v1565_v13  ;;  %v4085_v13 = vld [vmem:[%s4387_s6 + $0x70] sm:$0xf0] }
 0x176   : > { %v3677_v25 = vor.u32 %v4085_v13, %v3676_v9 }
 0x178   : > { %v1077_v27 = vpop.f32.mrf.mxu2  ;;  %v1566_v36 = vpop.f32.mrf.mxu3 }
 0x179   : > { %v1078_v46 = vadd.f32 %v1077_v27, %v989_v28  ;;  %v991_v43 = vpop.f32.mrf.mxu1  ;;  %v1658_v48 = vpop.f32.mrf.mxu0 }
 0x17a   : > { %v992_v38 = vadd.f32 %v991_v43, %v4636_v58 }
 0x17b   : > { %v1567_v56 = vadd.f32 %v1566_v36, %v1078_v46  ;;  %v3669_v36 = vor.u32 %v4084_v54, %v3668_v55  ;;  %v4086_v55 = vld [vmem:[%s4387_s6 + $0x7c] sm:$0xf] }
 0x17c   : > { %1706 = vmatmul.bf16.gmra.mxu1 %v3265_v29  ;;  %2487 = vmatmul.bf16.gmra.mxu0 %v3665_v34 }
 0x17d   : > { %2309 = vmatmul.bf16.gmra.mxu2 %v3657_v41  ;;  %2398 = vmatmul.bf16.gmra.mxu3 %v3661_v60  ;;  %v4876_v50 = vadd.f32 %v1655_v12, %v1567_v56  ;;  %v3670_v12 = vld [vmem:[%s4387_s6 + $0x6c] sm:$0xf0] }
 0x17e   : > { %v3673_v29 = vor.u32 %v4083_v8, %v3670_v12 }
 0x180   : > { %v1080_v57 = vpop.f32.mrf.mxu2  ;;  %v1569_v62 = vpop.f32.mrf.mxu3 }
 0x181   : > { %v1081_v11 = vadd.f32 %v1080_v57, %v992_v38  ;;  %v993_v10 = vpop.f32.mrf.mxu1  ;;  %v1660_v40 = vpop.f32.mrf.mxu0  ;;  %v3288_v57 = vld [vmem:[%s4387_s6 + $0x50] sm:$0xf] }
 0x182   : > { %v994_v15 = vadd.f32 %v993_v10, %v4652_v6  ;;  %v3688_v10 = vld [vmem:[%s4387_s6 + $0x80] sm:$0xf] }
 0x183   : > { %v1570_v53 = vadd.f32 %v1569_v62, %v1081_v11  ;;  %v3944_v62 = vld [vmem:[%s4387_s6 + $0x58] sm:$0xf0]  ;;  %v3680_v11 = vld [vmem:[%s4387_s6 + $0x78] sm:$0xf] }
 0x184   : > { %v3289_v54 = vor.u32 %v3944_v62, %v3288_v57  ;;  %v4090_v62 = vld [vmem:[%s4387_s6 + $0x98] sm:$0xf0] }
 0x185   : > { %v4884_v30 = vadd.f32 %v1658_v48, %v1570_v53  ;;  %v4088_v53 = vld [vmem:[%s4387_s6 + $0x88] sm:$0xf0] }
 0x186   : > { %v3689_v8 = vor.u32 %v4088_v53, %v3688_v10 }
 0x188   : > { %v1082_v21 = vpop.f32.mrf.mxu2  ;;  %v1571_v58 = vpop.f32.mrf.mxu3 }
 0x189   : > { %v1083_v20 = vadd.f32 %v1082_v21, %v994_v15  ;;  %v996_v28 = vpop.f32.mrf.mxu1  ;;  %v1663_v27 = vpop.f32.mrf.mxu0 }
 0x18a   : > { %v997_v46 = vadd.f32 %v996_v28, %v4666_v16 }
 0x18b   : > { %v1572_v34 = vadd.f32 %v1571_v58, %v1083_v20  ;;  %v3681_v58 = vor.u32 %v4087_v3, %v3680_v11  ;;  %v4089_v11 = vld [vmem:[%s4387_s6 + $0x94] sm:$0xf] }
 0x18c   : > { %1711 = vmatmul.bf16.gmra.mxu1 %v3277_v18  ;;  %2492 = vmatmul.bf16.gmra.mxu0 %v3677_v25 }
 0x18d   : > { %2314 = vmatmul.bf16.gmra.mxu2 %v3669_v36  ;;  %2403 = vmatmul.bf16.gmra.mxu3 %v3673_v29  ;;  %v4890_v6 = vadd.f32 %v1660_v40, %v1572_v34  ;;  %v3682_v40 = vld [vmem:[%s4387_s6 + $0x84] sm:$0xf0] }
 0x18e   : > { %v3685_v18 = vor.u32 %v4086_v55, %v3682_v40 }
 0x190   : > { %v1085_v43 = vpop.f32.mrf.mxu2  ;;  %v1574_v48 = vpop.f32.mrf.mxu3 }
 0x191   : > { %v1086_v41 = vadd.f32 %v1085_v43, %v997_v46  ;;  %v998_v60 = vpop.f32.mrf.mxu1  ;;  %v1665_v56 = vpop.f32.mrf.mxu0  ;;  %v3300_v43 = vld [vmem:[%s4387_s6 + $0x68] sm:$0xf] }
 0x192   : > { %v999_v9 = vadd.f32 %v998_v60, %v4688_v32  ;;  %v3700_v60 = vld [vmem:[%s4387_s6 + $0x98] sm:$0xf] }
 0x193   : > { %v1575_v38 = vadd.f32 %v1574_v48, %v1086_v41  ;;  %v3947_v48 = vld [vmem:[%s4387_s6 + $0x70] sm:$0xf0]  ;;  %v3692_v41 = vld [vmem:[%s4387_s6 + $0x90] sm:$0xf] }
 0x194   : > { %v3301_v3 = vor.u32 %v3947_v48, %v3300_v43  ;;  %v4093_v48 = vld [vmem:[%s4387_s6 + $0xb0] sm:$0xf0] }
 0x195   : > { %v4898_v2 = vadd.f32 %v1663_v27, %v1575_v38  ;;  %v4091_v38 = vld [vmem:[%s4387_s6 + $0xa0] sm:$0xf0] }
 0x196   : > { %v3701_v55 = vor.u32 %v4091_v38, %v3700_v60 }
 0x198   : > { %v1087_v13 = vpop.f32.mrf.mxu2  ;;  %v1576_v16 = vpop.f32.mrf.mxu3 }
 0x199   : > { %v1088_v12 = vadd.f32 %v1087_v13, %v999_v9  ;;  %v1001_v15 = vpop.f32.mrf.mxu1  ;;  %v1668_v21 = vpop.f32.mrf.mxu0 }
 0x19a   : > { %v1002_v20 = vadd.f32 %v1001_v15, %v4696_v44 }
 0x19b   : > { %v1577_v25 = vadd.f32 %v1576_v16, %v1088_v12  ;;  %v3693_v16 = vor.u32 %v4090_v62, %v3692_v41  ;;  %v4092_v41 = vld [vmem:[%s4387_s6 + $0xac] sm:$0xf] }
 0x19c   : > { %1716 = vmatmul.bf16.gmra.mxu1 %v3289_v54  ;;  %2497 = vmatmul.bf16.gmra.mxu0 %v3689_v8 }
 0x19d   : > { %2319 = vmatmul.bf16.gmra.mxu2 %v3681_v58  ;;  %2408 = vmatmul.bf16.gmra.mxu3 %v3685_v18  ;;  %v4904_v32 = vadd.f32 %v1665_v56, %v1577_v25  ;;  %v3694_v56 = vld [vmem:[%s4387_s6 + $0x9c] sm:$0xf0] }
 0x19e   : > { %v3697_v54 = vor.u32 %v4089_v11, %v3694_v56 }
 0x1a0   : > { %v1090_v28 = vpop.f32.mrf.mxu2  ;;  %v1579_v27 = vpop.f32.mrf.mxu3 }
 0x1a1   : > { %v1091_v36 = vadd.f32 %v1090_v28, %v1002_v20  ;;  %v1003_v29 = vpop.f32.mrf.mxu1  ;;  %v1670_v34 = vpop.f32.mrf.mxu0  ;;  %v3312_v28 = vld [vmem:[%s4387_s6 + $0x80] sm:$0xf] }
 0x1a2   : > { %v1004_v10 = vadd.f32 %v1003_v29, %v4712_v0  ;;  %v3712_v29 = vld [vmem:[%s4387_s6 + $0xb0] sm:$0xf] }
 0x1a3   : > { %v1580_v46 = vadd.f32 %v1579_v27, %v1091_v36  ;;  %v3950_v27 = vld [vmem:[%s4387_s6 + $0x88] sm:$0xf0]  ;;  %v3704_v36 = vld [vmem:[%s4387_s6 + $0xa8] sm:$0xf] }
 0x1a4   : > { %v3313_v62 = vor.u32 %v3950_v27, %v3312_v28  ;;  %v4096_v27 = vld [vmem:[%s4387_s6 + $0xc8] sm:$0xf0] }
 0x1a5   : > { %v4912_v57 = vadd.f32 %v1668_v21, %v1580_v46  ;;  %v4094_v46 = vld [vmem:[%s4387_s6 + $0xb8] sm:$0xf0] }
 0x1a6   : > { %v3713_v11 = vor.u32 %v4094_v46, %v3712_v29 }
 0x1a8   : > { %v1092_v53 = vpop.f32.mrf.mxu2  ;;  %v1581_v44 = vpop.f32.mrf.mxu3 }
 0x1a9   : > { %v1093_v40 = vadd.f32 %v1092_v53, %v1004_v10  ;;  %v1006_v9 = vpop.f32.mrf.mxu1  ;;  %v1673_v13 = vpop.f32.mrf.mxu0 }
 0x1aa   : > { %v1007_v12 = vadd.f32 %v1006_v9, %v4608_v37 }
 0x1ab   : > { %v1582_v8 = vadd.f32 %v1581_v44, %v1093_v40  ;;  %v3705_v44 = vor.u32 %v4093_v48, %v3704_v36  ;;  %v4095_v36 = vld [vmem:[%s4387_s6 + $0xc4] sm:$0xf] }
 0x1ac   : > { %1721 = vmatmul.bf16.gmra.mxu1 %v3301_v3  ;;  %2502 = vmatmul.bf16.gmra.mxu0 %v3701_v55 }
 0x1ad   : > { %2324 = vmatmul.bf16.gmra.mxu2 %v3693_v16  ;;  %2413 = vmatmul.bf16.gmra.mxu3 %v3697_v54  ;;  %v4918_v0 = vadd.f32 %v1670_v34, %v1582_v8  ;;  %v3706_v34 = vld [vmem:[%s4387_s6 + $0xb4] sm:$0xf0] }
 0x1ae   : > { %v3709_v3 = vor.u32 %v4092_v41, %v3706_v34 }
 0x1b0   : > { %v1095_v15 = vpop.f32.mrf.mxu2  ;;  %v1584_v21 = vpop.f32.mrf.mxu3 }
 0x1b1   : > { %v1096_v58 = vadd.f32 %v1095_v15, %v1007_v12  ;;  %v1008_v18 = vpop.f32.mrf.mxu1  ;;  %v1675_v25 = vpop.f32.mrf.mxu0  ;;  %v3324_v15 = vld [vmem:[%s4387_s6 + $0x98] sm:$0xf] }
 0x1b2   : > { %v1009_v60 = vadd.f32 %v1008_v18, %v4630_v51  ;;  %v3724_v18 = vld [vmem:[%s4387_s6 + $0xc8] sm:$0xf] }
 0x1b3   : > { %v1585_v20 = vadd.f32 %v1584_v21, %v1096_v58  ;;  %v3953_v21 = vld [vmem:[%s4387_s6 + $0xa0] sm:$0xf0]  ;;  %v3716_v58 = vld [vmem:[%s4387_s6 + $0xc0] sm:$0xf] }
 0x1b4   : > { %v3325_v48 = vor.u32 %v3953_v21, %v3324_v15  ;;  %v4099_v21 = vld [vmem:[%s4387_s6 + $0xe0] sm:$0xf0] }
 0x1b5   : > { %v4926_v43 = vadd.f32 %v1673_v13, %v1585_v20  ;;  %v4097_v20 = vld [vmem:[%s4387_s6 + $0xd0] sm:$0xf0] }
 0x1b6   : > { %v3725_v41 = vor.u32 %v4097_v20, %v3724_v18 }
 0x1b8   : > { %v1097_v38 = vpop.f32.mrf.mxu2  ;;  %v1586_v37 = vpop.f32.mrf.mxu3 }
 0x1b9   : > { %v1098_v56 = vadd.f32 %v1097_v38, %v1009_v60  ;;  %v1011_v10 = vpop.f32.mrf.mxu1  ;;  %v1678_v53 = vpop.f32.mrf.mxu0 }
 0x1ba   : > { %v1012_v40 = vadd.f32 %v1011_v10, %v4638_v59 }
 0x1bb   : > { %v1587_v55 = vadd.f32 %v1586_v37, %v1098_v56  ;;  %v3717_v37 = vor.u32 %v4096_v27, %v3716_v58  ;;  %v4098_v58 = vld [vmem:[%s4387_s6 + $0xdc] sm:$0xf] }
 0x1bc   : > { %1726 = vmatmul.bf16.gmra.mxu1 %v3313_v62  ;;  %2507 = vmatmul.bf16.gmra.mxu0 %v3713_v11 }
 0x1bd   : > { %2329 = vmatmul.bf16.gmra.mxu2 %v3705_v44  ;;  %2418 = vmatmul.bf16.gmra.mxu3 %v3709_v3  ;;  %v4932_v51 = vadd.f32 %v1675_v25, %v1587_v55  ;;  %v3718_v25 = vld [vmem:[%s4387_s6 + $0xcc] sm:$0xf0] }
 0x1be   : > { %v3721_v62 = vor.u32 %v4095_v36, %v3718_v25 }
 0x1c0   : > { %v1100_v9 = vpop.f32.mrf.mxu2  ;;  %v1589_v13 = vpop.f32.mrf.mxu3 }
 0x1c1   : > { %v1101_v16 = vadd.f32 %v1100_v9, %v1012_v40  ;;  %v1013_v54 = vpop.f32.mrf.mxu1  ;;  %v1680_v8 = vpop.f32.mrf.mxu0  ;;  %v3336_v9 = vld [vmem:[%s4387_s6 + $0xb0] sm:$0xf] }
 0x1c2   : > { %v1014_v29 = vadd.f32 %v1013_v54, %v4654_v7  ;;  %v3736_v54 = vld [vmem:[%s4387_s6 + $0xe0] sm:$0xf] }
 0x1c3   : > { %v1590_v12 = vadd.f32 %v1589_v13, %v1101_v16  ;;  %v3956_v13 = vld [vmem:[%s4387_s6 + $0xb8] sm:$0xf0]  ;;  %v3728_v16 = vld [vmem:[%s4387_s6 + $0xd8] sm:$0xf] }
 0x1c4   : > { %v3337_v27 = vor.u32 %v3956_v13, %v3336_v9  ;;  %v4102_v13 = vld [vmem:[%s4387_s6 + $0xf8] sm:$0xf0] }
 0x1c5   : > { %v4940_v28 = vadd.f32 %v1678_v53, %v1590_v12  ;;  %v4100_v12 = vld [vmem:[%s4387_s6 + $0xe8] sm:$0xf0] }
 0x1c6   : > { %v3737_v36 = vor.u32 %v4100_v12, %v3736_v54 }
 0x1c8   : > { %v1102_v46 = vpop.f32.mrf.mxu2  ;;  %v1591_v59 = vpop.f32.mrf.mxu3 }
 0x1c9   : > { %v1103_v34 = vadd.f32 %v1102_v46, %v1014_v29  ;;  %v1016_v60 = vpop.f32.mrf.mxu1  ;;  %v1683_v38 = vpop.f32.mrf.mxu0 }
 0x1ca   : > { %v1017_v56 = vadd.f32 %v1016_v60, %v4668_v17 }
 0x1cb   : > { %v1592_v11 = vadd.f32 %v1591_v59, %v1103_v34  ;;  %v3729_v59 = vor.u32 %v4099_v21, %v3728_v16  ;;  %v4101_v16 = vld [vmem:[%s4387_s6 + $0xf4] sm:$0xf] }
 0x1cc   : > { %1731 = vmatmul.bf16.gmra.mxu1 %v3325_v48  ;;  %2512 = vmatmul.bf16.gmra.mxu0 %v3725_v41 }
 0x1cd   : > { %2334 = vmatmul.bf16.gmra.mxu2 %v3717_v37  ;;  %2423 = vmatmul.bf16.gmra.mxu3 %v3721_v62  ;;  %v4946_v7 = vadd.f32 %v1680_v8, %v1592_v11  ;;  %v3730_v8 = vld [vmem:[%s4387_s6 + $0xe4] sm:$0xf0] }
 0x1ce   : > { %v3733_v48 = vor.u32 %v4098_v58, %v3730_v8 }
 0x1d0   : > { %v1105_v10 = vpop.f32.mrf.mxu2  ;;  %v1594_v53 = vpop.f32.mrf.mxu3 }
 0x1d1   : > { %v1106_v44 = vadd.f32 %v1105_v10, %v1017_v56  ;;  %v1018_v3 = vpop.f32.mrf.mxu1  ;;  %v1685_v55 = vpop.f32.mrf.mxu0  ;;  %v3348_v10 = vld [vmem:[%s4387_s6 + $0xc8] sm:$0xf] }
 0x1d2   : > { %v1019_v18 = vadd.f32 %v1018_v3, %v4690_v33  ;;  %v3748_v3 = vld [vmem:[%s4387_s6 + $0xf8] sm:$0xf] }
 0x1d3   : > { %v1595_v40 = vadd.f32 %v1594_v53, %v1106_v44  ;;  %v3959_v53 = vld [vmem:[%s4387_s6 + $0xd0] sm:$0xf0]  ;;  %v3740_v44 = vld [vmem:[%s4387_s6 + $0xf0] sm:$0xf] }
 0x1d4   : > { %v3349_v21 = vor.u32 %v3959_v53, %v3348_v10  ;;  %v4104_v10 = vld [vmem:[%s4387_s6 + $0x10c] sm:$0xf]  ;;  %v3754_v53 = vld [vmem:[%s4387_s6 + $0x114] sm:$0xf0] }
 0x1d5   : > { %v4954_v15 = vadd.f32 %v1683_v38, %v1595_v40  ;;  %v4103_v40 = vld [vmem:[%s4387_s6 + $0x100] sm:$0xf0] }
 0x1d6   : > { %v3749_v58 = vor.u32 %v4103_v40, %v3748_v3 }
 0x1d8   : > { %v1107_v20 = vpop.f32.mrf.mxu2  ;;  %v1596_v17 = vpop.f32.mrf.mxu3 }
 0x1d9   : > { %v1108_v25 = vadd.f32 %v1107_v20, %v1019_v18  ;;  %v1021_v29 = vpop.f32.mrf.mxu1  ;;  %v1688_v46 = vpop.f32.mrf.mxu0 }
 0x1da   : > { %v1022_v34 = vadd.f32 %v1021_v29, %v4698_v45 }
 0x1db   : > { %v1597_v41 = vadd.f32 %v1596_v17, %v1108_v25  ;;  %v3741_v17 = vor.u32 %v4102_v13, %v3740_v44 }
 0x1dc   : > { %1736 = vmatmul.bf16.gmra.mxu1 %v3337_v27  ;;  %2517 = vmatmul.bf16.gmra.mxu0 %v3737_v36 }
 0x1dd   : > { %2339 = vmatmul.bf16.gmra.mxu2 %v3729_v59  ;;  %2428 = vmatmul.bf16.gmra.mxu3 %v3733_v48  ;;  %v4960_v33 = vadd.f32 %v1685_v55, %v1597_v41  ;;  %v3742_v55 = vld [vmem:[%s4387_s6 + $0xfc] sm:$0xf0] }
 0x1de   : > { %v3745_v27 = vor.u32 %v4101_v16, %v3742_v55  ;;  %v3360_v41 = vld [vmem:[%s4387_s6 + $0xe0] sm:$0xf] }
 0x1df   : > { %v4988_v55 = vld [vmem:[%s5134_s2] ss:$0 sm:$0xff] }
 0x1e0   : > { %v1110_v60 = vpop.f32.mrf.mxu2  ;;  %v1599_v38 = vpop.f32.mrf.mxu3 }
 0x1e1   : > { %v1111_v37 = vadd.f32 %v1110_v60, %v1022_v34  ;;  %v1023_v62 = vpop.f32.mrf.mxu1  ;;  %v1690_v11 = vpop.f32.mrf.mxu0  ;;  %v3962_v34 = vld [vmem:[%s4387_s6 + $0xe8] sm:$0xf0] }
 0x1e2   : > { %v1024_v54 = vadd.f32 %v1023_v62, %v4714_v1  ;;  %v4106_v62 = vld [vmem:[%s4387_s6 + $0x118] sm:$0xf0] }
 0x1e3   : > { %v1600_v56 = vadd.f32 %v1599_v38, %v1111_v37  ;;  %v3752_v38 = vld [vmem:[%s4387_s6 + $0x108] sm:$0xf]  ;;  %v3760_v37 = vld [vmem:[%s4387_s6 + $0x110] sm:$0xf] }
 0x1e4   : > { %v3761_v13 = vor.u32 %v4106_v62, %v3760_v37  ;;  %v3772_v37 = vld [vmem:[%s4387_s6 + $0x128] sm:$0xf]  ;;  %v4109_v62 = vld [vmem:[%s4387_s6 + $0x130] sm:$0xf0] }
 0x1e5   : > { %v4968_v9 = vadd.f32 %v1688_v46, %v1600_v56  ;;  %v4105_v56 = vld [vmem:[%s4387_s6 + $0x110] sm:$0xf0] }
 0x1e8   : > { %v1112_v12 = vpop.f32.mrf.mxu2  ;;  %v1601_v45 = vpop.f32.mrf.mxu3 }
 0x1e9   : > { %v1113_v8 = vadd.f32 %v1112_v12, %v1024_v54  ;;  %v1702_v18 = vpop.f32.mrf.mxu1  ;;  %v2483_v20 = vpop.f32.mrf.mxu0 }
 0x1ea   : > { %v1703_v44 = vadd.f32 %v1702_v18, %v4735_v42 }
 0x1eb   : > { %v1602_v36 = vadd.f32 %v1601_v45, %v1113_v8 }
 0x1ec   : > { %1741 = vmatmul.bf16.gmra.mxu1 %v3349_v21  ;;  %2522 = vmatmul.bf16.gmra.mxu0 %v3749_v58  ;;  %v3753_v21 = vor.u32 %v4105_v56, %v3752_v38  ;;  %v3757_v58 = vor.u32 %v4104_v10, %v3754_v53  ;;  %v3764_v38 = vld [vmem:[%s4387_s6 + $0x120] sm:$0xf]  ;;  %v4108_v56 = vld [vmem:[%s4387_s6 + $0x128] sm:$0xf0]  ;;  %v4107_v10 = vld [vmem:[%s4387_s6 + $0x124] sm:$0xf] }
 0x1ed   : > { %2344 = vmatmul.bf16.gmra.mxu2 %v3741_v17  ;;  %2433 = vmatmul.bf16.gmra.mxu3 %v3745_v27  ;;  %v4974_v1 = vadd.f32 %v1690_v11, %v1602_v36  ;;  %v3361_v11 = vor.u32 %v3962_v34, %v3360_v41  ;;  %v3372_v41 = vld [vmem:[%s4387_s6 + $0xf8] sm:$0xf]  ;;  %v3965_v34 = vld [vmem:[%s4387_s6 + $0x100] sm:$0xf0]  ;;  %v3766_v53 = vld [vmem:[%s4387_s6 + $0x12c] sm:$0xf0] }
 0x1f0   : > { %v2305_v25 = vpop.f32.mrf.mxu2  ;;  %v2394_v29 = vpop.f32.mrf.mxu3 }
 0x1f1   : > { %v2395_v46 = vadd.f32 %v2394_v29, %v2305_v25  ;;  %v1704_v59 = vpop.f32.mrf.mxu1  ;;  %v2485_v48 = vpop.f32.mrf.mxu0 }
 0x1f2   : > { %v1705_v8 = vadd.f32 %v1704_v59, %v4741_v5 }
 0x1f3   : > { %v2484_v60 = vadd.f32 %v2483_v20, %v2395_v46 }
 0x1f5   : > { %v2563_v16 = vadd.f32 %v2484_v60, %v1703_v44 }
 0x1f7   : > { %v2599_v42 = vadd.f32 %v4988_v55, %v2563_v16 }
 0x1f8   : > { %v2307_v3 = vpop.f32.mrf.mxu2  ;;  %v2396_v40 = vpop.f32.mrf.mxu3 }
 0x1f9   : > { %v2397_v54 = vadd.f32 %v2396_v40, %v2307_v3  ;;  %v1707_v12 = vpop.f32.mrf.mxu1  ;;  %v2488_v45 = vpop.f32.mrf.mxu0  ;;  %v2631_v5 = vmax.f32 %v2599_v42, 0.0 }
 0x1fa   : > { %v1708_v44 = vadd.f32 %v1707_v12, %v4749_v26 }
 0x1fb   : > { %v2486_v20 = vadd.f32 %v2485_v48, %v2397_v54 }
 0x1fc   : > { %1746 = vmatmul.bf16.gmra.mxu1 %v3361_v11  ;;  %2527 = vmatmul.bf16.gmra.mxu0 %v3761_v13  ;;  %v3373_v11 = vor.u32 %v3965_v34, %v3372_v41  ;;  %v3773_v13 = vor.u32 %v4109_v62, %v3772_v37  ;;  %v3776_v41 = vld [vmem:[%s4387_s6 + $0x138] sm:$0xf]  ;;  %v4111_v37 = vld [vmem:[%s4387_s6 + $0x140] sm:$0xf0]  ;;  %v4110_v62 = vld [vmem:[%s4387_s6 + $0x13c] sm:$0xf] }
 0x1fd   : > { %v2564_v18 = vadd.f32 %v2486_v20, %v1705_v8  ;;  %2349 = vmatmul.bf16.gmra.mxu2 %v3753_v21  ;;  %2438 = vmatmul.bf16.gmra.mxu3 %v3757_v58  ;;  %v3765_v8 = vor.u32 %v4108_v56, %v3764_v38  ;;  %v3769_v20 = vor.u32 %v4107_v10, %v3766_v53  ;;  %v4112_v38 = vld [vmem:[%s4387_s6 + $0x148] sm:$0xf0]  ;;  %v3778_v56 = vld [vmem:[%s4387_s6 + $0x144] sm:$0xf0] }
 0x1ff   : > { %v2600_v17 = vadd.f32 %v4988_v55, %v2564_v18 }
 0x200   : > { %v2310_v27 = vpop.f32.mrf.mxu2  ;;  %v2399_v36 = vpop.f32.mrf.mxu3 }
 0x201   : > { %v2632_v25 = vmax.f32 %v2600_v17, 0.0  ;;  %v2400_v29 = vadd.f32 %v2399_v36, %v2310_v27  ;;  %v1709_v46 = vpop.f32.mrf.mxu1  ;;  %v2490_v59 = vpop.f32.mrf.mxu0 }
 0x203   : > { %v4152_v48 = vpack.c.bf16 %v2632_v25, %v2631_v5  ;;  %v2489_v60 = vadd.f32 %v2488_v45, %v2400_v29  ;;  %v1710_v45 = vadd.f32 %v1709_v46, %v4761_v63 }
 0x205   : > { %4153 = vst [vmem:[%s4997_s10] sm:$0xff] %v4152_v48   ;;  %v2565_v16 = vadd.f32 %v2489_v60, %v1708_v44  ;;  %v3968_v48 = vld [vmem:[%s4387_s6 + $0x118] sm:$0xf0]  ;;  %v3784_v60 = vld [vmem:[%s4387_s6 + $0x140] sm:$0xf] }
 0x207   : > { %v2601_v26 = vadd.f32 %v4988_v55, %v2565_v16 }
 0x208   : > { %v2312_v3 = vpop.f32.mrf.mxu2  ;;  %v2401_v40 = vpop.f32.mrf.mxu3 }
 0x209   : > { %v2402_v54 = vadd.f32 %v2401_v40, %v2312_v3  ;;  %v1712_v21 = vpop.f32.mrf.mxu1  ;;  %v2493_v58 = vpop.f32.mrf.mxu0  ;;  %v2633_v27 = vmax.f32 %v2601_v26, 0.0  ;;  %v3785_v40 = vor.u32 %v4112_v38, %v3784_v60  ;;  %v3790_v60 = vld [vmem:[%s4387_s6 + $0x15c] sm:$0xf0] }
 0x20a   : > { %v1713_v10 = vadd.f32 %v1712_v21, %v4775_v23 }
 0x20b   : > { %v2491_v42 = vadd.f32 %v2490_v59, %v2402_v54  ;;  %v3384_v59 = vld [vmem:[%s4387_s6 + $0x110] sm:$0xf] }
 0x20c   : > { %1751 = vmatmul.bf16.gmra.mxu1 %v3373_v11  ;;  %2532 = vmatmul.bf16.gmra.mxu0 %v3773_v13  ;;  %v3385_v3 = vor.u32 %v3968_v48, %v3384_v59  ;;  %v3796_v59 = vld [vmem:[%s4387_s6 + $0x158] sm:$0xf]  ;;  %v4115_v48 = vld [vmem:[%s4387_s6 + $0x160] sm:$0xf0] }
 0x20d   : > { %v2566_v12 = vadd.f32 %v2491_v42, %v1710_v45  ;;  %2354 = vmatmul.bf16.gmra.mxu2 %v3765_v8  ;;  %2443 = vmatmul.bf16.gmra.mxu3 %v3769_v20  ;;  %v3777_v8 = vor.u32 %v4111_v37, %v3776_v41  ;;  %v3781_v20 = vor.u32 %v4110_v62, %v3778_v56  ;;  %v4114_v41 = vld [vmem:[%s4387_s6 + $0x158] sm:$0xf0] }
 0x20f   : > { %v2602_v18 = vadd.f32 %v4988_v55, %v2566_v12 }
 0x210   : > { %v2315_v17 = vpop.f32.mrf.mxu2  ;;  %v2404_v63 = vpop.f32.mrf.mxu3 }
 0x211   : > { %v2634_v36 = vmax.f32 %v2602_v18, 0.0  ;;  %v2405_v5 = vadd.f32 %v2404_v63, %v2315_v17  ;;  %v1714_v25 = vpop.f32.mrf.mxu1  ;;  %v2495_v29 = vpop.f32.mrf.mxu0 }
 0x212   : > { %v1715_v45 = vadd.f32 %v1714_v25, %v4781_v49  ;;  %v3971_v25 = vld [vmem:[%s4387_s6 + $0x130] sm:$0xf0] }
 0x213   : > { %v4157_v46 = vpack.c.bf16 %v2634_v36, %v2633_v27  ;;  %v2494_v34 = vadd.f32 %v2493_v58, %v2405_v5  ;;  %v3396_v5 = vld [vmem:[%s4387_s6 + $0x128] sm:$0xf] }
 0x214   : > { %v3397_v56 = vor.u32 %v3971_v25, %v3396_v5  ;;  %v4117_v5 = vld [vmem:[%s4387_s6 + $0x170] sm:$0xf0]  ;;  %v4116_v25 = vld [vmem:[%s4387_s6 + $0x16c] sm:$0xf] }
 0x215   : > { %4229 = vst [vmem:[%s4997_s10 + $0x8] sm:$0xff] %v4157_v46   ;;  %v2567_v11 = vadd.f32 %v2494_v34, %v1713_v10  ;;  %v4113_v34 = vld [vmem:[%s4387_s6 + $0x154] sm:$0xf]  ;;  %v3797_v10 = vor.u32 %v4115_v48, %v3796_v59 }
 0x217   : > { %v2603_v23 = vadd.f32 %v4988_v55, %v2567_v11 }
 0x218   : > { %v2317_v53 = vpop.f32.mrf.mxu2  ;;  %v2406_v44 = vpop.f32.mrf.mxu3 }
 0x219   : > { %v2407_v13 = vadd.f32 %v2406_v44, %v2317_v53  ;;  %v1717_v16 = vpop.f32.mrf.mxu1  ;;  %v2498_v54 = vpop.f32.mrf.mxu0  ;;  %v2635_v12 = vmax.f32 %v2603_v23, 0.0 }
 0x21a   : > { %v1718_v38 = vadd.f32 %v1717_v16, %v4789_v14 }
 0x21b   : > { %v2496_v58 = vadd.f32 %v2495_v29, %v2407_v13  ;;  %v3788_v29 = vld [vmem:[%s4387_s6 + $0x150] sm:$0xf]  ;;  %v3793_v13 = vor.u32 %v4113_v34, %v3790_v60 }
 0x21c   : > { %1756 = vmatmul.bf16.gmra.mxu1 %v3385_v3  ;;  %2537 = vmatmul.bf16.gmra.mxu0 %v3785_v40  ;;  %v3789_v11 = vor.u32 %v4114_v41, %v3788_v29  ;;  %v3802_v29 = vld [vmem:[%s4387_s6 + $0x174] sm:$0xf0] }
 0x21d   : > { %v2568_v21 = vadd.f32 %v2496_v58, %v1715_v45  ;;  %2359 = vmatmul.bf16.gmra.mxu2 %v3777_v8  ;;  %2448 = vmatmul.bf16.gmra.mxu3 %v3781_v20 }
 0x21f   : > { %v2604_v42 = vadd.f32 %v4988_v55, %v2568_v21 }
 0x220   : > { %v2320_v26 = vpop.f32.mrf.mxu2  ;;  %v2409_v49 = vpop.f32.mrf.mxu3 }
 0x221   : > { %v2636_v18 = vmax.f32 %v2604_v42, 0.0  ;;  %v2410_v17 = vadd.f32 %v2409_v49, %v2320_v26  ;;  %v1719_v63 = vpop.f32.mrf.mxu1  ;;  %v2500_v27 = vpop.f32.mrf.mxu0 }
 0x222   : > { %v1720_v8 = vadd.f32 %v1719_v63, %v4800_v35 }
 0x223   : > { %v4162_v36 = vpack.c.bf16 %v2636_v18, %v2635_v12  ;;  %v2499_v46 = vadd.f32 %v2498_v54, %v2410_v17  ;;  %v3408_v12 = vld [vmem:[%s4387_s6 + $0x140] sm:$0xf]  ;;  %v3974_v18 = vld [vmem:[%s4387_s6 + $0x148] sm:$0xf0]  ;;  %v3800_v17 = vld [vmem:[%s4387_s6 + $0x168] sm:$0xf] }
 0x224   : > { %v3409_v41 = vor.u32 %v3974_v18, %v3408_v12  ;;  %v3814_v12 = vld [vmem:[%s4387_s6 + $0x18c] sm:$0xf0] }
 0x225   : > { %4230 = vst [vmem:[%s4997_s10 + $0x10] sm:$0xff] %v4162_v36   ;;  %v2569_v53 = vadd.f32 %v2499_v46, %v1718_v38  ;;  %v4118_v36 = vld [vmem:[%s4387_s6 + $0x178] sm:$0xf0] }
 0x227   : > { %v2605_v14 = vadd.f32 %v4988_v55, %v2569_v53 }
 0x228   : > { %v2322_v37 = vpop.f32.mrf.mxu2  ;;  %v2411_v62 = vpop.f32.mrf.mxu3 }
 0x229   : > { %v2412_v44 = vadd.f32 %v2411_v62, %v2322_v37  ;;  %v1722_v3 = vpop.f32.mrf.mxu1  ;;  %v2503_v40 = vpop.f32.mrf.mxu0  ;;  %v2637_v58 = vmax.f32 %v2605_v14, 0.0 }
 0x22a   : > { %v1723_v46 = vadd.f32 %v1722_v3, %v4814_v4 }
 0x22b   : > { %v2501_v54 = vadd.f32 %v2500_v27, %v2412_v44  ;;  %v3808_v27 = vld [vmem:[%s4387_s6 + $0x170] sm:$0xf] }
 0x22c   : > { %1761 = vmatmul.bf16.gmra.mxu1 %v3397_v56  ;;  %2542 = vmatmul.bf16.gmra.mxu0 %v3797_v10  ;;  %v3809_v34 = vor.u32 %v4118_v36, %v3808_v27  ;;  %v3801_v56 = vor.u32 %v4117_v5, %v3800_v17  ;;  %v3805_v10 = vor.u32 %v4116_v25, %v3802_v29 }
 0x22d   : > { %v2570_v16 = vadd.f32 %v2501_v54, %v1720_v8  ;;  %2364 = vmatmul.bf16.gmra.mxu2 %v3789_v11  ;;  %2453 = vmatmul.bf16.gmra.mxu3 %v3793_v13 }
 0x22f   : > { %v2606_v20 = vadd.f32 %v4988_v55, %v2570_v16 }
 0x230   : > { %v2325_v45 = vpop.f32.mrf.mxu2  ;;  %v2414_v35 = vpop.f32.mrf.mxu3 }
 0x231   : > { %v2638_v23 = vmax.f32 %v2606_v20, 0.0  ;;  %v2415_v21 = vadd.f32 %v2414_v35, %v2325_v45  ;;  %v1724_v42 = vpop.f32.mrf.mxu1  ;;  %v2505_v26 = vpop.f32.mrf.mxu0  ;;  %v3420_v45 = vld [vmem:[%s4387_s6 + $0x158] sm:$0xf]  ;;  %v3977_v35 = vld [vmem:[%s4387_s6 + $0x160] sm:$0xf0] }
 0x232   : > { %v1725_v53 = vadd.f32 %v1724_v42, %v4820_v39  ;;  %v4121_v42 = vld [vmem:[%s4387_s6 + $0x190] sm:$0xf0]  ;;  %v3421_v27 = vor.u32 %v3977_v35, %v3420_v45 }
 0x233   : > { %v4167_v49 = vpack.c.bf16 %v2638_v23, %v2637_v58  ;;  %v2504_v63 = vadd.f32 %v2503_v40, %v2415_v21  ;;  %v3812_v58 = vld [vmem:[%s4387_s6 + $0x180] sm:$0xf]  ;;  %v3820_v21 = vld [vmem:[%s4387_s6 + $0x188] sm:$0xf] }
 0x234   : > { %v3821_v36 = vor.u32 %v4121_v42, %v3820_v21 }
 0x235   : > { %4231 = vst [vmem:[%s4997_s10 + $0x18] sm:$0xff] %v4167_v49   ;;  %v2571_v60 = vadd.f32 %v2504_v63, %v1723_v46  ;;  %v4119_v49 = vld [vmem:[%s4387_s6 + $0x184] sm:$0xf] }
 0x237   : > { %v2607_v4 = vadd.f32 %v4988_v55, %v2571_v60 }
 0x238   : > { %v2327_v59 = vpop.f32.mrf.mxu2  ;;  %v2416_v48 = vpop.f32.mrf.mxu3 }
 0x239   : > { %v2417_v38 = vadd.f32 %v2416_v48, %v2327_v59  ;;  %v1727_v37 = vpop.f32.mrf.mxu1  ;;  %v2508_v62 = vpop.f32.mrf.mxu0  ;;  %v2639_v13 = vmax.f32 %v2607_v4, 0.0  ;;  %v3817_v48 = vor.u32 %v4119_v49, %v3814_v12 }
 0x23a   : > { %v1728_v18 = vadd.f32 %v1727_v37, %v4828_v31 }
 0x23b   : > { %v2506_v44 = vadd.f32 %v2505_v26, %v2417_v38  ;;  %v4120_v26 = vld [vmem:[%s4387_s6 + $0x188] sm:$0xf0] }
 0x23c   : > { %1766 = vmatmul.bf16.gmra.mxu1 %v3409_v41  ;;  %2547 = vmatmul.bf16.gmra.mxu0 %v3809_v34  ;;  %v3813_v59 = vor.u32 %v4120_v26, %v3812_v58 }
 0x23d   : > { %v2572_v3 = vadd.f32 %v2506_v44, %v1725_v53  ;;  %2369 = vmatmul.bf16.gmra.mxu2 %v3801_v56  ;;  %2458 = vmatmul.bf16.gmra.mxu3 %v3805_v10 }
 0x23f   : > { %v2608_v40 = vadd.f32 %v4988_v55, %v2572_v3  ;;  %v3432_v3 = vld [vmem:[%s4387_s6 + $0x170] sm:$0xf] }
 0x240   : > { %v2330_v11 = vpop.f32.mrf.mxu2  ;;  %v2419_v39 = vpop.f32.mrf.mxu3 }
 0x241   : > { %v2640_v8 = vmax.f32 %v2608_v40, 0.0  ;;  %v2420_v54 = vadd.f32 %v2419_v39, %v2330_v11  ;;  %v1729_v14 = vpop.f32.mrf.mxu1  ;;  %v2510_v16 = vpop.f32.mrf.mxu0  ;;  %v3980_v40 = vld [vmem:[%s4387_s6 + $0x178] sm:$0xf0]  ;;  %v3824_v11 = vld [vmem:[%s4387_s6 + $0x198] sm:$0xf] }
 0x242   : > { %v1730_v41 = vadd.f32 %v1729_v14, %v4834_v61  ;;  %v4122_v14 = vld [vmem:[%s4387_s6 + $0x19c] sm:$0xf]  ;;  %v3433_v58 = vor.u32 %v3980_v40, %v3432_v3 }
 0x243   : > { %v4172_v20 = vpack.c.bf16 %v2640_v8, %v2639_v13  ;;  %v2509_v23 = vadd.f32 %v2508_v62, %v2420_v54  ;;  %v3832_v13 = vld [vmem:[%s4387_s6 + $0x1a0] sm:$0xf]  ;;  %v4124_v8 = vld [vmem:[%s4387_s6 + $0x1a8] sm:$0xf0]  ;;  %v4123_v54 = vld [vmem:[%s4387_s6 + $0x1a0] sm:$0xf0] }
 0x244   : > { %v3825_v12 = vor.u32 %v4123_v54, %v3824_v11 }
 0x245   : > { %4232 = vst [vmem:[%s4997_s10 + $0x20] sm:$0xff] %v4172_v20   ;;  %v2573_v5 = vadd.f32 %v2509_v23, %v1728_v18  ;;  %v3833_v23 = vor.u32 %v4124_v8, %v3832_v13 }
 0x247   : > { %v2609_v31 = vadd.f32 %v4988_v55, %v2573_v5 }
 0x248   : > { %v2332_v17 = vpop.f32.mrf.mxu2  ;;  %v2421_v63 = vpop.f32.mrf.mxu3 }
 0x249   : > { %v2422_v25 = vadd.f32 %v2421_v63, %v2332_v17  ;;  %v1732_v29 = vpop.f32.mrf.mxu1  ;;  %v2513_v46 = vpop.f32.mrf.mxu0  ;;  %v2641_v62 = vmax.f32 %v2609_v31, 0.0 }
 0x24a   : > { %v1733_v20 = vadd.f32 %v1732_v29, %v4842_v52 }
 0x24b   : > { %v2511_v34 = vadd.f32 %v2510_v16, %v2422_v25  ;;  %v3826_v16 = vld [vmem:[%s4387_s6 + $0x1a4] sm:$0xf0] }
 0x24c   : > { %1771 = vmatmul.bf16.gmra.mxu1 %v3421_v27  ;;  %2552 = vmatmul.bf16.gmra.mxu0 %v3821_v36  ;;  %v3829_v18 = vor.u32 %v4122_v14, %v3826_v16 }
 0x24d   : > { %v2574_v60 = vadd.f32 %v2511_v34, %v1730_v41  ;;  %2374 = vmatmul.bf16.gmra.mxu2 %v3813_v59  ;;  %2463 = vmatmul.bf16.gmra.mxu3 %v3817_v48 }
 0x24f   : > { %v2610_v38 = vadd.f32 %v4988_v55, %v2574_v60 }
 0x250   : > { %v2335_v37 = vpop.f32.mrf.mxu2  ;;  %v2424_v61 = vpop.f32.mrf.mxu3 }
 0x251   : > { %v2642_v56 = vmax.f32 %v2610_v38, 0.0  ;;  %v2425_v10 = vadd.f32 %v2424_v61, %v2335_v37  ;;  %v1734_v53 = vpop.f32.mrf.mxu1  ;;  %v2515_v44 = vpop.f32.mrf.mxu0 }
 0x252   : > { %v1735_v17 = vadd.f32 %v1734_v53, %v4848_v19 }
 0x253   : > { %v4177_v4 = vpack.c.bf16 %v2642_v56, %v2641_v62  ;;  %v2514_v39 = vadd.f32 %v2513_v46, %v2425_v10 }
 0x255   : > { %4233 = vst [vmem:[%s4997_s10 + $0x28] sm:$0xff] %v4177_v4   ;;  %v2575_v21 = vadd.f32 %v2514_v39, %v1733_v20 }
 0x257   : > { %v2611_v27 = vadd.f32 %v4988_v55, %v2575_v21 }
 0x258   : > { %v2337_v45 = vpop.f32.mrf.mxu2  ;;  %v2426_v35 = vpop.f32.mrf.mxu3 }
 0x259   : > { %v2427_v42 = vadd.f32 %v2426_v35, %v2337_v45  ;;  %v1737_v26 = vpop.f32.mrf.mxu1  ;;  %v2518_v49 = vpop.f32.mrf.mxu0  ;;  %v2643_v29 = vmax.f32 %v2611_v27, 0.0 }
 0x25a   : > { %v1738_v31 = vadd.f32 %v1737_v26, %v4856_v22 }
 0x25b   : > { %v2516_v63 = vadd.f32 %v2515_v44, %v2427_v42 }
 0x25c   : > { %1776 = vmatmul.bf16.gmra.mxu1 %v3433_v58  ;;  %2557 = vmatmul.bf16.gmra.mxu0 %v3833_v23 }
 0x25d   : > { %v2576_v36 = vadd.f32 %v2516_v63, %v1735_v17  ;;  %2379 = vmatmul.bf16.gmra.mxu2 %v3825_v12  ;;  %2468 = vmatmul.bf16.gmra.mxu3 %v3829_v18 }
 0x25f   : > { %v2612_v52 = vadd.f32 %v4988_v55, %v2576_v36 }
 0x260   : > { %v2340_v5 = vpop.f32.mrf.mxu2  ;;  %v2429_v25 = vpop.f32.mrf.mxu3 }
 0x261   : > { %v2644_v46 = vmax.f32 %v2612_v52, 0.0  ;;  %v2430_v59 = vadd.f32 %v2429_v25, %v2340_v5  ;;  %v1739_v48 = vpop.f32.mrf.mxu1  ;;  %v2520_v41 = vpop.f32.mrf.mxu0 }
 0x262   : > { %v1740_v10 = vadd.f32 %v1739_v48, %v4862_v47 }
 0x263   : > { %v4182_v34 = vpack.c.bf16 %v2644_v46, %v2643_v29  ;;  %v2519_v19 = vadd.f32 %v2518_v49, %v2430_v59 }
 0x265   : > { %4234 = vst [vmem:[%s4997_s10 + $0x30] sm:$0xff] %v4182_v34   ;;  %v2577_v37 = vadd.f32 %v2519_v19, %v1738_v31 }
 0x267   : > { %v2613_v44 = vadd.f32 %v4988_v55, %v2577_v37 }
 0x268   : > { %v2342_v60 = vpop.f32.mrf.mxu2  ;;  %v2431_v38 = vpop.f32.mrf.mxu3 }
 0x269   : > { %v2432_v61 = vadd.f32 %v2431_v38, %v2342_v60  ;;  %v1742_v62 = vpop.f32.mrf.mxu1  ;;  %v2523_v56 = vpop.f32.mrf.mxu0  ;;  %v2645_v39 = vmax.f32 %v2613_v44, 0.0 }
 0x26a   : > { %v1743_v20 = vadd.f32 %v1742_v62, %v4870_v24 }
 0x26b   : > { %v2521_v53 = vadd.f32 %v2520_v41, %v2432_v61 }
 0x26d   : > { %v2578_v4 = vadd.f32 %v2521_v53, %v1740_v10 }
 0x26f   : > { %v2614_v3 = vadd.f32 %v4988_v55, %v2578_v4 }
 0x270   : > { %v2345_v40 = vpop.f32.mrf.mxu2  ;;  %v2434_v11 = vpop.f32.mrf.mxu3 }
 0x271   : > { %v2646_v13 = vmax.f32 %v2614_v3, 0.0  ;;  %v2435_v22 = vadd.f32 %v2434_v11, %v2345_v40  ;;  %v1744_v8 = vpop.f32.mrf.mxu1  ;;  %v2525_v54 = vpop.f32.mrf.mxu0 }
 0x272   : > { %v1745_v42 = vadd.f32 %v1744_v8, %v4876_v50 }
 0x273   : > { %v4187_v14 = vpack.c.bf16 %v2646_v13, %v2645_v39  ;;  %v2524_v16 = vadd.f32 %v2523_v56, %v2435_v22 }
 0x275   : > { %4235 = vst [vmem:[%s4997_s10 + $0x38] sm:$0xff] %v4187_v14   ;;  %v2579_v35 = vadd.f32 %v2524_v16, %v1743_v20 }
 0x277   : > { %v2615_v49 = vadd.f32 %v4988_v55, %v2579_v35 }
 0x278   : > { %v2347_v45 = vpop.f32.mrf.mxu2  ;;  %v2436_v47 = vpop.f32.mrf.mxu3 }
 0x279   : > { %v2437_v58 = vadd.f32 %v2436_v47, %v2347_v45  ;;  %v1747_v23 = vpop.f32.mrf.mxu1  ;;  %v2528_v21 = vpop.f32.mrf.mxu0  ;;  %v2647_v27 = vmax.f32 %v2615_v49, 0.0 }
 0x27a   : > { %v1748_v46 = vadd.f32 %v1747_v23, %v4884_v30 }
 0x27b   : > { %v2526_v26 = vadd.f32 %v2525_v54, %v2437_v58 }
 0x27d   : > { %v2580_v12 = vadd.f32 %v2526_v26, %v1745_v42 }
 0x27f   : > { %v2616_v18 = vadd.f32 %v4988_v55, %v2580_v12 }
 0x280   : > { %v2350_v17 = vpop.f32.mrf.mxu2  ;;  %v2439_v63 = vpop.f32.mrf.mxu3 }
 0x281   : > { %v2648_v36 = vmax.f32 %v2616_v18, 0.0  ;;  %v2440_v24 = vadd.f32 %v2439_v63, %v2350_v17  ;;  %v1749_v52 = vpop.f32.mrf.mxu1  ;;  %v2530_v5 = vpop.f32.mrf.mxu0 }
 0x282   : > { %v1750_v31 = vadd.f32 %v1749_v52, %v4890_v6 }
 0x283   : > { %v4192_v25 = vpack.c.bf16 %v2648_v36, %v2647_v27  ;;  %v2529_v29 = vadd.f32 %v2528_v21, %v2440_v24 }
 0x285   : > { %4236 = vst [vmem:[%s4997_s10 + $0x40] sm:$0xff] %v4192_v25   ;;  %v2581_v48 = vadd.f32 %v2529_v29, %v1748_v46 }
 0x287   : > { %v2617_v38 = vadd.f32 %v4988_v55, %v2581_v48 }
 0x288   : > { %v2352_v59 = vpop.f32.mrf.mxu2  ;;  %v2441_v50 = vpop.f32.mrf.mxu3 }
 0x289   : > { %v2442_v41 = vadd.f32 %v2441_v50, %v2352_v59  ;;  %v1752_v34 = vpop.f32.mrf.mxu1  ;;  %v2533_v19 = vpop.f32.mrf.mxu0  ;;  %v2649_v10 = vmax.f32 %v2617_v38, 0.0 }
 0x28a   : > { %v1753_v11 = vadd.f32 %v1752_v34, %v4898_v2 }
 0x28b   : > { %v2531_v60 = vadd.f32 %v2530_v5, %v2442_v41 }
 0x28d   : > { %v2582_v37 = vadd.f32 %v2531_v60, %v1750_v31 }
 0x28f   : > { %v2618_v61 = vadd.f32 %v4988_v55, %v2582_v37 }
 0x290   : > { %v2355_v62 = vpop.f32.mrf.mxu2  ;;  %v2444_v56 = vpop.f32.mrf.mxu3 }
 0x291   : > { %v2650_v53 = vmax.f32 %v2618_v61, 0.0  ;;  %v2445_v30 = vadd.f32 %v2444_v56, %v2355_v62  ;;  %v1754_v44 = vpop.f32.mrf.mxu1  ;;  %v2535_v4 = vpop.f32.mrf.mxu0 }
 0x292   : > { %v1755_v14 = vadd.f32 %v1754_v44, %v4904_v32 }
 0x293   : > { %v4197_v3 = vpack.c.bf16 %v2650_v53, %v2649_v10  ;;  %v2534_v40 = vadd.f32 %v2533_v19, %v2445_v30 }
 0x295   : > { %4237 = vst [vmem:[%s4997_s10 + $0x48] sm:$0xff] %v4197_v3   ;;  %v2583_v13 = vadd.f32 %v2534_v40, %v1753_v11 }
 0x297   : > { %v2619_v20 = vadd.f32 %v4988_v55, %v2583_v13 }
 0x298   : > { %v2357_v39 = vpop.f32.mrf.mxu2  ;;  %v2446_v6 = vpop.f32.mrf.mxu3 }
 0x299   : > { %v2447_v22 = vadd.f32 %v2446_v6, %v2357_v39  ;;  %v1757_v8 = vpop.f32.mrf.mxu1  ;;  %v2538_v54 = vpop.f32.mrf.mxu0  ;;  %v2651_v23 = vmax.f32 %v2619_v20, 0.0 }
 0x29a   : > { %v1758_v18 = vadd.f32 %v1757_v8, %v4912_v57 }
 0x29b   : > { %v2536_v16 = vadd.f32 %v2535_v4, %v2447_v22 }
 0x29d   : > { %v2584_v45 = vadd.f32 %v2536_v16, %v1755_v14 }
 0x29f   : > { %v2620_v47 = vadd.f32 %v4988_v55, %v2584_v45 }
 0x2a0   : > { %v2360_v35 = vpop.f32.mrf.mxu2  ;;  %v2449_v58 = vpop.f32.mrf.mxu3 }
 0x2a1   : > { %v2652_v21 = vmax.f32 %v2620_v47, 0.0  ;;  %v2450_v2 = vadd.f32 %v2449_v58, %v2360_v35  ;;  %v1759_v42 = vpop.f32.mrf.mxu1  ;;  %v2540_v26 = vpop.f32.mrf.mxu0 }
 0x2a2   : > { %v1760_v52 = vadd.f32 %v1759_v42, %v4918_v0 }
 0x2a3   : > { %v4202_v49 = vpack.c.bf16 %v2652_v21, %v2651_v23  ;;  %v2539_v12 = vadd.f32 %v2538_v54, %v2450_v2 }
 0x2a5   : > { %4238 = vst [vmem:[%s4997_s10 + $0x50] sm:$0xff] %v4202_v49   ;;  %v2585_v63 = vadd.f32 %v2539_v12, %v1758_v18 }
 0x2a7   : > { %v2621_v25 = vadd.f32 %v4988_v55, %v2585_v63 }
 0x2a8   : > { %v2362_v17 = vpop.f32.mrf.mxu2  ;;  %v2451_v32 = vpop.f32.mrf.mxu3 }
 0x2a9   : > { %v2452_v27 = vadd.f32 %v2451_v32, %v2362_v17  ;;  %v1762_v36 = vpop.f32.mrf.mxu1  ;;  %v2543_v24 = vpop.f32.mrf.mxu0  ;;  %v2653_v48 = vmax.f32 %v2621_v25, 0.0 }
 0x2aa   : > { %v1763_v38 = vadd.f32 %v1762_v36, %v4926_v43 }
 0x2ab   : > { %v2541_v5 = vadd.f32 %v2540_v26, %v2452_v27 }
 0x2ad   : > { %v2586_v29 = vadd.f32 %v2541_v5, %v1760_v52 }
 0x2af   : > { %v2622_v46 = vadd.f32 %v4988_v55, %v2586_v29 }
 0x2b0   : > { %v2365_v59 = vpop.f32.mrf.mxu2  ;;  %v2454_v50 = vpop.f32.mrf.mxu3 }
 0x2b1   : > { %v2654_v41 = vmax.f32 %v2622_v46, 0.0  ;;  %v2455_v57 = vadd.f32 %v2454_v50, %v2365_v59  ;;  %v1764_v34 = vpop.f32.mrf.mxu1  ;;  %v2545_v19 = vpop.f32.mrf.mxu0 }
 0x2b2   : > { %v1765_v53 = vadd.f32 %v1764_v34, %v4932_v51 }
 0x2b3   : > { %v4207_v31 = vpack.c.bf16 %v2654_v41, %v2653_v48  ;;  %v2544_v60 = vadd.f32 %v2543_v24, %v2455_v57 }
 0x2b5   : > { %4239 = vst [vmem:[%s4997_s10 + $0x58] sm:$0xff] %v4207_v31   ;;  %v2587_v61 = vadd.f32 %v2544_v60, %v1763_v38 }
 0x2b7   : > { %v2623_v44 = vadd.f32 %v4988_v55, %v2587_v61 }
 0x2b8   : > { %v2367_v37 = vpop.f32.mrf.mxu2  ;;  %v2456_v0 = vpop.f32.mrf.mxu3 }
 0x2b9   : > { %v2457_v62 = vadd.f32 %v2456_v0, %v2367_v37  ;;  %v1767_v56 = vpop.f32.mrf.mxu1  ;;  %v2548_v10 = vpop.f32.mrf.mxu0  ;;  %v2655_v39 = vmax.f32 %v2623_v44, 0.0 }
 0x2ba   : > { %v1768_v14 = vadd.f32 %v1767_v56, %v4940_v28 }
 0x2bb   : > { %v2546_v30 = vadd.f32 %v2545_v19, %v2457_v62 }
 0x2bd   : > { %v2588_v4 = vadd.f32 %v2546_v30, %v1765_v53 }
 0x2bf   : > { %v2624_v3 = vadd.f32 %v4988_v55, %v2588_v4 }
 0x2c0   : > { %v2370_v40 = vpop.f32.mrf.mxu2  ;;  %v2459_v11 = vpop.f32.mrf.mxu3 }
 0x2c1   : > { %v2656_v6 = vmax.f32 %v2624_v3, 0.0  ;;  %v2460_v43 = vadd.f32 %v2459_v11, %v2370_v40  ;;  %v1769_v13 = vpop.f32.mrf.mxu1  ;;  %v2550_v22 = vpop.f32.mrf.mxu0 }
 0x2c2   : > { %v1770_v35 = vadd.f32 %v1769_v13, %v4946_v7 }
 0x2c3   : > { %v4212_v8 = vpack.c.bf16 %v2656_v6, %v2655_v39  ;;  %v2549_v54 = vadd.f32 %v2548_v10, %v2460_v43 }
 0x2c5   : > { %4240 = vst [vmem:[%s4997_s10 + $0x60] sm:$0xff] %v4212_v8   ;;  %v2589_v20 = vadd.f32 %v2549_v54, %v1768_v14 }
 0x2c7   : > { %v2625_v21 = vadd.f32 %v4988_v55, %v2589_v20 }
 0x2c8   : > { %v2372_v16 = vpop.f32.mrf.mxu2  ;;  %v2461_v51 = vpop.f32.mrf.mxu3 }
 0x2c9   : > { %v2462_v45 = vadd.f32 %v2461_v51, %v2372_v16  ;;  %v1772_v47 = vpop.f32.mrf.mxu1  ;;  %v2553_v23 = vpop.f32.mrf.mxu0  ;;  %v2657_v12 = vmax.f32 %v2625_v21, 0.0 }
 0x2ca   : > { %v1773_v36 = vadd.f32 %v1772_v47, %v4954_v15 }
 0x2cb   : > { %v2551_v58 = vadd.f32 %v2550_v22, %v2462_v45 }
 0x2cd   : > { %v2590_v2 = vadd.f32 %v2551_v58, %v1770_v35 }
 0x2cf   : > { %v2626_v42 = vadd.f32 %v4988_v55, %v2590_v2 }
 0x2d0   : > { %v2375_v26 = vpop.f32.mrf.mxu2  ;;  %v2464_v49 = vpop.f32.mrf.mxu3 }
 0x2d1   : > { %v2658_v18 = vmax.f32 %v2626_v42, 0.0  ;;  %v2465_v28 = vadd.f32 %v2464_v49, %v2375_v26  ;;  %v1774_v32 = vpop.f32.mrf.mxu1  ;;  %v2555_v27 = vpop.f32.mrf.mxu0 }
 0x2d2   : > { %v1775_v25 = vadd.f32 %v1774_v32, %v4960_v33 }
 0x2d3   : > { %v4217_v17 = vpack.c.bf16 %v2658_v18, %v2657_v12  ;;  %v2554_v63 = vadd.f32 %v2553_v23, %v2465_v28 }
 0x2d5   : > { %4241 = vst [vmem:[%s4997_s10 + $0x68] sm:$0xff] %v4217_v17   ;;  %v2591_v52 = vadd.f32 %v2554_v63, %v1773_v36 }
 0x2d7   : > { %v2627_v46 = vadd.f32 %v4988_v55, %v2591_v52 }
 0x2d8   : > { %v2377_v7 = vpop.f32.mrf.mxu2  ;;  %v2466_v24 = vpop.f32.mrf.mxu3 }
 0x2d9   : > { %v2467_v5 = vadd.f32 %v2466_v24, %v2377_v7  ;;  %v1777_v50 = vpop.f32.mrf.mxu1  ;;  %v2558_v41 = vpop.f32.mrf.mxu0  ;;  %v2659_v19 = vmax.f32 %v2627_v46, 0.0 }
 0x2da   : > { %v1778_v37 = vadd.f32 %v1777_v50, %v4968_v9 }
 0x2db   : > { %v2556_v29 = vadd.f32 %v2555_v27, %v2467_v5 }
 0x2dd   : > { %v2592_v59 = vadd.f32 %v2556_v29, %v1775_v25 }
 0x2df   : > { %v2628_v48 = vadd.f32 %v4988_v55, %v2592_v59 }
 0x2e0   : > { %v2380_v57 = vpop.f32.mrf.mxu2  ;;  %v2469_v34 = vpop.f32.mrf.mxu3 }
 0x2e1   : > { %v2660_v31 = vmax.f32 %v2628_v48, 0.0  ;;  %v2470_v15 = vadd.f32 %v2469_v34, %v2380_v57  ;;  %v1779_v33 = vpop.f32.mrf.mxu1  ;;  %v2560_v10 = vpop.f32.mrf.mxu0 }
 0x2e2   : > { %v1780_v53 = vadd.f32 %v1779_v33, %v4974_v1 }
 0x2e3   : > { %v4222_v60 = vpack.c.bf16 %v2660_v31, %v2659_v19  ;;  %v2559_v38 = vadd.f32 %v2558_v41, %v2470_v15 }
 0x2e5   : > { %4242 = vst [vmem:[%s4997_s10 + $0x70] sm:$0xff] %v4222_v60   ;;  %v2593_v62 = vadd.f32 %v2559_v38, %v1778_v37 }
 0x2e7   : > { %v2629_v44 = vadd.f32 %v4988_v55, %v2593_v62 }
 0x2e8   : > { %v2382_v0 = vpop.f32.mrf.mxu2  ;;  %v2471_v61 = vpop.f32.mrf.mxu3 }
 0x2e9   : > { %v2472_v56 = vadd.f32 %v2471_v61, %v2382_v0  ;;  %v2661_v40 = vmax.f32 %v2629_v44, 0.0 }
 0x2eb   : > { %v2561_v30 = vadd.f32 %v2560_v10, %v2472_v56 }
 0x2ed   : > { %v2594_v4 = vadd.f32 %v2561_v30, %v1780_v53 }
 0x2ef   : > { %v2630_v3 = vadd.f32 %v4988_v55, %v2594_v4 }
 0x2f1   : > { %v2662_v11 = vmax.f32 %v2630_v3, 0.0 }
 0x2f3   : > { %v4227_v39 = vpack.c.bf16 %v2662_v11, %v2661_v40 }
 0x2f5   : > { %4243 = vst [vmem:[%s4997_s10 + $0x78] sm:$0xff] %v4227_v39  }
 0x2f6 PF: > { %s13_s14 = sadd.s32 1, %s4316_s14   ;;  %s5136_s12 = smov %s4312_s13 }
 0x2f7   : > { %p10_p5 = scmp.ge.s32.totalorder %s13_s14, 4   ;;  %s5137_s13 = smov %s5139_s15 }
 0x2f9   :  { %12 = sbr.rel (!%p10_p5) target bundleno = 2 (0x2), region = 72 }

</bundles_post_ra>
